<compile_context>
chip_gen: v7x
topology: tpu7x:2x2x1
jax: 0.10.0
libtpu: 0.0.40
codegen_flags: <defaults>
</compile_context>

<pallas_src>
import functools

import numpy as np
import jax
import jax.numpy as jnp
from jax.experimental import pallas as pl
from jax.experimental.pallas import tpu as pltpu


def _gelu_erf(h):
    # Exact (erf) GELU, matching PyTorch nn.GELU's default.  erf is evaluated
    # with the Abramowitz-Stegun 7.1.26 polynomial (|err| < 1.5e-7) so only
    # Mosaic-guaranteed elementwise ops are needed (no erf lowering rule).
    # Kept fully in f32 (v5e has no bf16 VPU/EUP path).
    z = h * 0.7071067811865476
    az = jnp.abs(z)
    t = 1.0 / (1.0 + 0.3275911 * az)
    poly = ((((1.061405429 * t - 1.453152027) * t + 1.421413741) * t
             - 0.284496736) * t + 0.254829592) * t
    erf_abs = 1.0 - poly * jnp.exp(-az * az)
    erf_z = jnp.where(z >= 0.0, erf_abs, -erf_abs)
    return 0.5 * h * (1.0 + erf_z)


# ----------------------------------------------------------------------------
# Pallas kernel: full Transformer block for one block of `batch_per_block`
# batch elements (all dense projections run at M = batch_per_block * N).
# ----------------------------------------------------------------------------
def transformer_kernel(x_ref, ln1w_ref, ln1b_ref, wqkvt_ref, relb_ref,
                       wot_ref, bo_ref, ln2w_ref, ln2b_ref,
                       w1t_ref, b1_ref, w2t_ref, b2_ref,
                       o_ref, qkv_ref, ctx_ref,
                       *, heads, dim_head, n_tokens, batch_per_block):
    N = n_tokens
    dh = dim_head
    bb = batch_per_block
    inner = heads * dh
    eps = 1e-5

    x = x_ref[...]                                  # (bb*N, C) f32

    def layernorm(v, w, b):                         # f32 elementwise
        mu = jnp.mean(v, axis=-1, keepdims=True)
        var = jnp.mean((v - mu) ** 2, axis=-1, keepdims=True)
        return (v - mu) * jax.lax.rsqrt(var + eps) * w + b

    # ---- attention branch (PreNorm -> Attention) -----------------------------
    # One qkv GEMM over the whole (bb*N, C) slab: bf16 operands, f32 accum.
    ln1 = layernorm(x, ln1w_ref[...], ln1b_ref[...])
    qkv = jnp.dot(ln1.astype(jnp.bfloat16), wqkvt_ref[...],
                  preferred_element_type=jnp.float32)       # (bb*N, 3*inner)
    # Park qkv (bf16) in VMEM so the unrolled head loop re-loads slices from
    # the ref instead of keeping the whole value live across every iteration.
    qkv_ref[...] = qkv.astype(jnp.bfloat16)

    # Static Python loop over heads (trip count <= 8): static lane offsets give
    # clean slices, and each iteration ends in a scratch store so nothing but
    # this head's tensors is live.  The batch dim is handled by batched einsum
    # (no per-batch Python loop, no concat).
    for h in range(heads):
        # Q columns were pre-scaled host-side (attention scale folded in Wqkv).
        qh = qkv_ref[:, h * dh:(h + 1) * dh].reshape(bb, N, dh)
        kh = qkv_ref[:, inner + h * dh:inner + (h + 1) * dh].reshape(bb, N, dh)
        vh = qkv_ref[:, 2 * inner + h * dh:
                     2 * inner + (h + 1) * dh].reshape(bb, N, dh)

        dots = jnp.einsum("bnd,bmd->bnm", qh, kh,
                          preferred_element_type=jnp.float32)   # (bb, N, N) f32
        # Only this head's bf16 (N, N) bias is touched; the upcast is fused into
        # the add (never materialize the full f32 (heads, N, N) bias).
        dots = dots + relb_ref[h]
        dots = dots - jnp.max(dots, axis=-1, keepdims=True)
        p = jnp.exp(dots)
        attn = p * pl.reciprocal(jnp.sum(p, axis=-1, keepdims=True),
                                 approx=True)                   # softmax(dim=-1)
        ctx = jnp.einsum("bnm,bmd->bnd", attn.astype(jnp.bfloat16), vh,
                         preferred_element_type=jnp.float32)    # (bb, N, dh)
        # Lane-dense assembly of the per-head context for a single Wo GEMM.
        ctx_ref[:, h * dh:(h + 1) * dh] = (
            ctx.reshape(bb * N, dh).astype(jnp.bfloat16))

    # Single K=inner output projection (keeps the MXU pipe full instead of
    # `heads` short K=dh pushes); bf16 operands, f32 accumulation.
    attn_out = jnp.dot(ctx_ref[...], wot_ref[...],
                       preferred_element_type=jnp.float32) + bo_ref[...]
    x1 = x + attn_out                                           # residual

    # ---- feed-forward branch (PreNorm -> MLP), again at M = bb*N -------------
    ln2 = layernorm(x1, ln2w_ref[...], ln2b_ref[...])
    hdn = jnp.dot(ln2.astype(jnp.bfloat16), w1t_ref[...],
                  preferred_element_type=jnp.float32) + b1_ref[...]
    hdn = _gelu_erf(hdn)                                        # f32 elementwise
    ff = jnp.dot(hdn.astype(jnp.bfloat16), w2t_ref[...],
                 preferred_element_type=jnp.float32) + b2_ref[...]

    o_ref[...] = x1 + ff                                        # residual


# ----------------------------------------------------------------------------
# Parameter-only glue: dense relative-position bias from the bias table.
# Stored as bf16 (it is only *added* to f32 scores in-kernel).
# ----------------------------------------------------------------------------
def relative_bias_from_table(table, ih, iw, heads, dtype=jnp.bfloat16):
    coords = np.stack(np.meshgrid(np.arange(ih), np.arange(iw), indexing="ij"))
    coords = coords.reshape(2, -1)                              # (2, N)
    rel = coords[:, :, None] - coords[:, None, :]               # (2, N, N)
    rel[0] += ih - 1
    rel[1] += iw - 1
    rel[0] *= 2 * iw - 1
    rel_index = rel.transpose(1, 2, 0).sum(-1).reshape(-1)      # (N*N,)
    bias = np.asarray(table)[rel_index]                         # (N*N, heads)
    n = ih * iw
    return jnp.asarray(bias.reshape(n, n, heads).transpose(2, 0, 1), dtype=dtype)


# ----------------------------------------------------------------------------
# Wrapper: NCHW <-> (B*N, C) plumbing, weight prep (transpose/scale/bf16),
# BlockSpecs, VMEM budget, pallas_call.
# ----------------------------------------------------------------------------
def transformer_forward(x_nchw, params, relb, *, heads, dim_head,
                        batch_block=None):
    B, C, H, W = x_nchw.shape
    N = H * W
    inner = heads * dim_head
    hidden = C * 4

    # Default: split the batch so the grid's "parallel" axis has >= 2 steps —
    # feeds both TensorCores on v7x and gives the software pipeline something
    # to overlap (grid=(1,) exposes the full input-slab DMA latency).
    if batch_block is None:
        batch_block = B // 2 if (B % 2 == 0 and B >= 2) else B
    bb = batch_block
    assert B % bb == 0, "batch_block must divide B"
    M = bb * N

    # Tokens: NCHW -> (B*N, C); batch folded into the GEMM M dimension.
    x2d = jnp.transpose(x_nchw, (0, 2, 3, 1)).reshape(B * N, C)

    # Weights: pre-transpose to (in, out), fold the attention scale into the Q
    # rows of Wqkv, and pre-cast to bf16 (MXU-native operands; halves the
    # weight HBM/VMEM footprint).  Biases stay f32 (added post-GEMM in f32).
    scale = dim_head ** -0.5
    wqkv_t = params["wqkv"].at[:inner].multiply(scale).T.astype(jnp.bfloat16)
    wo_t = params["wo"].T.astype(jnp.bfloat16)                  # (inner, C)
    w1_t = params["w1"].T.astype(jnp.bfloat16)                  # (C, hidden)
    w2_t = params["w2"].T.astype(jnp.bfloat16)                  # (hidden, C)
    relb = relb.astype(jnp.bfloat16)                            # (heads, N, N)

    ln1w = params["ln1_w"].reshape(1, C)
    ln1b = params["ln1_b"].reshape(1, C)
    bo = params["bo"].reshape(1, C)
    ln2w = params["ln2_w"].reshape(1, C)
    ln2b = params["ln2_b"].reshape(1, C)
    b1 = params["b1"].reshape(1, hidden)
    b2 = params["b2"].reshape(1, C)

    kernel = functools.partial(transformer_kernel, heads=heads,
                               dim_head=dim_head, n_tokens=N,
                               batch_per_block=bb)

    # Scoped-VMEM budget from the actual buffer footprint (+headroom), clamped
    # to v7x's 64 MiB physical VMEM; the 16/32 MiB defaults are the first
    # thing to fail at real CoAtNet widths.
    weight_b = 2 * (C * 3 * inner + inner * C + C * hidden + hidden * C)
    bias_b = 2 * heads * N * N + 4 * (5 * C + hidden)
    io_b = 4 * (2 * 2 * M * C)                       # x + out, double-buffered
    live_b = (4 * (M * 3 * inner + M * hidden + 4 * bb * N * N + 3 * M * C)
              + 2 * (M * 3 * inner + M * inner))     # f32 intermediates + scratch
    vmem_limit = int(2 * (weight_b + bias_b + io_b + live_b)) + (8 << 20)
    vmem_limit = max(32 << 20, min(vmem_limit, 64 << 20))

    rep2 = lambda i: (0, 0)
    rep3 = lambda i: (0, 0, 0)

    def build_and_run(single_buffer_consts):
        if single_buffer_consts:
            # Constant-index operands never get re-fetched across the grid:
            # a single VMEM buffer is enough (default double-buffering wastes
            # 2x VMEM on every weight / bias / bias-table).
            const2 = lambda s: pl.BlockSpec(s, rep2, pipeline_mode=pl.Buffered(1))
            const3 = lambda s: pl.BlockSpec(s, rep3, pipeline_mode=pl.Buffered(1))
        else:
            const2 = lambda s: pl.BlockSpec(s, rep2)
            const3 = lambda s: pl.BlockSpec(s, rep3)
        return pl.pallas_call(
            kernel,
            out_shape=jax.ShapeDtypeStruct((B * N, C), jnp.float32),
            grid=(B // bb,),
            in_specs=[
                pl.BlockSpec((M, C), lambda i: (i, 0)),         # x tokens
                const2((1, C)),                                 # ln1_w
                const2((1, C)),                                 # ln1_b
                const2((C, 3 * inner)),                         # Wqkv^T (bf16, Q pre-scaled)
                const3((heads, N, N)),                          # rel-pos bias (bf16)
                const2((inner, C)),                             # Wo^T (bf16)
                const2((1, C)),                                 # bo
                const2((1, C)),                                 # ln2_w
                const2((1, C)),                                 # ln2_b
                const2((C, hidden)),                            # W1^T (bf16)
                const2((1, hidden)),                            # b1
                const2((hidden, C)),                            # W2^T (bf16)
                const2((1, C)),                                 # b2
            ],
            out_specs=pl.BlockSpec((M, C), lambda i: (i, 0)),
            scratch_shapes=[
                pltpu.VMEM((M, 3 * inner), jnp.bfloat16),       # qkv (head slices)
                pltpu.VMEM((M, inner), jnp.bfloat16),           # ctx (lane-dense)
            ],
            compiler_params=pltpu.CompilerParams(
                dimension_semantics=("parallel",),
                vmem_limit_bytes=vmem_limit),
        )(x2d, ln1w, ln1b, wqkv_t, relb, wo_t, bo,
          ln2w, ln2b, w1_t, b1, w2_t, b2)

    try:
        out = build_and_run(True)
    except Exception:
        # This JAX build rejects pipeline_mode=pl.Buffered(1); fall back to the
        # default double-buffered specs (correctness unchanged).
        out = build_and_run(False)

    return jnp.transpose(out.reshape(B, H, W, C), (0, 3, 1, 2))  # NCHW


# ----------------------------------------------------------------------------
# Plain-JAX reference (PyTorch-faithful wiring) for a numerical sanity check.
# ----------------------------------------------------------------------------
def transformer_ref(x_nchw, params, relb, *, heads, dim_head):
    B, C, H, W = x_nchw.shape
    N = H * W
    inner = heads * dim_head
    x = jnp.transpose(x_nchw, (0, 2, 3, 1)).reshape(B, N, C)

    def ln(v, w, b):
        mu = v.mean(-1, keepdims=True)
        var = ((v - mu) ** 2).mean(-1, keepdims=True)
        return (v - mu) / jnp.sqrt(var + 1e-5) * w + b

    ln1 = ln(x, params["ln1_w"], params["ln1_b"])
    qkv = ln1 @ params["wqkv"].T
    q, k, v = jnp.split(qkv, 3, axis=-1)
    to_heads = lambda t: t.reshape(B, N, heads, dim_head).transpose(0, 2, 1, 3)
    q, k, v = map(to_heads, (q, k, v))
    dots = jnp.einsum("bhnd,bhmd->bhnm", q, k) * (dim_head ** -0.5)
    dots = dots + relb[None].astype(jnp.float32)
    attn = jax.nn.softmax(dots, axis=-1)
    out = jnp.einsum("bhnm,bhmd->bhnd", attn, v)
    out = out.transpose(0, 2, 1, 3).reshape(B, N, inner)
    out = out @ params["wo"].T + params["bo"]
    x1 = x + out
    ln2 = ln(x1, params["ln2_w"], params["ln2_b"])
    h1 = ln2 @ params["w1"].T + params["b1"]
    h1 = 0.5 * h1 * (1.0 + jax.lax.erf(h1 / jnp.sqrt(2.0)))
    x2 = x1 + h1 @ params["w2"].T + params["b2"]
    return jnp.transpose(x2.reshape(B, H, W, C), (0, 3, 1, 2))


if __name__ == "__main__":
    # Small shapes consistent with Transformer(inp=oup=32, image_size=(8, 8)).
    B, C, H, W = 2, 32, 8, 8
    heads, dim_head = 4, 8
    inner = heads * dim_head
    hidden = C * 4

    key = jax.random.PRNGKey(0)
    ks = jax.random.split(key, 9)

    params = {
        "ln1_w": jnp.ones((C,), jnp.float32),
        "ln1_b": jnp.zeros((C,), jnp.float32),
        "wqkv": 0.05 * jax.random.normal(ks[0], (3 * inner, C), jnp.float32),
        # PyTorch zero-inits relative_bias_table; use small random values so
        # the bias path is actually exercised.
        "rel_table": 0.02 * jax.random.normal(
            ks[1], ((2 * H - 1) * (2 * W - 1), heads), jnp.float32),
        "wo": 0.05 * jax.random.normal(ks[2], (C, inner), jnp.float32),
        "bo": 0.01 * jax.random.normal(ks[3], (C,), jnp.float32),
        "ln2_w": jnp.ones((C,), jnp.float32),
        "ln2_b": jnp.zeros((C,), jnp.float32),
        "w1": 0.05 * jax.random.normal(ks[4], (hidden, C), jnp.float32),
        "b1": 0.01 * jax.random.normal(ks[5], (hidden,), jnp.float32),
        "w2": 0.05 * jax.random.normal(ks[6], (C, hidden), jnp.float32),
        "b2": 0.01 * jax.random.normal(ks[7], (C,), jnp.float32),
    }

    x = jax.random.normal(ks[8], (B, C, H, W), jnp.float32)

    relb = relative_bias_from_table(params["rel_table"], H, W, heads)

    out = transformer_forward(x, params, relb, heads=heads, dim_head=dim_head)
    out = jax.block_until_ready(out)

    ref = transformer_ref(x, params, relb, heads=heads, dim_head=dim_head)
    assert out.shape == (B, C, H, W)
    # Tolerance covers bf16 MXU operands, the bf16-rounded relative bias and
    # the approx-reciprocal softmax normalization (all well below 1e-2 here).
    assert np.allclose(np.asarray(out), np.asarray(ref), rtol=1e-2, atol=1e-2), \
        "Pallas kernel output does not match reference"

    # TODO(synk): downsample=True branch (MaxPool2d + 1x1 Conv2d proj) not
    # implemented; the default downsample=False path is covered.
    print("KERNEL_OK")
</pallas_src>

<mosaic_0001>
module attributes {stable_mosaic.version = 11 : i64} {
  func.func @transformer_kernel(%arg0: i32, %arg1: memref<64x32xf32, #tpu.memory_space<vmem>>, %arg2: memref<1x32xf32, #tpu.memory_space<vmem>>, %arg3: memref<1x32xf32, #tpu.memory_space<vmem>>, %arg4: memref<32x96xbf16, #tpu.memory_space<vmem>>, %arg5: memref<4x64x64xbf16, #tpu.memory_space<vmem>>, %arg6: memref<32x32xbf16, #tpu.memory_space<vmem>>, %arg7: memref<1x32xf32, #tpu.memory_space<vmem>>, %arg8: memref<1x32xf32, #tpu.memory_space<vmem>>, %arg9: memref<1x32xf32, #tpu.memory_space<vmem>>, %arg10: memref<32x128xbf16, #tpu.memory_space<vmem>>, %arg11: memref<1x128xf32, #tpu.memory_space<vmem>>, %arg12: memref<128x32xbf16, #tpu.memory_space<vmem>>, %arg13: memref<1x32xf32, #tpu.memory_space<vmem>>, %arg14: memref<64x32xf32, #tpu.memory_space<vmem>>, %arg15: memref<64x96xbf16, #tpu.memory_space<vmem>>, %arg16: memref<64x32xbf16, #tpu.memory_space<vmem>>) attributes {dimension_semantics = [#tpu.dimension_semantics<parallel>], iteration_bounds = array<i64: 2>, scalar_prefetch = 0 : i64, scratch_operands = 2 : i64, tpu.core_type = #tpu.core_type<tc>, window_params = [{transform_indices = @transform_0, window_bounds = array<i64: 64, 32>}, {pipeline_mode = #tpu.pipeline_mode<synchronous>, transform_indices = @transform_1, window_bounds = array<i64: 1, 32>}, {pipeline_mode = #tpu.pipeline_mode<synchronous>, transform_indices = @transform_2, window_bounds = array<i64: 1, 32>}, {pipeline_mode = #tpu.pipeline_mode<synchronous>, transform_indices = @transform_3, window_bounds = array<i64: 32, 96>}, {pipeline_mode = #tpu.pipeline_mode<synchronous>, transform_indices = @transform_4, window_bounds = array<i64: 4, 64, 64>}, {pipeline_mode = #tpu.pipeline_mode<synchronous>, transform_indices = @transform_5, window_bounds = array<i64: 32, 32>}, {pipeline_mode = #tpu.pipeline_mode<synchronous>, transform_indices = @transform_6, window_bounds = array<i64: 1, 32>}, {pipeline_mode = #tpu.pipeline_mode<synchronous>, transform_indices = @transform_7, window_bounds = array<i64: 1, 32>}, {pipeline_mode = #tpu.pipeline_mode<synchronous>, transform_indices = @transform_8, window_bounds = array<i64: 1, 32>}, {pipeline_mode = #tpu.pipeline_mode<synchronous>, transform_indices = @transform_9, window_bounds = array<i64: 32, 128>}, {pipeline_mode = #tpu.pipeline_mode<synchronous>, transform_indices = @transform_10, window_bounds = array<i64: 1, 128>}, {pipeline_mode = #tpu.pipeline_mode<synchronous>, transform_indices = @transform_11, window_bounds = array<i64: 128, 32>}, {pipeline_mode = #tpu.pipeline_mode<synchronous>, transform_indices = @transform_12, window_bounds = array<i64: 1, 32>}, {transform_indices = @transform_13, window_bounds = array<i64: 64, 32>}]} {
    %c0 = arith.constant 0 : index
    %c0_0 = arith.constant 0 : index
    %0 = vector.load %arg1[%c0, %c0_0] : memref<64x32xf32, #tpu.memory_space<vmem>>, vector<64x32xf32>
    %c0_1 = arith.constant 0 : index
    %c0_2 = arith.constant 0 : index
    %1 = vector.load %arg2[%c0_1, %c0_2] : memref<1x32xf32, #tpu.memory_space<vmem>>, vector<1x32xf32>
    %c0_3 = arith.constant 0 : index
    %c0_4 = arith.constant 0 : index
    %2 = vector.load %arg3[%c0_3, %c0_4] : memref<1x32xf32, #tpu.memory_space<vmem>>, vector<1x32xf32>
    %cst = arith.constant dense<0.000000e+00> : vector<64xf32>
    %3 = vector.multi_reduction <add>, %0, %cst [1] : vector<64x32xf32> to vector<64xf32>
    %4 = vector.shape_cast %3 : vector<64xf32> to vector<64x1xf32>
    %cst_5 = arith.constant 3.200000e+01 : f32
    %5 = vector.broadcast %cst_5 : f32 to vector<64x1xf32>
    %6 = arith.divf %4, %5 : vector<64x1xf32>
    %7 = vector.broadcast %6 : vector<64x1xf32> to vector<64x32xf32>
    %8 = arith.subf %0, %7 : vector<64x32xf32>
    %9 = arith.mulf %8, %8 : vector<64x32xf32>
    %cst_6 = arith.constant dense<0.000000e+00> : vector<64xf32>
    %10 = vector.multi_reduction <add>, %9, %cst_6 [1] : vector<64x32xf32> to vector<64xf32>
    %11 = vector.shape_cast %10 : vector<64xf32> to vector<64x1xf32>
    %cst_7 = arith.constant 3.200000e+01 : f32
    %12 = vector.broadcast %cst_7 : f32 to vector<64x1xf32>
    %13 = arith.divf %11, %12 : vector<64x1xf32>
    %14 = vector.broadcast %6 : vector<64x1xf32> to vector<64x32xf32>
    %15 = arith.subf %0, %14 : vector<64x32xf32>
    %cst_8 = arith.constant 9.99999974E-6 : f32
    %16 = vector.broadcast %cst_8 : f32 to vector<64x1xf32>
    %17 = arith.addf %13, %16 : vector<64x1xf32>
    %18 = math.rsqrt %17 : vector<64x1xf32>
    %19 = vector.broadcast %18 : vector<64x1xf32> to vector<64x32xf32>
    %20 = arith.mulf %15, %19 : vector<64x32xf32>
    %21 = vector.broadcast %1 : vector<1x32xf32> to vector<64x32xf32>
    %22 = arith.mulf %20, %21 : vector<64x32xf32>
    %23 = vector.broadcast %2 : vector<1x32xf32> to vector<64x32xf32>
    %24 = arith.addf %22, %23 : vector<64x32xf32>
    %25 = arith.truncf %24 : vector<64x32xf32> to vector<64x32xbf16>
    %c0_9 = arith.constant 0 : index
    %c0_10 = arith.constant 0 : index
    %26 = vector.load %arg4[%c0_9, %c0_10] : memref<32x96xbf16, #tpu.memory_space<vmem>>, vector<32x96xbf16>
    %cst_11 = arith.constant dense<0.000000e+00> : vector<64x96xf32>
    %27 = tpu.matmul %25, %26, %cst_11 {dimension_numbers = #tpu.dot_dimension_numbers<[1], [0], [0], [1], [0, 0, 1, 1], [], []>} : vector<64x32xbf16>, vector<32x96xbf16>, vector<64x96xf32> -> vector<64x96xf32>
    %28 = arith.truncf %27 : vector<64x96xf32> to vector<64x96xbf16>
    %c0_12 = arith.constant 0 : index
    %c0_13 = arith.constant 0 : index
    %29 = vector.load %arg15[%c0_12, %c0_13] : memref<64x96xbf16, #tpu.memory_space<vmem>>, vector<64x96xbf16>
    tpu.vector_store %arg15[%c0_12, %c0_13], %28 {strides = array<i32>} : memref<64x96xbf16, #tpu.memory_space<vmem>>, vector<64x96xbf16>,
    %c0_14 = arith.constant 0 : index
    %c0_15 = arith.constant 0 : index
    %30 = vector.load %arg15[%c0_14, %c0_15] : memref<64x96xbf16, #tpu.memory_space<vmem>>, vector<64x8xbf16>
    %31 = vector.shape_cast %30 : vector<64x8xbf16> to vector<1x64x8xbf16>
    %c0_16 = arith.constant 0 : index
    %c32 = arith.constant 32 : index
    %32 = vector.load %arg15[%c0_16, %c32] : memref<64x96xbf16, #tpu.memory_space<vmem>>, vector<64x8xbf16>
    %33 = vector.shape_cast %32 : vector<64x8xbf16> to vector<1x64x8xbf16>
    %c0_17 = arith.constant 0 : index
    %c64 = arith.constant 64 : index
    %34 = vector.load %arg15[%c0_17, %c64] : memref<64x96xbf16, #tpu.memory_space<vmem>>, vector<64x8xbf16>
    %35 = vector.shape_cast %34 : vector<64x8xbf16> to vector<1x64x8xbf16>
    "tpu.trace_start"() <{level = 10 : i32, message = "bnd,bmd->bnm"}> : () -> ()
    %cst_18 = arith.constant dense<0.000000e+00> : vector<1x64x64xf32>
    %36 = tpu.matmul %31, %33, %cst_18 {dimension_numbers = #tpu.dot_dimension_numbers<[2], [2], [1], [1], [0, 0, 0, 1, 1, 1], [0], [0]>} : vector<1x64x8xbf16>, vector<1x64x8xbf16>, vector<1x64x64xf32> -> vector<1x64x64xf32>
    "tpu.trace_stop"() : () -> ()
    %c0_19 = arith.constant 0 : index
    %c0_20 = arith.constant 0 : index
    %c0_21 = arith.constant 0 : index
    %37 = vector.load %arg5[%c0_19, %c0_20, %c0_21] : memref<4x64x64xbf16, #tpu.memory_space<vmem>>, vector<1x64x64xbf16>
    %38 = vector.shape_cast %37 : vector<1x64x64xbf16> to vector<64x64xbf16>
    %39 = arith.extf %38 : vector<64x64xbf16> to vector<64x64xf32>
    %40 = vector.shape_cast %39 : vector<64x64xf32> to vector<1x64x64xf32>
    %41 = arith.addf %36, %40 : vector<1x64x64xf32>
    %cst_22 = arith.constant dense<0xFF800000> : vector<1x64xf32>
    %42 = vector.multi_reduction <maximumf>, %41, %cst_22 [2] : vector<1x64x64xf32> to vector<1x64xf32>
    %43 = vector.shape_cast %42 : vector<1x64xf32> to vector<1x64x1xf32>
    %44 = vector.broadcast %43 : vector<1x64x1xf32> to vector<1x64x64xf32>
    %45 = arith.subf %41, %44 : vector<1x64x64xf32>
    %46 = math.exp %45 : vector<1x64x64xf32>
    %cst_23 = arith.constant dense<0.000000e+00> : vector<1x64xf32>
    %47 = vector.multi_reduction <add>, %46, %cst_23 [2] : vector<1x64x64xf32> to vector<1x64xf32>
    %48 = vector.shape_cast %47 : vector<1x64xf32> to vector<1x64x1xf32>
    %49 = tpu.reciprocal %48 {approx = true} : vector<1x64x1xf32> -> vector<1x64x1xf32>
    %50 = vector.broadcast %49 : vector<1x64x1xf32> to vector<1x64x64xf32>
    %51 = arith.mulf %46, %50 : vector<1x64x64xf32>
    %52 = arith.truncf %51 : vector<1x64x64xf32> to vector<1x64x64xbf16>
    "tpu.trace_start"() <{level = 10 : i32, message = "bnm,bmd->bnd"}> : () -> ()
    %cst_24 = arith.constant dense<0.000000e+00> : vector<1x64x8xf32>
    %53 = tpu.matmul %52, %35, %cst_24 {dimension_numbers = #tpu.dot_dimension_numbers<[2], [1], [1], [2], [0, 0, 0, 1, 1, 2], [0], [0]>} : vector<1x64x64xbf16>, vector<1x64x8xbf16>, vector<1x64x8xf32> -> vector<1x64x8xf32>
    "tpu.trace_stop"() : () -> ()
    %54 = vector.shape_cast %53 : vector<1x64x8xf32> to vector<64x8xf32>
    %55 = arith.truncf %54 : vector<64x8xf32> to vector<64x8xbf16>
    %c0_25 = arith.constant 0 : index
    %c0_26 = arith.constant 0 : index
    %56 = vector.load %arg16[%c0_25, %c0_26] : memref<64x32xbf16, #tpu.memory_space<vmem>>, vector<64x8xbf16>
    tpu.vector_store %arg16[%c0_25, %c0_26], %55 {strides = array<i32>} : memref<64x32xbf16, #tpu.memory_space<vmem>>, vector<64x8xbf16>,
    %c0_27 = arith.constant 0 : index
    %c8 = arith.constant 8 : index
    %57 = vector.load %arg15[%c0_27, %c8] : memref<64x96xbf16, #tpu.memory_space<vmem>>, vector<64x8xbf16>
    %58 = vector.shape_cast %57 : vector<64x8xbf16> to vector<1x64x8xbf16>
    %c0_28 = arith.constant 0 : index
    %c40 = arith.constant 40 : index
    %59 = vector.load %arg15[%c0_28, %c40] : memref<64x96xbf16, #tpu.memory_space<vmem>>, vector<64x8xbf16>
    %60 = vector.shape_cast %59 : vector<64x8xbf16> to vector<1x64x8xbf16>
    %c0_29 = arith.constant 0 : index
    %c72 = arith.constant 72 : index
    %61 = vector.load %arg15[%c0_29, %c72] : memref<64x96xbf16, #tpu.memory_space<vmem>>, vector<64x8xbf16>
    %62 = vector.shape_cast %61 : vector<64x8xbf16> to vector<1x64x8xbf16>
    "tpu.trace_start"() <{level = 10 : i32, message = "bnd,bmd->bnm"}> : () -> ()
    %cst_30 = arith.constant dense<0.000000e+00> : vector<1x64x64xf32>
    %63 = tpu.matmul %58, %60, %cst_30 {dimension_numbers = #tpu.dot_dimension_numbers<[2], [2], [1], [1], [0, 0, 0, 1, 1, 1], [0], [0]>} : vector<1x64x8xbf16>, vector<1x64x8xbf16>, vector<1x64x64xf32> -> vector<1x64x64xf32>
    "tpu.trace_stop"() : () -> ()
    %c1 = arith.constant 1 : index
    %c0_31 = arith.constant 0 : index
    %c0_32 = arith.constant 0 : index
    %64 = vector.load %arg5[%c1, %c0_31, %c0_32] : memref<4x64x64xbf16, #tpu.memory_space<vmem>>, vector<1x64x64xbf16>
    %65 = vector.shape_cast %64 : vector<1x64x64xbf16> to vector<64x64xbf16>
    %66 = arith.extf %65 : vector<64x64xbf16> to vector<64x64xf32>
    %67 = vector.shape_cast %66 : vector<64x64xf32> to vector<1x64x64xf32>
    %68 = arith.addf %63, %67 : vector<1x64x64xf32>
    %cst_33 = arith.constant dense<0xFF800000> : vector<1x64xf32>
    %69 = vector.multi_reduction <maximumf>, %68, %cst_33 [2] : vector<1x64x64xf32> to vector<1x64xf32>
    %70 = vector.shape_cast %69 : vector<1x64xf32> to vector<1x64x1xf32>
    %71 = vector.broadcast %70 : vector<1x64x1xf32> to vector<1x64x64xf32>
    %72 = arith.subf %68, %71 : vector<1x64x64xf32>
    %73 = math.exp %72 : vector<1x64x64xf32>
    %cst_34 = arith.constant dense<0.000000e+00> : vector<1x64xf32>
    %74 = vector.multi_reduction <add>, %73, %cst_34 [2] : vector<1x64x64xf32> to vector<1x64xf32>
    %75 = vector.shape_cast %74 : vector<1x64xf32> to vector<1x64x1xf32>
    %76 = tpu.reciprocal %75 {approx = true} : vector<1x64x1xf32> -> vector<1x64x1xf32>
    %77 = vector.broadcast %76 : vector<1x64x1xf32> to vector<1x64x64xf32>
    %78 = arith.mulf %73, %77 : vector<1x64x64xf32>
    %79 = arith.truncf %78 : vector<1x64x64xf32> to vector<1x64x64xbf16>
    "tpu.trace_start"() <{level = 10 : i32, message = "bnm,bmd->bnd"}> : () -> ()
    %cst_35 = arith.constant dense<0.000000e+00> : vector<1x64x8xf32>
    %80 = tpu.matmul %79, %62, %cst_35 {dimension_numbers = #tpu.dot_dimension_numbers<[2], [1], [1], [2], [0, 0, 0, 1, 1, 2], [0], [0]>} : vector<1x64x64xbf16>, vector<1x64x8xbf16>, vector<1x64x8xf32> -> vector<1x64x8xf32>
    "tpu.trace_stop"() : () -> ()
    %81 = vector.shape_cast %80 : vector<1x64x8xf32> to vector<64x8xf32>
    %82 = arith.truncf %81 : vector<64x8xf32> to vector<64x8xbf16>
    %c0_36 = arith.constant 0 : index
    %c8_37 = arith.constant 8 : index
    %83 = vector.load %arg16[%c0_36, %c8_37] : memref<64x32xbf16, #tpu.memory_space<vmem>>, vector<64x8xbf16>
    tpu.vector_store %arg16[%c0_36, %c8_37], %82 {strides = array<i32>} : memref<64x32xbf16, #tpu.memory_space<vmem>>, vector<64x8xbf16>,
    %c0_38 = arith.constant 0 : index
    %c16 = arith.constant 16 : index
    %84 = vector.load %arg15[%c0_38, %c16] : memref<64x96xbf16, #tpu.memory_space<vmem>>, vector<64x8xbf16>
    %85 = vector.shape_cast %84 : vector<64x8xbf16> to vector<1x64x8xbf16>
    %c0_39 = arith.constant 0 : index
    %c48 = arith.constant 48 : index
    %86 = vector.load %arg15[%c0_39, %c48] : memref<64x96xbf16, #tpu.memory_space<vmem>>, vector<64x8xbf16>
    %87 = vector.shape_cast %86 : vector<64x8xbf16> to vector<1x64x8xbf16>
    %c0_40 = arith.constant 0 : index
    %c80 = arith.constant 80 : index
    %88 = vector.load %arg15[%c0_40, %c80] : memref<64x96xbf16, #tpu.memory_space<vmem>>, vector<64x8xbf16>
    %89 = vector.shape_cast %88 : vector<64x8xbf16> to vector<1x64x8xbf16>
    "tpu.trace_start"() <{level = 10 : i32, message = "bnd,bmd->bnm"}> : () -> ()
    %cst_41 = arith.constant dense<0.000000e+00> : vector<1x64x64xf32>
    %90 = tpu.matmul %85, %87, %cst_41 {dimension_numbers = #tpu.dot_dimension_numbers<[2], [2], [1], [1], [0, 0, 0, 1, 1, 1], [0], [0]>} : vector<1x64x8xbf16>, vector<1x64x8xbf16>, vector<1x64x64xf32> -> vector<1x64x64xf32>
    "tpu.trace_stop"() : () -> ()
    %c2 = arith.constant 2 : index
    %c0_42 = arith.constant 0 : index
    %c0_43 = arith.constant 0 : index
    %91 = vector.load %arg5[%c2, %c0_42, %c0_43] : memref<4x64x64xbf16, #tpu.memory_space<vmem>>, vector<1x64x64xbf16>
    %92 = vector.shape_cast %91 : vector<1x64x64xbf16> to vector<64x64xbf16>
    %93 = arith.extf %92 : vector<64x64xbf16> to vector<64x64xf32>
    %94 = vector.shape_cast %93 : vector<64x64xf32> to vector<1x64x64xf32>
    %95 = arith.addf %90, %94 : vector<1x64x64xf32>
    %cst_44 = arith.constant dense<0xFF800000> : vector<1x64xf32>
    %96 = vector.multi_reduction <maximumf>, %95, %cst_44 [2] : vector<1x64x64xf32> to vector<1x64xf32>
    %97 = vector.shape_cast %96 : vector<1x64xf32> to vector<1x64x1xf32>
    %98 = vector.broadcast %97 : vector<1x64x1xf32> to vector<1x64x64xf32>
    %99 = arith.subf %95, %98 : vector<1x64x64xf32>
    %100 = math.exp %99 : vector<1x64x64xf32>
    %cst_45 = arith.constant dense<0.000000e+00> : vector<1x64xf32>
    %101 = vector.multi_reduction <add>, %100, %cst_45 [2] : vector<1x64x64xf32> to vector<1x64xf32>
    %102 = vector.shape_cast %101 : vector<1x64xf32> to vector<1x64x1xf32>
    %103 = tpu.reciprocal %102 {approx = true} : vector<1x64x1xf32> -> vector<1x64x1xf32>
    %104 = vector.broadcast %103 : vector<1x64x1xf32> to vector<1x64x64xf32>
    %105 = arith.mulf %100, %104 : vector<1x64x64xf32>
    %106 = arith.truncf %105 : vector<1x64x64xf32> to vector<1x64x64xbf16>
    "tpu.trace_start"() <{level = 10 : i32, message = "bnm,bmd->bnd"}> : () -> ()
    %cst_46 = arith.constant dense<0.000000e+00> : vector<1x64x8xf32>
    %107 = tpu.matmul %106, %89, %cst_46 {dimension_numbers = #tpu.dot_dimension_numbers<[2], [1], [1], [2], [0, 0, 0, 1, 1, 2], [0], [0]>} : vector<1x64x64xbf16>, vector<1x64x8xbf16>, vector<1x64x8xf32> -> vector<1x64x8xf32>
    "tpu.trace_stop"() : () -> ()
    %108 = vector.shape_cast %107 : vector<1x64x8xf32> to vector<64x8xf32>
    %109 = arith.truncf %108 : vector<64x8xf32> to vector<64x8xbf16>
    %c0_47 = arith.constant 0 : index
    %c16_48 = arith.constant 16 : index
    %110 = vector.load %arg16[%c0_47, %c16_48] : memref<64x32xbf16, #tpu.memory_space<vmem>>, vector<64x8xbf16>
    tpu.vector_store %arg16[%c0_47, %c16_48], %109 {strides = array<i32>} : memref<64x32xbf16, #tpu.memory_space<vmem>>, vector<64x8xbf16>,
    %c0_49 = arith.constant 0 : index
    %c24 = arith.constant 24 : index
    %111 = vector.load %arg15[%c0_49, %c24] : memref<64x96xbf16, #tpu.memory_space<vmem>>, vector<64x8xbf16>
    %112 = vector.shape_cast %111 : vector<64x8xbf16> to vector<1x64x8xbf16>
    %c0_50 = arith.constant 0 : index
    %c56 = arith.constant 56 : index
    %113 = vector.load %arg15[%c0_50, %c56] : memref<64x96xbf16, #tpu.memory_space<vmem>>, vector<64x8xbf16>
    %114 = vector.shape_cast %113 : vector<64x8xbf16> to vector<1x64x8xbf16>
    %c0_51 = arith.constant 0 : index
    %c88 = arith.constant 88 : index
    %115 = vector.load %arg15[%c0_51, %c88] : memref<64x96xbf16, #tpu.memory_space<vmem>>, vector<64x8xbf16>
    %116 = vector.shape_cast %115 : vector<64x8xbf16> to vector<1x64x8xbf16>
    "tpu.trace_start"() <{level = 10 : i32, message = "bnd,bmd->bnm"}> : () -> ()
    %cst_52 = arith.constant dense<0.000000e+00> : vector<1x64x64xf32>
    %117 = tpu.matmul %112, %114, %cst_52 {dimension_numbers = #tpu.dot_dimension_numbers<[2], [2], [1], [1], [0, 0, 0, 1, 1, 1], [0], [0]>} : vector<1x64x8xbf16>, vector<1x64x8xbf16>, vector<1x64x64xf32> -> vector<1x64x64xf32>
    "tpu.trace_stop"() : () -> ()
    %c3 = arith.constant 3 : index
    %c0_53 = arith.constant 0 : index
    %c0_54 = arith.constant 0 : index
    %118 = vector.load %arg5[%c3, %c0_53, %c0_54] : memref<4x64x64xbf16, #tpu.memory_space<vmem>>, vector<1x64x64xbf16>
    %119 = vector.shape_cast %118 : vector<1x64x64xbf16> to vector<64x64xbf16>
    %120 = arith.extf %119 : vector<64x64xbf16> to vector<64x64xf32>
    %121 = vector.shape_cast %120 : vector<64x64xf32> to vector<1x64x64xf32>
    %122 = arith.addf %117, %121 : vector<1x64x64xf32>
    %cst_55 = arith.constant dense<0xFF800000> : vector<1x64xf32>
    %123 = vector.multi_reduction <maximumf>, %122, %cst_55 [2] : vector<1x64x64xf32> to vector<1x64xf32>
    %124 = vector.shape_cast %123 : vector<1x64xf32> to vector<1x64x1xf32>
    %125 = vector.broadcast %124 : vector<1x64x1xf32> to vector<1x64x64xf32>
    %126 = arith.subf %122, %125 : vector<1x64x64xf32>
    %127 = math.exp %126 : vector<1x64x64xf32>
    %cst_56 = arith.constant dense<0.000000e+00> : vector<1x64xf32>
    %128 = vector.multi_reduction <add>, %127, %cst_56 [2] : vector<1x64x64xf32> to vector<1x64xf32>
    %129 = vector.shape_cast %128 : vector<1x64xf32> to vector<1x64x1xf32>
    %130 = tpu.reciprocal %129 {approx = true} : vector<1x64x1xf32> -> vector<1x64x1xf32>
    %131 = vector.broadcast %130 : vector<1x64x1xf32> to vector<1x64x64xf32>
    %132 = arith.mulf %127, %131 : vector<1x64x64xf32>
    %133 = arith.truncf %132 : vector<1x64x64xf32> to vector<1x64x64xbf16>
    "tpu.trace_start"() <{level = 10 : i32, message = "bnm,bmd->bnd"}> : () -> ()
    %cst_57 = arith.constant dense<0.000000e+00> : vector<1x64x8xf32>
    %134 = tpu.matmul %133, %116, %cst_57 {dimension_numbers = #tpu.dot_dimension_numbers<[2], [1], [1], [2], [0, 0, 0, 1, 1, 2], [0], [0]>} : vector<1x64x64xbf16>, vector<1x64x8xbf16>, vector<1x64x8xf32> -> vector<1x64x8xf32>
    "tpu.trace_stop"() : () -> ()
    %135 = vector.shape_cast %134 : vector<1x64x8xf32> to vector<64x8xf32>
    %136 = arith.truncf %135 : vector<64x8xf32> to vector<64x8xbf16>
    %c0_58 = arith.constant 0 : index
    %c24_59 = arith.constant 24 : index
    %137 = vector.load %arg16[%c0_58, %c24_59] : memref<64x32xbf16, #tpu.memory_space<vmem>>, vector<64x8xbf16>
    tpu.vector_store %arg16[%c0_58, %c24_59], %136 {strides = array<i32>} : memref<64x32xbf16, #tpu.memory_space<vmem>>, vector<64x8xbf16>,
    %c0_60 = arith.constant 0 : index
    %c0_61 = arith.constant 0 : index
    %138 = vector.load %arg16[%c0_60, %c0_61] : memref<64x32xbf16, #tpu.memory_space<vmem>>, vector<64x32xbf16>
    %c0_62 = arith.constant 0 : index
    %c0_63 = arith.constant 0 : index
    %139 = vector.load %arg6[%c0_62, %c0_63] : memref<32x32xbf16, #tpu.memory_space<vmem>>, vector<32x32xbf16>
    %cst_64 = arith.constant dense<0.000000e+00> : vector<64x32xf32>
    %140 = tpu.matmul %138, %139, %cst_64 {dimension_numbers = #tpu.dot_dimension_numbers<[1], [0], [0], [1], [0, 0, 1, 1], [], []>} : vector<64x32xbf16>, vector<32x32xbf16>, vector<64x32xf32> -> vector<64x32xf32>
    %c0_65 = arith.constant 0 : index
    %c0_66 = arith.constant 0 : index
    %141 = vector.load %arg7[%c0_65, %c0_66] : memref<1x32xf32, #tpu.memory_space<vmem>>, vector<1x32xf32>
    %142 = vector.broadcast %141 : vector<1x32xf32> to vector<64x32xf32>
    %143 = arith.addf %140, %142 : vector<64x32xf32>
    %144 = arith.addf %0, %143 : vector<64x32xf32>
    %c0_67 = arith.constant 0 : index
    %c0_68 = arith.constant 0 : index
    %145 = vector.load %arg8[%c0_67, %c0_68] : memref<1x32xf32, #tpu.memory_space<vmem>>, vector<1x32xf32>
    %c0_69 = arith.constant 0 : index
    %c0_70 = arith.constant 0 : index
    %146 = vector.load %arg9[%c0_69, %c0_70] : memref<1x32xf32, #tpu.memory_space<vmem>>, vector<1x32xf32>
    %cst_71 = arith.constant dense<0.000000e+00> : vector<64xf32>
    %147 = vector.multi_reduction <add>, %144, %cst_71 [1] : vector<64x32xf32> to vector<64xf32>
    %148 = vector.shape_cast %147 : vector<64xf32> to vector<64x1xf32>
    %cst_72 = arith.constant 3.200000e+01 : f32
    %149 = vector.broadcast %cst_72 : f32 to vector<64x1xf32>
    %150 = arith.divf %148, %149 : vector<64x1xf32>
    %151 = vector.broadcast %150 : vector<64x1xf32> to vector<64x32xf32>
    %152 = arith.subf %144, %151 : vector<64x32xf32>
    %153 = arith.mulf %152, %152 : vector<64x32xf32>
    %cst_73 = arith.constant dense<0.000000e+00> : vector<64xf32>
    %154 = vector.multi_reduction <add>, %153, %cst_73 [1] : vector<64x32xf32> to vector<64xf32>
    %155 = vector.shape_cast %154 : vector<64xf32> to vector<64x1xf32>
    %cst_74 = arith.constant 3.200000e+01 : f32
    %156 = vector.broadcast %cst_74 : f32 to vector<64x1xf32>
    %157 = arith.divf %155, %156 : vector<64x1xf32>
    %158 = vector.broadcast %150 : vector<64x1xf32> to vector<64x32xf32>
    %159 = arith.subf %144, %158 : vector<64x32xf32>
    %cst_75 = arith.constant 9.99999974E-6 : f32
    %160 = vector.broadcast %cst_75 : f32 to vector<64x1xf32>
    %161 = arith.addf %157, %160 : vector<64x1xf32>
    %162 = math.rsqrt %161 : vector<64x1xf32>
    %163 = vector.broadcast %162 : vector<64x1xf32> to vector<64x32xf32>
    %164 = arith.mulf %159, %163 : vector<64x32xf32>
    %165 = vector.broadcast %145 : vector<1x32xf32> to vector<64x32xf32>
    %166 = arith.mulf %164, %165 : vector<64x32xf32>
    %167 = vector.broadcast %146 : vector<1x32xf32> to vector<64x32xf32>
    %168 = arith.addf %166, %167 : vector<64x32xf32>
    %169 = arith.truncf %168 : vector<64x32xf32> to vector<64x32xbf16>
    %c0_76 = arith.constant 0 : index
    %c0_77 = arith.constant 0 : index
    %170 = vector.load %arg10[%c0_76, %c0_77] : memref<32x128xbf16, #tpu.memory_space<vmem>>, vector<32x128xbf16>
    %cst_78 = arith.constant dense<0.000000e+00> : vector<64x128xf32>
    %171 = tpu.matmul %169, %170, %cst_78 {dimension_numbers = #tpu.dot_dimension_numbers<[1], [0], [0], [1], [0, 0, 1, 1], [], []>} : vector<64x32xbf16>, vector<32x128xbf16>, vector<64x128xf32> -> vector<64x128xf32>
    %c0_79 = arith.constant 0 : index
    %c0_80 = arith.constant 0 : index
    %172 = vector.load %arg11[%c0_79, %c0_80] : memref<1x128xf32, #tpu.memory_space<vmem>>, vector<1x128xf32>
    %173 = vector.broadcast %172 : vector<1x128xf32> to vector<64x128xf32>
    %174 = arith.addf %171, %173 : vector<64x128xf32>
    %cst_81 = arith.constant 0.707106769 : f32
    %175 = vector.broadcast %cst_81 : f32 to vector<64x128xf32>
    %176 = arith.mulf %174, %175 : vector<64x128xf32>
    %177 = math.absf %176 : vector<64x128xf32>
    %cst_82 = arith.constant 0.327591091 : f32
    %178 = vector.broadcast %cst_82 : f32 to vector<64x128xf32>
    %179 = arith.mulf %178, %177 : vector<64x128xf32>
    %cst_83 = arith.constant 1.000000e+00 : f32
    %180 = vector.broadcast %cst_83 : f32 to vector<64x128xf32>
    %181 = arith.addf %180, %179 : vector<64x128xf32>
    %cst_84 = arith.constant 1.000000e+00 : f32
    %182 = vector.broadcast %cst_84 : f32 to vector<64x128xf32>
    %183 = arith.divf %182, %181 : vector<64x128xf32>
    %cst_85 = arith.constant 1.06140542 : f32
    %184 = vector.broadcast %cst_85 : f32 to vector<64x128xf32>
    %185 = arith.mulf %184, %183 : vector<64x128xf32>
    %cst_86 = arith.constant 1.45315206 : f32
    %186 = vector.broadcast %cst_86 : f32 to vector<64x128xf32>
    %187 = arith.subf %185, %186 : vector<64x128xf32>
    %188 = arith.mulf %187, %183 : vector<64x128xf32>
    %cst_87 = arith.constant 1.42141378 : f32
    %189 = vector.broadcast %cst_87 : f32 to vector<64x128xf32>
    %190 = arith.addf %188, %189 : vector<64x128xf32>
    %191 = arith.mulf %190, %183 : vector<64x128xf32>
    %cst_88 = arith.constant 0.284496725 : f32
    %192 = vector.broadcast %cst_88 : f32 to vector<64x128xf32>
    %193 = arith.subf %191, %192 : vector<64x128xf32>
    %194 = arith.mulf %193, %183 : vector<64x128xf32>
    %cst_89 = arith.constant 0.254829586 : f32
    %195 = vector.broadcast %cst_89 : f32 to vector<64x128xf32>
    %196 = arith.addf %194, %195 : vector<64x128xf32>
    %197 = arith.mulf %196, %183 : vector<64x128xf32>
    %cst_90 = arith.constant 0.000000e+00 : f32
    %198 = vector.broadcast %cst_90 : f32 to vector<64x128xf32>
    %199 = arith.subf %198, %177 : vector<64x128xf32>
    %200 = arith.mulf %199, %177 : vector<64x128xf32>
    %201 = math.exp %200 : vector<64x128xf32>
    %202 = arith.mulf %197, %201 : vector<64x128xf32>
    %cst_91 = arith.constant 1.000000e+00 : f32
    %203 = vector.broadcast %cst_91 : f32 to vector<64x128xf32>
    %204 = arith.subf %203, %202 : vector<64x128xf32>
    %cst_92 = arith.constant 0.000000e+00 : f32
    %205 = vector.broadcast %cst_92 : f32 to vector<64x128xf32>
    %206 = arith.cmpf oge, %176, %205 : vector<64x128xf32>
    %cst_93 = arith.constant 0.000000e+00 : f32
    %207 = vector.broadcast %cst_93 : f32 to vector<64x128xf32>
    %208 = arith.subf %207, %204 : vector<64x128xf32>
    %209 = arith.select %206, %204, %208 : vector<64x128xi1>, vector<64x128xf32>
    %cst_94 = arith.constant 5.000000e-01 : f32
    %210 = vector.broadcast %cst_94 : f32 to vector<64x128xf32>
    %211 = arith.mulf %210, %174 : vector<64x128xf32>
    %cst_95 = arith.constant 1.000000e+00 : f32
    %212 = vector.broadcast %cst_95 : f32 to vector<64x128xf32>
    %213 = arith.addf %212, %209 : vector<64x128xf32>
    %214 = arith.mulf %211, %213 : vector<64x128xf32>
    %215 = arith.truncf %214 : vector<64x128xf32> to vector<64x128xbf16>
    %c0_96 = arith.constant 0 : index
    %c0_97 = arith.constant 0 : index
    %216 = vector.load %arg12[%c0_96, %c0_97] : memref<128x32xbf16, #tpu.memory_space<vmem>>, vector<128x32xbf16>
    %cst_98 = arith.constant dense<0.000000e+00> : vector<64x32xf32>
    %217 = tpu.matmul %215, %216, %cst_98 {dimension_numbers = #tpu.dot_dimension_numbers<[1], [0], [0], [1], [0, 0, 1, 1], [], []>} : vector<64x128xbf16>, vector<128x32xbf16>, vector<64x32xf32> -> vector<64x32xf32>
    %c0_99 = arith.constant 0 : index
    %c0_100 = arith.constant 0 : index
    %218 = vector.load %arg13[%c0_99, %c0_100] : memref<1x32xf32, #tpu.memory_space<vmem>>, vector<1x32xf32>
    %219 = vector.broadcast %218 : vector<1x32xf32> to vector<64x32xf32>
    %220 = arith.addf %217, %219 : vector<64x32xf32>
    %221 = arith.addf %144, %220 : vector<64x32xf32>
    %c0_101 = arith.constant 0 : index
    %c0_102 = arith.constant 0 : index
    %222 = vector.load %arg14[%c0_101, %c0_102] : memref<64x32xf32, #tpu.memory_space<vmem>>, vector<64x32xf32>
    tpu.vector_store %arg14[%c0_101, %c0_102], %221 {strides = array<i32>} : memref<64x32xf32, #tpu.memory_space<vmem>>, vector<64x32xf32>,
    return
  }
  func.func @transform_0(%arg0: i32) -> (i32, i32) {
    %c0_i32 = arith.constant 0 : i32
    %c0_i32_0 = arith.constant 0 : i32
    return %arg0, %c0_i32 : i32, i32
  }
  func.func @transform_1(%arg0: i32) -> (i32, i32) {
    %c0_i32 = arith.constant 0 : i32
    %c0_i32_0 = arith.constant 0 : i32
    %c0_i32_1 = arith.constant 0 : i32
    return %c0_i32, %c0_i32_0 : i32, i32
  }
  func.func @transform_2(%arg0: i32) -> (i32, i32) {
    %c0_i32 = arith.constant 0 : i32
    %c0_i32_0 = arith.constant 0 : i32
    %c0_i32_1 = arith.constant 0 : i32
    return %c0_i32, %c0_i32_0 : i32, i32
  }
  func.func @transform_3(%arg0: i32) -> (i32, i32) {
    %c0_i32 = arith.constant 0 : i32
    %c0_i32_0 = arith.constant 0 : i32
    %c0_i32_1 = arith.constant 0 : i32
    return %c0_i32, %c0_i32_0 : i32, i32
  }
  func.func @transform_4(%arg0: i32) -> (i32, i32, i32) {
    %c0_i32 = arith.constant 0 : i32
    %c0_i32_0 = arith.constant 0 : i32
    %c0_i32_1 = arith.constant 0 : i32
    %c0_i32_2 = arith.constant 0 : i32
    return %c0_i32, %c0_i32_0, %c0_i32_1 : i32, i32, i32
  }
  func.func @transform_5(%arg0: i32) -> (i32, i32) {
    %c0_i32 = arith.constant 0 : i32
    %c0_i32_0 = arith.constant 0 : i32
    %c0_i32_1 = arith.constant 0 : i32
    return %c0_i32, %c0_i32_0 : i32, i32
  }
  func.func @transform_6(%arg0: i32) -> (i32, i32) {
    %c0_i32 = arith.constant 0 : i32
    %c0_i32_0 = arith.constant 0 : i32
    %c0_i32_1 = arith.constant 0 : i32
    return %c0_i32, %c0_i32_0 : i32, i32
  }
  func.func @transform_7(%arg0: i32) -> (i32, i32) {
    %c0_i32 = arith.constant 0 : i32
    %c0_i32_0 = arith.constant 0 : i32
    %c0_i32_1 = arith.constant 0 : i32
    return %c0_i32, %c0_i32_0 : i32, i32
  }
  func.func @transform_8(%arg0: i32) -> (i32, i32) {
    %c0_i32 = arith.constant 0 : i32
    %c0_i32_0 = arith.constant 0 : i32
    %c0_i32_1 = arith.constant 0 : i32
    return %c0_i32, %c0_i32_0 : i32, i32
  }
  func.func @transform_9(%arg0: i32) -> (i32, i32) {
    %c0_i32 = arith.constant 0 : i32
    %c0_i32_0 = arith.constant 0 : i32
    %c0_i32_1 = arith.constant 0 : i32
    return %c0_i32, %c0_i32_0 : i32, i32
  }
  func.func @transform_10(%arg0: i32) -> (i32, i32) {
    %c0_i32 = arith.constant 0 : i32
    %c0_i32_0 = arith.constant 0 : i32
    %c0_i32_1 = arith.constant 0 : i32
    return %c0_i32, %c0_i32_0 : i32, i32
  }
  func.func @transform_11(%arg0: i32) -> (i32, i32) {
    %c0_i32 = arith.constant 0 : i32
    %c0_i32_0 = arith.constant 0 : i32
    %c0_i32_1 = arith.constant 0 : i32
    return %c0_i32, %c0_i32_0 : i32, i32
  }
  func.func @transform_12(%arg0: i32) -> (i32, i32) {
    %c0_i32 = arith.constant 0 : i32
    %c0_i32_0 = arith.constant 0 : i32
    %c0_i32_1 = arith.constant 0 : i32
    return %c0_i32, %c0_i32_0 : i32, i32
  }
  func.func @transform_13(%arg0: i32) -> (i32, i32) {
    %c0_i32 = arith.constant 0 : i32
    %c0_i32_0 = arith.constant 0 : i32
    return %arg0, %c0_i32 : i32, i32
  }
}

module attributes {stable_mosaic.version = 11 : i64} {
  func.func @transformer_kernel(%arg0: i32, %arg1: memref<64x32xf32, #tpu.memory_space<vmem>>, %arg2: memref<1x32xf32, #tpu.memory_space<vmem>>, %arg3: memref<1x32xf32, #tpu.memory_space<vmem>>, %arg4: memref<32x96xbf16, #tpu.memory_space<vmem>>, %arg5: memref<4x64x64xbf16, #tpu.memory_space<vmem>>, %arg6: memref<32x32xbf16, #tpu.memory_space<vmem>>, %arg7: memref<1x32xf32, #tpu.memory_space<vmem>>, %arg8: memref<1x32xf32, #tpu.memory_space<vmem>>, %arg9: memref<1x32xf32, #tpu.memory_space<vmem>>, %arg10: memref<32x128xbf16, #tpu.memory_space<vmem>>, %arg11: memref<1x128xf32, #tpu.memory_space<vmem>>, %arg12: memref<128x32xbf16, #tpu.memory_space<vmem>>, %arg13: memref<1x32xf32, #tpu.memory_space<vmem>>, %arg14: memref<64x32xf32, #tpu.memory_space<vmem>>, %arg15: memref<64x96xbf16, #tpu.memory_space<vmem>>, %arg16: memref<64x32xbf16, #tpu.memory_space<vmem>>) attributes {dimension_semantics = [#tpu.dimension_semantics<parallel>], iteration_bounds = array<i64: 2>, scalar_prefetch = 0 : i64, scratch_operands = 2 : i64, tpu.core_type = #tpu.core_type<tc>, window_params = [{transform_indices = @transform_0, window_bounds = array<i64: 64, 32>}, {pipeline_mode = #tpu.pipeline_mode<synchronous>, transform_indices = @transform_1, window_bounds = array<i64: 1, 32>}, {pipeline_mode = #tpu.pipeline_mode<synchronous>, transform_indices = @transform_2, window_bounds = array<i64: 1, 32>}, {pipeline_mode = #tpu.pipeline_mode<synchronous>, transform_indices = @transform_3, window_bounds = array<i64: 32, 96>}, {pipeline_mode = #tpu.pipeline_mode<synchronous>, transform_indices = @transform_4, window_bounds = array<i64: 4, 64, 64>}, {pipeline_mode = #tpu.pipeline_mode<synchronous>, transform_indices = @transform_5, window_bounds = array<i64: 32, 32>}, {pipeline_mode = #tpu.pipeline_mode<synchronous>, transform_indices = @transform_6, window_bounds = array<i64: 1, 32>}, {pipeline_mode = #tpu.pipeline_mode<synchronous>, transform_indices = @transform_7, window_bounds = array<i64: 1, 32>}, {pipeline_mode = #tpu.pipeline_mode<synchronous>, transform_indices = @transform_8, window_bounds = array<i64: 1, 32>}, {pipeline_mode = #tpu.pipeline_mode<synchronous>, transform_indices = @transform_9, window_bounds = array<i64: 32, 128>}, {pipeline_mode = #tpu.pipeline_mode<synchronous>, transform_indices = @transform_10, window_bounds = array<i64: 1, 128>}, {pipeline_mode = #tpu.pipeline_mode<synchronous>, transform_indices = @transform_11, window_bounds = array<i64: 128, 32>}, {pipeline_mode = #tpu.pipeline_mode<synchronous>, transform_indices = @transform_12, window_bounds = array<i64: 1, 32>}, {transform_indices = @transform_13, window_bounds = array<i64: 64, 32>}]} {
    %c0 = arith.constant 0 : index
    %c0_0 = arith.constant 0 : index
    %0 = vector.load %arg1[%c0, %c0_0] : memref<64x32xf32, #tpu.memory_space<vmem>>, vector<64x32xf32>
    %c0_1 = arith.constant 0 : index
    %c0_2 = arith.constant 0 : index
    %1 = vector.load %arg2[%c0_1, %c0_2] : memref<1x32xf32, #tpu.memory_space<vmem>>, vector<1x32xf32>
    %c0_3 = arith.constant 0 : index
    %c0_4 = arith.constant 0 : index
    %2 = vector.load %arg3[%c0_3, %c0_4] : memref<1x32xf32, #tpu.memory_space<vmem>>, vector<1x32xf32>
    %cst = arith.constant dense<0.000000e+00> : vector<64xf32>
    %3 = vector.multi_reduction <add>, %0, %cst [1] : vector<64x32xf32> to vector<64xf32>
    %4 = vector.shape_cast %3 : vector<64xf32> to vector<64x1xf32>
    %cst_5 = arith.constant 3.200000e+01 : f32
    %5 = vector.broadcast %cst_5 : f32 to vector<64x1xf32>
    %6 = arith.divf %4, %5 : vector<64x1xf32>
    %7 = vector.broadcast %6 : vector<64x1xf32> to vector<64x32xf32>
    %8 = arith.subf %0, %7 : vector<64x32xf32>
    %9 = arith.mulf %8, %8 : vector<64x32xf32>
    %cst_6 = arith.constant dense<0.000000e+00> : vector<64xf32>
    %10 = vector.multi_reduction <add>, %9, %cst_6 [1] : vector<64x32xf32> to vector<64xf32>
    %11 = vector.shape_cast %10 : vector<64xf32> to vector<64x1xf32>
    %cst_7 = arith.constant 3.200000e+01 : f32
    %12 = vector.broadcast %cst_7 : f32 to vector<64x1xf32>
    %13 = arith.divf %11, %12 : vector<64x1xf32>
    %14 = vector.broadcast %6 : vector<64x1xf32> to vector<64x32xf32>
    %15 = arith.subf %0, %14 : vector<64x32xf32>
    %cst_8 = arith.constant 9.99999974E-6 : f32
    %16 = vector.broadcast %cst_8 : f32 to vector<64x1xf32>
    %17 = arith.addf %13, %16 : vector<64x1xf32>
    %18 = math.rsqrt %17 : vector<64x1xf32>
    %19 = vector.broadcast %18 : vector<64x1xf32> to vector<64x32xf32>
    %20 = arith.mulf %15, %19 : vector<64x32xf32>
    %21 = vector.broadcast %1 : vector<1x32xf32> to vector<64x32xf32>
    %22 = arith.mulf %20, %21 : vector<64x32xf32>
    %23 = vector.broadcast %2 : vector<1x32xf32> to vector<64x32xf32>
    %24 = arith.addf %22, %23 : vector<64x32xf32>
    %25 = arith.truncf %24 : vector<64x32xf32> to vector<64x32xbf16>
    %c0_9 = arith.constant 0 : index
    %c0_10 = arith.constant 0 : index
    %26 = vector.load %arg4[%c0_9, %c0_10] : memref<32x96xbf16, #tpu.memory_space<vmem>>, vector<32x96xbf16>
    %cst_11 = arith.constant dense<0.000000e+00> : vector<64x96xf32>
    %27 = tpu.matmul %25, %26, %cst_11 {dimension_numbers = #tpu.dot_dimension_numbers<[1], [0], [0], [1], [0, 0, 1, 1], [], []>} : vector<64x32xbf16>, vector<32x96xbf16>, vector<64x96xf32> -> vector<64x96xf32>
    %28 = arith.truncf %27 : vector<64x96xf32> to vector<64x96xbf16>
    %c0_12 = arith.constant 0 : index
    %c0_13 = arith.constant 0 : index
    %29 = vector.load %arg15[%c0_12, %c0_13] : memref<64x96xbf16, #tpu.memory_space<vmem>>, vector<64x96xbf16>
    tpu.vector_store %arg15[%c0_12, %c0_13], %28 {strides = array<i32>} : memref<64x96xbf16, #tpu.memory_space<vmem>>, vector<64x96xbf16>,
    %c0_14 = arith.constant 0 : index
    %c0_15 = arith.constant 0 : index
    %30 = vector.load %arg15[%c0_14, %c0_15] : memref<64x96xbf16, #tpu.memory_space<vmem>>, vector<64x8xbf16>
    %31 = vector.shape_cast %30 : vector<64x8xbf16> to vector<1x64x8xbf16>
    %c0_16 = arith.constant 0 : index
    %c32 = arith.constant 32 : index
    %32 = vector.load %arg15[%c0_16, %c32] : memref<64x96xbf16, #tpu.memory_space<vmem>>, vector<64x8xbf16>
    %33 = vector.shape_cast %32 : vector<64x8xbf16> to vector<1x64x8xbf16>
    %c0_17 = arith.constant 0 : index
    %c64 = arith.constant 64 : index
    %34 = vector.load %arg15[%c0_17, %c64] : memref<64x96xbf16, #tpu.memory_space<vmem>>, vector<64x8xbf16>
    %35 = vector.shape_cast %34 : vector<64x8xbf16> to vector<1x64x8xbf16>
    "tpu.trace_start"() <{level = 10 : i32, message = "bnd,bmd->bnm"}> : () -> ()
    %cst_18 = arith.constant dense<0.000000e+00> : vector<1x64x64xf32>
    %36 = tpu.matmul %31, %33, %cst_18 {dimension_numbers = #tpu.dot_dimension_numbers<[2], [2], [1], [1], [0, 0, 0, 1, 1, 1], [0], [0]>} : vector<1x64x8xbf16>, vector<1x64x8xbf16>, vector<1x64x64xf32> -> vector<1x64x64xf32>
    "tpu.trace_stop"() : () -> ()
    %c0_19 = arith.constant 0 : index
    %c0_20 = arith.constant 0 : index
    %c0_21 = arith.constant 0 : index
    %37 = vector.load %arg5[%c0_19, %c0_20, %c0_21] : memref<4x64x64xbf16, #tpu.memory_space<vmem>>, vector<1x64x64xbf16>
    %38 = vector.shape_cast %37 : vector<1x64x64xbf16> to vector<64x64xbf16>
    %39 = arith.extf %38 : vector<64x64xbf16> to vector<64x64xf32>
    %40 = vector.shape_cast %39 : vector<64x64xf32> to vector<1x64x64xf32>
    %41 = arith.addf %36, %40 : vector<1x64x64xf32>
    %cst_22 = arith.constant dense<0xFF800000> : vector<1x64xf32>
    %42 = vector.multi_reduction <maximumf>, %41, %cst_22 [2] : vector<1x64x64xf32> to vector<1x64xf32>
    %43 = vector.shape_cast %42 : vector<1x64xf32> to vector<1x64x1xf32>
    %44 = vector.broadcast %43 : vector<1x64x1xf32> to vector<1x64x64xf32>
    %45 = arith.subf %41, %44 : vector<1x64x64xf32>
    %46 = math.exp %45 : vector<1x64x64xf32>
    %cst_23 = arith.constant dense<0.000000e+00> : vector<1x64xf32>
    %47 = vector.multi_reduction <add>, %46, %cst_23 [2] : vector<1x64x64xf32> to vector<1x64xf32>
    %48 = vector.shape_cast %47 : vector<1x64xf32> to vector<1x64x1xf32>
    %49 = tpu.reciprocal %48 {approx = true} : vector<1x64x1xf32> -> vector<1x64x1xf32>
    %50 = vector.broadcast %49 : vector<1x64x1xf32> to vector<1x64x64xf32>
    %51 = arith.mulf %46, %50 : vector<1x64x64xf32>
    %52 = arith.truncf %51 : vector<1x64x64xf32> to vector<1x64x64xbf16>
    "tpu.trace_start"() <{level = 10 : i32, message = "bnm,bmd->bnd"}> : () -> ()
    %cst_24 = arith.constant dense<0.000000e+00> : vector<1x64x8xf32>
    %53 = tpu.matmul %52, %35, %cst_24 {dimension_numbers = #tpu.dot_dimension_numbers<[2], [1], [1], [2], [0, 0, 0, 1, 1, 2], [0], [0]>} : vector<1x64x64xbf16>, vector<1x64x8xbf16>, vector<1x64x8xf32> -> vector<1x64x8xf32>
    "tpu.trace_stop"() : () -> ()
    %54 = vector.shape_cast %53 : vector<1x64x8xf32> to vector<64x8xf32>
    %55 = arith.truncf %54 : vector<64x8xf32> to vector<64x8xbf16>
    %c0_25 = arith.constant 0 : index
    %c0_26 = arith.constant 0 : index
    %56 = vector.load %arg16[%c0_25, %c0_26] : memref<64x32xbf16, #tpu.memory_space<vmem>>, vector<64x8xbf16>
    tpu.vector_store %arg16[%c0_25, %c0_26], %55 {strides = array<i32>} : memref<64x32xbf16, #tpu.memory_space<vmem>>, vector<64x8xbf16>,
    %c0_27 = arith.constant 0 : index
    %c8 = arith.constant 8 : index
    %57 = vector.load %arg15[%c0_27, %c8] : memref<64x96xbf16, #tpu.memory_space<vmem>>, vector<64x8xbf16>
    %58 = vector.shape_cast %57 : vector<64x8xbf16> to vector<1x64x8xbf16>
    %c0_28 = arith.constant 0 : index
    %c40 = arith.constant 40 : index
    %59 = vector.load %arg15[%c0_28, %c40] : memref<64x96xbf16, #tpu.memory_space<vmem>>, vector<64x8xbf16>
    %60 = vector.shape_cast %59 : vector<64x8xbf16> to vector<1x64x8xbf16>
    %c0_29 = arith.constant 0 : index
    %c72 = arith.constant 72 : index
    %61 = vector.load %arg15[%c0_29, %c72] : memref<64x96xbf16, #tpu.memory_space<vmem>>, vector<64x8xbf16>
    %62 = vector.shape_cast %61 : vector<64x8xbf16> to vector<1x64x8xbf16>
    "tpu.trace_start"() <{level = 10 : i32, message = "bnd,bmd->bnm"}> : () -> ()
    %cst_30 = arith.constant dense<0.000000e+00> : vector<1x64x64xf32>
    %63 = tpu.matmul %58, %60, %cst_30 {dimension_numbers = #tpu.dot_dimension_numbers<[2], [2], [1], [1], [0, 0, 0, 1, 1, 1], [0], [0]>} : vector<1x64x8xbf16>, vector<1x64x8xbf16>, vector<1x64x64xf32> -> vector<1x64x64xf32>
    "tpu.trace_stop"() : () -> ()
    %c1 = arith.constant 1 : index
    %c0_31 = arith.constant 0 : index
    %c0_32 = arith.constant 0 : index
    %64 = vector.load %arg5[%c1, %c0_31, %c0_32] : memref<4x64x64xbf16, #tpu.memory_space<vmem>>, vector<1x64x64xbf16>
    %65 = vector.shape_cast %64 : vector<1x64x64xbf16> to vector<64x64xbf16>
    %66 = arith.extf %65 : vector<64x64xbf16> to vector<64x64xf32>
    %67 = vector.shape_cast %66 : vector<64x64xf32> to vector<1x64x64xf32>
    %68 = arith.addf %63, %67 : vector<1x64x64xf32>
    %cst_33 = arith.constant dense<0xFF800000> : vector<1x64xf32>
    %69 = vector.multi_reduction <maximumf>, %68, %cst_33 [2] : vector<1x64x64xf32> to vector<1x64xf32>
    %70 = vector.shape_cast %69 : vector<1x64xf32> to vector<1x64x1xf32>
    %71 = vector.broadcast %70 : vector<1x64x1xf32> to vector<1x64x64xf32>
    %72 = arith.subf %68, %71 : vector<1x64x64xf32>
    %73 = math.exp %72 : vector<1x64x64xf32>
    %cst_34 = arith.constant dense<0.000000e+00> : vector<1x64xf32>
    %74 = vector.multi_reduction <add>, %73, %cst_34 [2] : vector<1x64x64xf32> to vector<1x64xf32>
    %75 = vector.shape_cast %74 : vector<1x64xf32> to vector<1x64x1xf32>
    %76 = tpu.reciprocal %75 {approx = true} : vector<1x64x1xf32> -> vector<1x64x1xf32>
    %77 = vector.broadcast %76 : vector<1x64x1xf32> to vector<1x64x64xf32>
    %78 = arith.mulf %73, %77 : vector<1x64x64xf32>
    %79 = arith.truncf %78 : vector<1x64x64xf32> to vector<1x64x64xbf16>
    "tpu.trace_start"() <{level = 10 : i32, message = "bnm,bmd->bnd"}> : () -> ()
    %cst_35 = arith.constant dense<0.000000e+00> : vector<1x64x8xf32>
    %80 = tpu.matmul %79, %62, %cst_35 {dimension_numbers = #tpu.dot_dimension_numbers<[2], [1], [1], [2], [0, 0, 0, 1, 1, 2], [0], [0]>} : vector<1x64x64xbf16>, vector<1x64x8xbf16>, vector<1x64x8xf32> -> vector<1x64x8xf32>
    "tpu.trace_stop"() : () -> ()
    %81 = vector.shape_cast %80 : vector<1x64x8xf32> to vector<64x8xf32>
    %82 = arith.truncf %81 : vector<64x8xf32> to vector<64x8xbf16>
    %c0_36 = arith.constant 0 : index
    %c8_37 = arith.constant 8 : index
    %83 = vector.load %arg16[%c0_36, %c8_37] : memref<64x32xbf16, #tpu.memory_space<vmem>>, vector<64x8xbf16>
    tpu.vector_store %arg16[%c0_36, %c8_37], %82 {strides = array<i32>} : memref<64x32xbf16, #tpu.memory_space<vmem>>, vector<64x8xbf16>,
    %c0_38 = arith.constant 0 : index
    %c16 = arith.constant 16 : index
    %84 = vector.load %arg15[%c0_38, %c16] : memref<64x96xbf16, #tpu.memory_space<vmem>>, vector<64x8xbf16>
    %85 = vector.shape_cast %84 : vector<64x8xbf16> to vector<1x64x8xbf16>
    %c0_39 = arith.constant 0 : index
    %c48 = arith.constant 48 : index
    %86 = vector.load %arg15[%c0_39, %c48] : memref<64x96xbf16, #tpu.memory_space<vmem>>, vector<64x8xbf16>
    %87 = vector.shape_cast %86 : vector<64x8xbf16> to vector<1x64x8xbf16>
    %c0_40 = arith.constant 0 : index
    %c80 = arith.constant 80 : index
    %88 = vector.load %arg15[%c0_40, %c80] : memref<64x96xbf16, #tpu.memory_space<vmem>>, vector<64x8xbf16>
    %89 = vector.shape_cast %88 : vector<64x8xbf16> to vector<1x64x8xbf16>
    "tpu.trace_start"() <{level = 10 : i32, message = "bnd,bmd->bnm"}> : () -> ()
    %cst_41 = arith.constant dense<0.000000e+00> : vector<1x64x64xf32>
    %90 = tpu.matmul %85, %87, %cst_41 {dimension_numbers = #tpu.dot_dimension_numbers<[2], [2], [1], [1], [0, 0, 0, 1, 1, 1], [0], [0]>} : vector<1x64x8xbf16>, vector<1x64x8xbf16>, vector<1x64x64xf32> -> vector<1x64x64xf32>
    "tpu.trace_stop"() : () -> ()
    %c2 = arith.constant 2 : index
    %c0_42 = arith.constant 0 : index
    %c0_43 = arith.constant 0 : index
    %91 = vector.load %arg5[%c2, %c0_42, %c0_43] : memref<4x64x64xbf16, #tpu.memory_space<vmem>>, vector<1x64x64xbf16>
    %92 = vector.shape_cast %91 : vector<1x64x64xbf16> to vector<64x64xbf16>
    %93 = arith.extf %92 : vector<64x64xbf16> to vector<64x64xf32>
    %94 = vector.shape_cast %93 : vector<64x64xf32> to vector<1x64x64xf32>
    %95 = arith.addf %90, %94 : vector<1x64x64xf32>
    %cst_44 = arith.constant dense<0xFF800000> : vector<1x64xf32>
    %96 = vector.multi_reduction <maximumf>, %95, %cst_44 [2] : vector<1x64x64xf32> to vector<1x64xf32>
    %97 = vector.shape_cast %96 : vector<1x64xf32> to vector<1x64x1xf32>
    %98 = vector.broadcast %97 : vector<1x64x1xf32> to vector<1x64x64xf32>
    %99 = arith.subf %95, %98 : vector<1x64x64xf32>
    %100 = math.exp %99 : vector<1x64x64xf32>
    %cst_45 = arith.constant dense<0.000000e+00> : vector<1x64xf32>
    %101 = vector.multi_reduction <add>, %100, %cst_45 [2] : vector<1x64x64xf32> to vector<1x64xf32>
    %102 = vector.shape_cast %101 : vector<1x64xf32> to vector<1x64x1xf32>
    %103 = tpu.reciprocal %102 {approx = true} : vector<1x64x1xf32> -> vector<1x64x1xf32>
    %104 = vector.broadcast %103 : vector<1x64x1xf32> to vector<1x64x64xf32>
    %105 = arith.mulf %100, %104 : vector<1x64x64xf32>
    %106 = arith.truncf %105 : vector<1x64x64xf32> to vector<1x64x64xbf16>
    "tpu.trace_start"() <{level = 10 : i32, message = "bnm,bmd->bnd"}> : () -> ()
    %cst_46 = arith.constant dense<0.000000e+00> : vector<1x64x8xf32>
    %107 = tpu.matmul %106, %89, %cst_46 {dimension_numbers = #tpu.dot_dimension_numbers<[2], [1], [1], [2], [0, 0, 0, 1, 1, 2], [0], [0]>} : vector<1x64x64xbf16>, vector<1x64x8xbf16>, vector<1x64x8xf32> -> vector<1x64x8xf32>
    "tpu.trace_stop"() : () -> ()
    %108 = vector.shape_cast %107 : vector<1x64x8xf32> to vector<64x8xf32>
    %109 = arith.truncf %108 : vector<64x8xf32> to vector<64x8xbf16>
    %c0_47 = arith.constant 0 : index
    %c16_48 = arith.constant 16 : index
    %110 = vector.load %arg16[%c0_47, %c16_48] : memref<64x32xbf16, #tpu.memory_space<vmem>>, vector<64x8xbf16>
    tpu.vector_store %arg16[%c0_47, %c16_48], %109 {strides = array<i32>} : memref<64x32xbf16, #tpu.memory_space<vmem>>, vector<64x8xbf16>,
    %c0_49 = arith.constant 0 : index
    %c24 = arith.constant 24 : index
    %111 = vector.load %arg15[%c0_49, %c24] : memref<64x96xbf16, #tpu.memory_space<vmem>>, vector<64x8xbf16>
    %112 = vector.shape_cast %111 : vector<64x8xbf16> to vector<1x64x8xbf16>
    %c0_50 = arith.constant 0 : index
    %c56 = arith.constant 56 : index
    %113 = vector.load %arg15[%c0_50, %c56] : memref<64x96xbf16, #tpu.memory_space<vmem>>, vector<64x8xbf16>
    %114 = vector.shape_cast %113 : vector<64x8xbf16> to vector<1x64x8xbf16>
    %c0_51 = arith.constant 0 : index
    %c88 = arith.constant 88 : index
    %115 = vector.load %arg15[%c0_51, %c88] : memref<64x96xbf16, #tpu.memory_space<vmem>>, vector<64x8xbf16>
    %116 = vector.shape_cast %115 : vector<64x8xbf16> to vector<1x64x8xbf16>
    "tpu.trace_start"() <{level = 10 : i32, message = "bnd,bmd->bnm"}> : () -> ()
    %cst_52 = arith.constant dense<0.000000e+00> : vector<1x64x64xf32>
    %117 = tpu.matmul %112, %114, %cst_52 {dimension_numbers = #tpu.dot_dimension_numbers<[2], [2], [1], [1], [0, 0, 0, 1, 1, 1], [0], [0]>} : vector<1x64x8xbf16>, vector<1x64x8xbf16>, vector<1x64x64xf32> -> vector<1x64x64xf32>
    "tpu.trace_stop"() : () -> ()
    %c3 = arith.constant 3 : index
    %c0_53 = arith.constant 0 : index
    %c0_54 = arith.constant 0 : index
    %118 = vector.load %arg5[%c3, %c0_53, %c0_54] : memref<4x64x64xbf16, #tpu.memory_space<vmem>>, vector<1x64x64xbf16>
    %119 = vector.shape_cast %118 : vector<1x64x64xbf16> to vector<64x64xbf16>
    %120 = arith.extf %119 : vector<64x64xbf16> to vector<64x64xf32>
    %121 = vector.shape_cast %120 : vector<64x64xf32> to vector<1x64x64xf32>
    %122 = arith.addf %117, %121 : vector<1x64x64xf32>
    %cst_55 = arith.constant dense<0xFF800000> : vector<1x64xf32>
    %123 = vector.multi_reduction <maximumf>, %122, %cst_55 [2] : vector<1x64x64xf32> to vector<1x64xf32>
    %124 = vector.shape_cast %123 : vector<1x64xf32> to vector<1x64x1xf32>
    %125 = vector.broadcast %124 : vector<1x64x1xf32> to vector<1x64x64xf32>
    %126 = arith.subf %122, %125 : vector<1x64x64xf32>
    %127 = math.exp %126 : vector<1x64x64xf32>
    %cst_56 = arith.constant dense<0.000000e+00> : vector<1x64xf32>
    %128 = vector.multi_reduction <add>, %127, %cst_56 [2] : vector<1x64x64xf32> to vector<1x64xf32>
    %129 = vector.shape_cast %128 : vector<1x64xf32> to vector<1x64x1xf32>
    %130 = tpu.reciprocal %129 {approx = true} : vector<1x64x1xf32> -> vector<1x64x1xf32>
    %131 = vector.broadcast %130 : vector<1x64x1xf32> to vector<1x64x64xf32>
    %132 = arith.mulf %127, %131 : vector<1x64x64xf32>
    %133 = arith.truncf %132 : vector<1x64x64xf32> to vector<1x64x64xbf16>
    "tpu.trace_start"() <{level = 10 : i32, message = "bnm,bmd->bnd"}> : () -> ()
    %cst_57 = arith.constant dense<0.000000e+00> : vector<1x64x8xf32>
    %134 = tpu.matmul %133, %116, %cst_57 {dimension_numbers = #tpu.dot_dimension_numbers<[2], [1], [1], [2], [0, 0, 0, 1, 1, 2], [0], [0]>} : vector<1x64x64xbf16>, vector<1x64x8xbf16>, vector<1x64x8xf32> -> vector<1x64x8xf32>
    "tpu.trace_stop"() : () -> ()
    %135 = vector.shape_cast %134 : vector<1x64x8xf32> to vector<64x8xf32>
    %136 = arith.truncf %135 : vector<64x8xf32> to vector<64x8xbf16>
    %c0_58 = arith.constant 0 : index
    %c24_59 = arith.constant 24 : index
    %137 = vector.load %arg16[%c0_58, %c24_59] : memref<64x32xbf16, #tpu.memory_space<vmem>>, vector<64x8xbf16>
    tpu.vector_store %arg16[%c0_58, %c24_59], %136 {strides = array<i32>} : memref<64x32xbf16, #tpu.memory_space<vmem>>, vector<64x8xbf16>,
    %c0_60 = arith.constant 0 : index
    %c0_61 = arith.constant 0 : index
    %138 = vector.load %arg16[%c0_60, %c0_61] : memref<64x32xbf16, #tpu.memory_space<vmem>>, vector<64x32xbf16>
    %c0_62 = arith.constant 0 : index
    %c0_63 = arith.constant 0 : index
    %139 = vector.load %arg6[%c0_62, %c0_63] : memref<32x32xbf16, #tpu.memory_space<vmem>>, vector<32x32xbf16>
    %cst_64 = arith.constant dense<0.000000e+00> : vector<64x32xf32>
    %140 = tpu.matmul %138, %139, %cst_64 {dimension_numbers = #tpu.dot_dimension_numbers<[1], [0], [0], [1], [0, 0, 1, 1], [], []>} : vector<64x32xbf16>, vector<32x32xbf16>, vector<64x32xf32> -> vector<64x32xf32>
    %c0_65 = arith.constant 0 : index
    %c0_66 = arith.constant 0 : index
    %141 = vector.load %arg7[%c0_65, %c0_66] : memref<1x32xf32, #tpu.memory_space<vmem>>, vector<1x32xf32>
    %142 = vector.broadcast %141 : vector<1x32xf32> to vector<64x32xf32>
    %143 = arith.addf %140, %142 : vector<64x32xf32>
    %144 = arith.addf %0, %143 : vector<64x32xf32>
    %c0_67 = arith.constant 0 : index
    %c0_68 = arith.constant 0 : index
    %145 = vector.load %arg8[%c0_67, %c0_68] : memref<1x32xf32, #tpu.memory_space<vmem>>, vector<1x32xf32>
    %c0_69 = arith.constant 0 : index
    %c0_70 = arith.constant 0 : index
    %146 = vector.load %arg9[%c0_69, %c0_70] : memref<1x32xf32, #tpu.memory_space<vmem>>, vector<1x32xf32>
    %cst_71 = arith.constant dense<0.000000e+00> : vector<64xf32>
    %147 = vector.multi_reduction <add>, %144, %cst_71 [1] : vector<64x32xf32> to vector<64xf32>
    %148 = vector.shape_cast %147 : vector<64xf32> to vector<64x1xf32>
    %cst_72 = arith.constant 3.200000e+01 : f32
    %149 = vector.broadcast %cst_72 : f32 to vector<64x1xf32>
    %150 = arith.divf %148, %149 : vector<64x1xf32>
    %151 = vector.broadcast %150 : vector<64x1xf32> to vector<64x32xf32>
    %152 = arith.subf %144, %151 : vector<64x32xf32>
    %153 = arith.mulf %152, %152 : vector<64x32xf32>
    %cst_73 = arith.constant dense<0.000000e+00> : vector<64xf32>
    %154 = vector.multi_reduction <add>, %153, %cst_73 [1] : vector<64x32xf32> to vector<64xf32>
    %155 = vector.shape_cast %154 : vector<64xf32> to vector<64x1xf32>
    %cst_74 = arith.constant 3.200000e+01 : f32
    %156 = vector.broadcast %cst_74 : f32 to vector<64x1xf32>
    %157 = arith.divf %155, %156 : vector<64x1xf32>
    %158 = vector.broadcast %150 : vector<64x1xf32> to vector<64x32xf32>
    %159 = arith.subf %144, %158 : vector<64x32xf32>
    %cst_75 = arith.constant 9.99999974E-6 : f32
    %160 = vector.broadcast %cst_75 : f32 to vector<64x1xf32>
    %161 = arith.addf %157, %160 : vector<64x1xf32>
    %162 = math.rsqrt %161 : vector<64x1xf32>
    %163 = vector.broadcast %162 : vector<64x1xf32> to vector<64x32xf32>
    %164 = arith.mulf %159, %163 : vector<64x32xf32>
    %165 = vector.broadcast %145 : vector<1x32xf32> to vector<64x32xf32>
    %166 = arith.mulf %164, %165 : vector<64x32xf32>
    %167 = vector.broadcast %146 : vector<1x32xf32> to vector<64x32xf32>
    %168 = arith.addf %166, %167 : vector<64x32xf32>
    %169 = arith.truncf %168 : vector<64x32xf32> to vector<64x32xbf16>
    %c0_76 = arith.constant 0 : index
    %c0_77 = arith.constant 0 : index
    %170 = vector.load %arg10[%c0_76, %c0_77] : memref<32x128xbf16, #tpu.memory_space<vmem>>, vector<32x128xbf16>
    %cst_78 = arith.constant dense<0.000000e+00> : vector<64x128xf32>
    %171 = tpu.matmul %169, %170, %cst_78 {dimension_numbers = #tpu.dot_dimension_numbers<[1], [0], [0], [1], [0, 0, 1, 1], [], []>} : vector<64x32xbf16>, vector<32x128xbf16>, vector<64x128xf32> -> vector<64x128xf32>
    %c0_79 = arith.constant 0 : index
    %c0_80 = arith.constant 0 : index
    %172 = vector.load %arg11[%c0_79, %c0_80] : memref<1x128xf32, #tpu.memory_space<vmem>>, vector<1x128xf32>
    %173 = vector.broadcast %172 : vector<1x128xf32> to vector<64x128xf32>
    %174 = arith.addf %171, %173 : vector<64x128xf32>
    %cst_81 = arith.constant 0.707106769 : f32
    %175 = vector.broadcast %cst_81 : f32 to vector<64x128xf32>
    %176 = arith.mulf %174, %175 : vector<64x128xf32>
    %177 = math.absf %176 : vector<64x128xf32>
    %cst_82 = arith.constant 0.327591091 : f32
    %178 = vector.broadcast %cst_82 : f32 to vector<64x128xf32>
    %179 = arith.mulf %178, %177 : vector<64x128xf32>
    %cst_83 = arith.constant 1.000000e+00 : f32
    %180 = vector.broadcast %cst_83 : f32 to vector<64x128xf32>
    %181 = arith.addf %180, %179 : vector<64x128xf32>
    %cst_84 = arith.constant 1.000000e+00 : f32
    %182 = vector.broadcast %cst_84 : f32 to vector<64x128xf32>
    %183 = arith.divf %182, %181 : vector<64x128xf32>
    %cst_85 = arith.constant 1.06140542 : f32
    %184 = vector.broadcast %cst_85 : f32 to vector<64x128xf32>
    %185 = arith.mulf %184, %183 : vector<64x128xf32>
    %cst_86 = arith.constant 1.45315206 : f32
    %186 = vector.broadcast %cst_86 : f32 to vector<64x128xf32>
    %187 = arith.subf %185, %186 : vector<64x128xf32>
    %188 = arith.mulf %187, %183 : vector<64x128xf32>
    %cst_87 = arith.constant 1.42141378 : f32
    %189 = vector.broadcast %cst_87 : f32 to vector<64x128xf32>
    %190 = arith.addf %188, %189 : vector<64x128xf32>
    %191 = arith.mulf %190, %183 : vector<64x128xf32>
    %cst_88 = arith.constant 0.284496725 : f32
    %192 = vector.broadcast %cst_88 : f32 to vector<64x128xf32>
    %193 = arith.subf %191, %192 : vector<64x128xf32>
    %194 = arith.mulf %193, %183 : vector<64x128xf32>
    %cst_89 = arith.constant 0.254829586 : f32
    %195 = vector.broadcast %cst_89 : f32 to vector<64x128xf32>
    %196 = arith.addf %194, %195 : vector<64x128xf32>
    %197 = arith.mulf %196, %183 : vector<64x128xf32>
    %cst_90 = arith.constant 0.000000e+00 : f32
    %198 = vector.broadcast %cst_90 : f32 to vector<64x128xf32>
    %199 = arith.subf %198, %177 : vector<64x128xf32>
    %200 = arith.mulf %199, %177 : vector<64x128xf32>
    %201 = math.exp %200 : vector<64x128xf32>
    %202 = arith.mulf %197, %201 : vector<64x128xf32>
    %cst_91 = arith.constant 1.000000e+00 : f32
    %203 = vector.broadcast %cst_91 : f32 to vector<64x128xf32>
    %204 = arith.subf %203, %202 : vector<64x128xf32>
    %cst_92 = arith.constant 0.000000e+00 : f32
    %205 = vector.broadcast %cst_92 : f32 to vector<64x128xf32>
    %206 = arith.cmpf oge, %176, %205 : vector<64x128xf32>
    %cst_93 = arith.constant 0.000000e+00 : f32
    %207 = vector.broadcast %cst_93 : f32 to vector<64x128xf32>
    %208 = arith.subf %207, %204 : vector<64x128xf32>
    %209 = arith.select %206, %204, %208 : vector<64x128xi1>, vector<64x128xf32>
    %cst_94 = arith.constant 5.000000e-01 : f32
    %210 = vector.broadcast %cst_94 : f32 to vector<64x128xf32>
    %211 = arith.mulf %210, %174 : vector<64x128xf32>
    %cst_95 = arith.constant 1.000000e+00 : f32
    %212 = vector.broadcast %cst_95 : f32 to vector<64x128xf32>
    %213 = arith.addf %212, %209 : vector<64x128xf32>
    %214 = arith.mulf %211, %213 : vector<64x128xf32>
    %215 = arith.truncf %214 : vector<64x128xf32> to vector<64x128xbf16>
    %c0_96 = arith.constant 0 : index
    %c0_97 = arith.constant 0 : index
    %216 = vector.load %arg12[%c0_96, %c0_97] : memref<128x32xbf16, #tpu.memory_space<vmem>>, vector<128x32xbf16>
    %cst_98 = arith.constant dense<0.000000e+00> : vector<64x32xf32>
    %217 = tpu.matmul %215, %216, %cst_98 {dimension_numbers = #tpu.dot_dimension_numbers<[1], [0], [0], [1], [0, 0, 1, 1], [], []>} : vector<64x128xbf16>, vector<128x32xbf16>, vector<64x32xf32> -> vector<64x32xf32>
    %c0_99 = arith.constant 0 : index
    %c0_100 = arith.constant 0 : index
    %218 = vector.load %arg13[%c0_99, %c0_100] : memref<1x32xf32, #tpu.memory_space<vmem>>, vector<1x32xf32>
    %219 = vector.broadcast %218 : vector<1x32xf32> to vector<64x32xf32>
    %220 = arith.addf %217, %219 : vector<64x32xf32>
    %221 = arith.addf %144, %220 : vector<64x32xf32>
    %c0_101 = arith.constant 0 : index
    %c0_102 = arith.constant 0 : index
    %222 = vector.load %arg14[%c0_101, %c0_102] : memref<64x32xf32, #tpu.memory_space<vmem>>, vector<64x32xf32>
    tpu.vector_store %arg14[%c0_101, %c0_102], %221 {strides = array<i32>} : memref<64x32xf32, #tpu.memory_space<vmem>>, vector<64x32xf32>,
    return
  }
  func.func @transform_0(%arg0: i32) -> (i32, i32) {
    %c0_i32 = arith.constant 0 : i32
    %c0_i32_0 = arith.constant 0 : i32
    return %arg0, %c0_i32 : i32, i32
  }
  func.func @transform_1(%arg0: i32) -> (i32, i32) {
    %c0_i32 = arith.constant 0 : i32
    %c0_i32_0 = arith.constant 0 : i32
    %c0_i32_1 = arith.constant 0 : i32
    return %c0_i32, %c0_i32_0 : i32, i32
  }
  func.func @transform_2(%arg0: i32) -> (i32, i32) {
    %c0_i32 = arith.constant 0 : i32
    %c0_i32_0 = arith.constant 0 : i32
    %c0_i32_1 = arith.constant 0 : i32
    return %c0_i32, %c0_i32_0 : i32, i32
  }
  func.func @transform_3(%arg0: i32) -> (i32, i32) {
    %c0_i32 = arith.constant 0 : i32
    %c0_i32_0 = arith.constant 0 : i32
    %c0_i32_1 = arith.constant 0 : i32
    return %c0_i32, %c0_i32_0 : i32, i32
  }
  func.func @transform_4(%arg0: i32) -> (i32, i32, i32) {
    %c0_i32 = arith.constant 0 : i32
    %c0_i32_0 = arith.constant 0 : i32
    %c0_i32_1 = arith.constant 0 : i32
    %c0_i32_2 = arith.constant 0 : i32
    return %c0_i32, %c0_i32_0, %c0_i32_1 : i32, i32, i32
  }
  func.func @transform_5(%arg0: i32) -> (i32, i32) {
    %c0_i32 = arith.constant 0 : i32
    %c0_i32_0 = arith.constant 0 : i32
    %c0_i32_1 = arith.constant 0 : i32
    return %c0_i32, %c0_i32_0 : i32, i32
  }
  func.func @transform_6(%arg0: i32) -> (i32, i32) {
    %c0_i32 = arith.constant 0 : i32
    %c0_i32_0 = arith.constant 0 : i32
    %c0_i32_1 = arith.constant 0 : i32
    return %c0_i32, %c0_i32_0 : i32, i32
  }
  func.func @transform_7(%arg0: i32) -> (i32, i32) {
    %c0_i32 = arith.constant 0 : i32
    %c0_i32_0 = arith.constant 0 : i32
    %c0_i32_1 = arith.constant 0 : i32
    return %c0_i32, %c0_i32_0 : i32, i32
  }
  func.func @transform_8(%arg0: i32) -> (i32, i32) {
    %c0_i32 = arith.constant 0 : i32
    %c0_i32_0 = arith.constant 0 : i32
    %c0_i32_1 = arith.constant 0 : i32
    return %c0_i32, %c0_i32_0 : i32, i32
  }
  func.func @transform_9(%arg0: i32) -> (i32, i32) {
    %c0_i32 = arith.constant 0 : i32
    %c0_i32_0 = arith.constant 0 : i32
    %c0_i32_1 = arith.constant 0 : i32
    return %c0_i32, %c0_i32_0 : i32, i32
  }
  func.func @transform_10(%arg0: i32) -> (i32, i32) {
    %c0_i32 = arith.constant 0 : i32
    %c0_i32_0 = arith.constant 0 : i32
    %c0_i32_1 = arith.constant 0 : i32
    return %c0_i32, %c0_i32_0 : i32, i32
  }
  func.func @transform_11(%arg0: i32) -> (i32, i32) {
    %c0_i32 = arith.constant 0 : i32
    %c0_i32_0 = arith.constant 0 : i32
    %c0_i32_1 = arith.constant 0 : i32
    return %c0_i32, %c0_i32_0 : i32, i32
  }
  func.func @transform_12(%arg0: i32) -> (i32, i32) {
    %c0_i32 = arith.constant 0 : i32
    %c0_i32_0 = arith.constant 0 : i32
    %c0_i32_1 = arith.constant 0 : i32
    return %c0_i32, %c0_i32_0 : i32, i32
  }
  func.func @transform_13(%arg0: i32) -> (i32, i32) {
    %c0_i32 = arith.constant 0 : i32
    %c0_i32_0 = arith.constant 0 : i32
    return %arg0, %c0_i32 : i32, i32
  }
}

</mosaic_0001>

<bundles_post_ra>
// kernel: tpu_custom_call.1
= control target key start
LH: loop header
LB: loop body
LE: loop exit
PB: predicated region body
PF: predicated region fallthrough
CT: control target
= control target key end

     0   :  { %s3616_s25 = smov 0   ;;  %s4634_s0 = inlined_call_operand.vmem [shape: f32[128,32], index: 0, kind: input, shape index: {}]   ;;  %s4635_s1 = inlined_call_operand.vmem [shape: f32[1,32], index: 1, kind: input, shape index: {}]   ;;  %s4636_s2 = inlined_call_operand.vmem [shape: f32[1,32], index: 2, kind: input, shape index: {}]   ;;  %s4637_s3 = inlined_call_operand.vmem [shape: bf16[32,96], index: 3, kind: input, shape index: {}]   ;;  %s4638_s4 = inlined_call_operand.vmem [shape: bf16[4,64,64], index: 4, kind: input, shape index: {}]   ;;  %s4639_s5 = inlined_call_operand.vmem [shape: bf16[32,32], index: 5, kind: input, shape index: {}]   ;;  %s4640_s6 = inlined_call_operand.vmem [shape: f32[1,32], index: 6, kind: input, shape index: {}]   ;;  %s4641_s7 = inlined_call_operand.vmem [shape: f32[1,32], index: 7, kind: input, shape index: {}]   ;;  %s4642_s8 = inlined_call_operand.vmem [shape: f32[1,32], index: 8, kind: input, shape index: {}]   ;;  %s4643_s9 = inlined_call_operand.vmem [shape: bf16[32,128], index: 9, kind: input, shape index: {}]   ;;  %s4644_s10 = inlined_call_operand.vmem [shape: f32[1,128], index: 10, kind: input, shape index: {}]   ;;  %s4645_s11 = inlined_call_operand.vmem [shape: bf16[128,32], index: 11, kind: input, shape index: {}]   ;;  %s4646_s12 = inlined_call_operand.vmem [shape: f32[1,32], index: 12, kind: input, shape index: {}]   ;;  %s4647_s13 = inlined_call_operand.vmem [shape: f32[128,32], index: 13, kind: output, shape index: {}]  }
   0x1 LB: > { %s2793_s26 = sadd.s32 4294967295, %s3530_s25   ;;  %p2797_p0 = scmp.ge.s32.totalorder %s3530_s25, 1  ;;  %s3530_s25 = sphi %s3616_s25, %s23_s25  }
   0x2   : > { %p388_p1 = scmp.lt.s32.totalorder %s3530_s25, 3 }
   0x4   : > { %p389_p2 = pnand %p2797_p0, %p388_p1 }
   0x5   : > { %s2798_s27 = sshll.u32 (!%p389_p2), %s2793_s26, 3  ;;  %vm455_vm0 = vcmask (!%p389_p2), 261120   ;;  %v3308_v56 = vld [vmem:[%s4637_s3] sm:$0xff] (!%p389_p2)   ;;  %v3309_v57 = vld [vmem:[%s4637_s3 + $0x8] sm:$0xff] (!%p389_p2)   ;;  %vm690_vm1 = vcmask (!%p389_p2), 785408   ;;  %vm727_vm2 = vcmask (!%p389_p2), 64512  }
   0x6   : > { %392 = sbr.rel (%p389_p2) target bundleno = 4116 (0x1014), region = 72  ;;  %p433_p3 = scmp.lt.s32.totalorder (!%p389_p2), %s2798_s27, 15  ;;  %3082 = vmatprep.subr.bf16.mxu0 (!%p389_p2), %v3308_v56  ;;  %vm817_vm3 = vcmask (!%p389_p2), 523264   ;;  %vm1338_vm4 = vcmask (!%p389_p2), 130112   ;;  %vm1674_vm5 = vcmask (!%p389_p2), 195712   ;;  %vm2010_vm6 = vcmask (!%p389_p2), 261312  }
   0x7   : > { %3083 = vmatpush3.bf16.msra.mxu0 (!%p389_p2), %v3308_v56  ;;  %s3532_s23 = smov (!%p389_p2), 96   ;;  %s3533_s19 = smov (!%p389_p2), 64  }
   0x8   : > { %3084 = vmatprep.subr.bf16.mxu0 (!%p389_p2), %v3309_v57  ;;  %s3534_s20 = smov (!%p389_p2), 88   ;;  %s3535_s21 = smov (!%p389_p2), 80  }
   0x9   : > { %s3536_s22 = smov (!%p389_p2), 120   ;;  %s3539_s15 = smov (!%p389_p2), 48  }
   0xa   : > { %s3540_s16 = smov (!%p389_p2), 72   ;;  %s3541_s17 = smov (!%p389_p2), 104  }
   0xb   : > { %3085 = vmatpush3.bf16.msra.mxu0 (!%p389_p2), %v3309_v57  ;;  %s3542_s29 = smov (!%p389_p2), 40   ;;  %s3543_s30 = smov (!%p389_p2), 8  }
   0xd   : > { %s4649_s27 = smov (!%p433_p3, %s2798_s27), 15 }
   0xe   : > { %s2799_s28 = sshll.u32 %s4649_s27, 3 }
   0xf   : > { %s3632_s14 = scalar_lea.vmem %s4634_s0, %s2799_s28  ;;  %s442_s24 = scalar_lea.vmem %s4647_s13, %s2799_s28 }
  0x10   : > { %v445_v0 = vld [vmem:[%s3632_s14] sm:$0xff]  ;;  %v447_v1 = vld [vmem:[%s3632_s14 + $0x10] sm:$0xff]  ;;  %v446_v2 = vld [vmem:[%s3632_s14 + $0x8] sm:$0xff] }
  0x11   : > { %v456_v3 = vsel %vm455_vm0, %v445_v0, 0.0  ;;  %v462_v4 = vsel %vm455_vm0, %v447_v1, 0.0  ;;  %v448_v5 = vld [vmem:[%s3632_s14 + $0x18] sm:$0xff]  ;;  %v459_v6 = vsel %vm455_vm0, %v446_v2, 0.0  ;;  %v449_v7 = vld [vmem:[%s3632_s14 + $0x20] sm:$0xff]  ;;  %v450_v9 = vld [vmem:[%s3632_s14 + $0x28] sm:$0xff] }
  0x12   : > { %457 = vadd.xlane.f32.xlu0 %v456_v3  ;;  %463 = vadd.xlane.f32.xlu1 %v462_v4  ;;  %v465_v8 = vsel %vm455_vm0, %v448_v5, 0.0  ;;  %v468_v10 = vsel %vm455_vm0, %v449_v7, 0.0  ;;  %v471_v11 = vsel %vm455_vm0, %v450_v9, 0.0  ;;  %v451_v12 = vld [vmem:[%s3632_s14 + $0x30] sm:$0xff]  ;;  %v452_v13 = vld [vmem:[%s3632_s14 + $0x38] sm:$0xff] }
  0x13   : > { %v474_v14 = vsel %vm455_vm0, %v451_v12, 0.0  ;;  %v477_v15 = vsel %vm455_vm0, %v452_v13, 0.0 }
  0x16   : > { %460 = vadd.xlane.f32.xlu0 %v459_v6  ;;  %466 = vadd.xlane.f32.xlu1 %v465_v8 }
  0x1a   : > { %469 = vadd.xlane.f32.xlu0 %v468_v10  ;;  %472 = vadd.xlane.f32.xlu1 %v471_v11 }
  0x1e   : > { %475 = vadd.xlane.f32.xlu0 %v474_v14  ;;  %478 = vadd.xlane.f32.xlu1 %v477_v15 }
  0x9f   : > { %v458_v16 = vpop.xlane.xlu0 %457  ;;  %v464_v17 = vpop.xlane.xlu1 %463 }
  0xa0   : > { %v481_v18 = vmul.f32 0.03125, %v458_v16  ;;  %v483_v19 = vmul.f32 0.03125, %v464_v17 }
  0xa2   : > { %v3650_v20 = vsub.f32 %v445_v0, %v481_v18  ;;  %v3652_v21 = vsub.f32 %v447_v1, %v483_v19  ;;  %v2802_v19 = vld [vmem:[%s4635_s1] ss:$0 sm:$0xff] }
  0xa3   : > { %v461_v22 = vpop.xlane.xlu0 %460  ;;  %v467_v23 = vpop.xlane.xlu1 %466 }
  0xa4   : > { %v482_v24 = vmul.f32 0.03125, %v461_v22  ;;  %v484_v25 = vmul.f32 0.03125, %v467_v23  ;;  %v497_v26 = vmul.f32 %v3650_v20, %v3650_v20  ;;  %v499_v27 = vmul.f32 %v3652_v21, %v3652_v21 }
  0xa6   : > { %v3658_v28 = vsub.f32 %v446_v2, %v482_v24  ;;  %v3660_v29 = vsub.f32 %v448_v5, %v484_v25  ;;  %v505_v30 = vsel %vm455_vm0, %v497_v26, 0.0  ;;  %v511_v33 = vsel %vm455_vm0, %v499_v27, 0.0  ;;  %v2803_v27 = vld [vmem:[%s4636_s2] ss:$0 sm:$0xff] }
  0xa7   : > { %506 = vadd.xlane.f32.xlu0 %v505_v30  ;;  %v470_v31 = vpop.xlane.xlu0 %469  ;;  %v473_v32 = vpop.xlane.xlu1 %472 }
  0xa8   : > { %v485_v34 = vmul.f32 0.03125, %v470_v31  ;;  %v486_v35 = vmul.f32 0.03125, %v473_v32  ;;  %v498_v36 = vmul.f32 %v3658_v28, %v3658_v28  ;;  %v500_v37 = vmul.f32 %v3660_v29, %v3660_v29 }
  0xaa   : > { %v3668_v38 = vsub.f32 %v449_v7, %v485_v34  ;;  %v3670_v39 = vsub.f32 %v450_v9, %v486_v35  ;;  %v508_v40 = vsel %vm455_vm0, %v498_v36, 0.0  ;;  %v514_v43 = vsel %vm455_vm0, %v500_v37, 0.0 }
  0xab   : > { %512 = vadd.xlane.f32.xlu0 %v511_v33  ;;  %509 = vadd.xlane.f32.xlu1 %v508_v40  ;;  %v476_v41 = vpop.xlane.xlu0 %475  ;;  %v479_v42 = vpop.xlane.xlu1 %478 }
  0xac   : > { %v487_v44 = vmul.f32 0.03125, %v476_v41  ;;  %v488_v45 = vmul.f32 0.03125, %v479_v42  ;;  %v501_v46 = vmul.f32 %v3668_v38, %v3668_v38  ;;  %v502_v47 = vmul.f32 %v3670_v39, %v3670_v39 }
  0xae   : > { %v3678_v48 = vsub.f32 %v451_v12, %v487_v44  ;;  %v3680_v49 = vsub.f32 %v452_v13, %v488_v45  ;;  %v517_v50 = vsel %vm455_vm0, %v501_v46, 0.0  ;;  %v520_v51 = vsel %vm455_vm0, %v502_v47, 0.0 }
  0xaf   : > { %515 = vadd.xlane.f32.xlu1 %v514_v43  ;;  %518 = vadd.xlane.f32.xlu0 %v517_v50 }
  0xb0   : > { %v503_v52 = vmul.f32 %v3678_v48, %v3678_v48  ;;  %v504_v53 = vmul.f32 %v3680_v49, %v3680_v49 }
  0xb2   : > { %v523_v54 = vsel %vm455_vm0, %v503_v52, 0.0  ;;  %v526_v55 = vsel %vm455_vm0, %v504_v53, 0.0 }
  0xb3   : > { %521 = vadd.xlane.f32.xlu1 %v520_v51  ;;  %524 = vadd.xlane.f32.xlu0 %v523_v54 }
  0xb7   : > { %527 = vadd.xlane.f32.xlu1 %v526_v55 }
 0x134   : > { %v507_v58 = vpop.xlane.xlu0 %506 }
 0x135   : > { %v529_v59 = vmul.f32 0.03125, %v507_v58 }
 0x137   : > { %v537_v60 = vadd.f32 1e-05, %v529_v59 }
 0x138   : > { %v510_v61 = vpop.xlane.xlu1 %509  ;;  %v513_v62 = vpop.xlane.xlu0 %512 }
 0x139   : > { %3322 = vrsqrt.f32 %v537_v60  ;;  %v530_v63 = vmul.f32 0.03125, %v510_v61  ;;  %v531_v0 = vmul.f32 0.03125, %v513_v62 }
 0x13b   : > { %v538_v1 = vadd.f32 1e-05, %v530_v63  ;;  %v539_v2 = vadd.f32 1e-05, %v531_v0 }
 0x13c   : > { %v516_v3 = vpop.xlane.xlu1 %515  ;;  %v519_v4 = vpop.xlane.xlu0 %518 }
 0x13d   : > { %3324 = vrsqrt.f32 %v538_v1  ;;  %v532_v5 = vmul.f32 0.03125, %v516_v3  ;;  %v533_v6 = vmul.f32 0.03125, %v519_v4 }
 0x13e   : > { %3326 = vrsqrt.f32 %v539_v2 }
 0x13f   : > { %v540_v7 = vadd.f32 1e-05, %v532_v5  ;;  %v541_v8 = vadd.f32 1e-05, %v533_v6 }
 0x140   : > { %v522_v9 = vpop.xlane.xlu1 %521  ;;  %v525_v10 = vpop.xlane.xlu0 %524 }
 0x141   : > { %3328 = vrsqrt.f32 %v540_v7  ;;  %v534_v11 = vmul.f32 0.03125, %v522_v9  ;;  %v535_v12 = vmul.f32 0.03125, %v525_v10 }
 0x142   : > { %3330 = vrsqrt.f32 %v541_v8 }
 0x143   : > { %v3323_v13 = vpop.eup %3322  ;;  %v542_v14 = vadd.f32 1e-05, %v534_v11  ;;  %v543_v15 = vadd.f32 1e-05, %v535_v12 }
 0x144   : > { %v528_v16 = vpop.xlane.xlu1 %527  ;;  %v553_v17 = vmul.f32 %v3323_v13, %v3650_v20 }
 0x145   : > { %3332 = vrsqrt.f32 %v542_v14  ;;  %v536_v18 = vmul.f32 0.03125, %v528_v16  ;;  %v2973_v16 = vld [vmem:[%s4638_s4 + $0x8] sm:$0xff]  }
 0x146   : > { %3334 = vrsqrt.f32 %v543_v15  ;;  %v567_v26 = vmul.f32 %v2802_v19, %v553_v17  ;;  %v2910_v17 = vld [vmem:[%s4638_s4] sm:$0xff]  }
 0x147   : > { %v3325_v22 = vpop.eup %3324  ;;  %v544_v23 = vadd.f32 1e-05, %v536_v18  ;;  %v2915_v18 = vunpack.c.l.bf16 %v2973_v16 }
 0x148   : > { %v3327_v24 = vpop.eup %3326  ;;  %v554_v25 = vmul.f32 %v3325_v22, %v3658_v28  ;;  %v581_v33 = vadd.f32 %v2803_v27, %v567_v26 }
 0x149   : > { %3336 = vrsqrt.f32 %v544_v23  ;;  %v555_v20 = vmul.f32 %v3327_v24, %v3652_v21  ;;  %v2912_v23 = vunpack.c.h.bf16 %v2910_v17 }
 0x14a   : > { %v568_v30 = vmul.f32 %v2802_v19, %v554_v25 }
 0x14b   : > { %v3329_v31 = vpop.eup %3328  ;;  %v569_v36 = vmul.f32 %v2802_v19, %v555_v20  ;;  %v2916_v20 = vunpack.c.h.bf16 %v2973_v16 }
 0x14c   : > { %v3331_v32 = vpop.eup %3330  ;;  %v582_v34 = vadd.f32 %v2803_v27, %v568_v30  ;;  %v556_v35 = vmul.f32 %v3329_v31, %v3660_v29 }
 0x14d   : > { %v557_v37 = vmul.f32 %v3331_v32, %v3668_v38  ;;  %v583_v43 = vadd.f32 %v2803_v27, %v569_v36 }
 0x14e   : > { %v589_v40 = vpack.c.bf16 %v582_v34, %v581_v33  ;;  %v570_v28 = vmul.f32 %v2802_v19, %v556_v35  ;;  %v2975_v33 = vld [vmem:[%s4638_s4 + $0x18] sm:$0xff]  }
 0x14f   : > { %v3333_v41 = vpop.eup %3332  ;;  %v571_v45 = vmul.f32 %v2802_v19, %v557_v37  ;;  %v2923_v36 = vunpack.c.l.bf16 %v2975_v33 }
 0x150   : > { %v3335_v42 = vpop.eup %3334  ;;  %3086 = vmatprep.mubr.msk.bf16.mxu0 %vm455_vm0, %v589_v40  ;;  %v584_v44 = vadd.f32 %v2803_v27, %v570_v28  ;;  %v558_v21 = vmul.f32 %v3333_v41, %v3670_v39  ;;  %v2974_v28 = vld [vmem:[%s4638_s4 + $0x10] sm:$0xff]  }
 0x151   : > { %v559_v46 = vmul.f32 %v3335_v42, %v3678_v48  ;;  %v585_v29 = vadd.f32 %v2803_v27, %v571_v45 }
 0x152   : > { %v590_v47 = vpack.c.bf16 %v584_v44, %v583_v43  ;;  %v572_v50 = vmul.f32 %v2802_v19, %v558_v21  ;;  %v2919_v44 = vunpack.c.l.bf16 %v2974_v28 }
 0x153   : > { %v3337_v51 = vpop.eup %3336  ;;  %v573_v53 = vmul.f32 %v2802_v19, %v559_v46 }
 0x154   : > { %3087 = vmatmul.mubr.msk.bf16.vlgmr.msra.gmra.mrb[0].mxu0 %vm455_vm0, %v590_v47  ;;  %v586_v38 = vadd.f32 %v2803_v27, %v572_v50  ;;  %v560_v52 = vmul.f32 %v3337_v51, %v3680_v49  ;;  %v2924_v51 = vunpack.c.h.bf16 %v2975_v33 }
 0x155   : > { %v587_v56 = vadd.f32 %v2803_v27, %v573_v53 }
 0x156   : > { %v591_v54 = vpack.c.bf16 %v586_v38, %v585_v29  ;;  %v574_v55 = vmul.f32 %v2802_v19, %v560_v52  ;;  %v2911_v19 = vunpack.c.l.bf16 %v2910_v17  ;;  %v2920_v38 = vunpack.c.h.bf16 %v2974_v28 }
 0x158   : > { %3090 = vmatprep.mubr.msk.bf16.mxu0 %vm455_vm0, %v591_v54  ;;  %v588_v57 = vadd.f32 %v2803_v27, %v574_v55 }
 0x15a   : > { %v592_v39 = vpack.c.bf16 %v588_v57, %v587_v56 }
 0x15c   : > { %3091 = vmatmul.mubr.msk.bf16.gmra.mrb[4].mxu0 %vm455_vm0, %v592_v39 }
 0x227   : > { %v3088_v48 = vpop.f32.mrb[0].mxu0 }
 0x228   : > { %v655_v58 = vpop.f32.mrb[1].mxu0 }
 0x229   : > { %v3089_v59 = vpop.f32.mrb[2].mxu0 }
 0x22a   : > { %v687_v60 = vpack.c.bf16 %v3089_v59, %v3088_v48  ;;  %v658_v61 = vpop.f32.mrb[3].mxu0 }
 0x22b   : > { %v686_v62 = vpack.c.bf16 %v658_v61, %v655_v58 }
 0x22c   : > { %692 = vst.msk [vmem:[#allocation2 + $0x8] sm:$0xff] %vm690_vm1, %v687_v60 }
 0x22d   : > { %691 = vst.msk [vmem:[#allocation2] sm:$0xff] %vm690_vm1, %v686_v62 }
 0x22f   : > { %v3092_v49 = vpop.f32.mrb[4].mxu0 }
 0x230   : > { %v671_v63 = vpop.f32.mrb[5].mxu0 }
 0x231   : > { %v3093_v0 = vpop.f32.mrb[6].mxu0 }
 0x232   : > { %v689_v1 = vpack.c.bf16 %v3093_v0, %v3092_v49  ;;  %v674_v2 = vpop.f32.mrb[7].mxu0 }
 0x233   : > { %v688_v3 = vpack.c.bf16 %v674_v2, %v671_v63  ;;  %v3716_v4 = vld [vmem:[#allocation2 + $0x8] sm:$0xff] }
 0x234   : > { %694 = vst.msk [vmem:[#allocation2 + $0x18] sm:$0xff] %vm690_vm1, %v689_v1  ;;  %721 = vrot.lane.b32.xlu1 %v3716_v4, %s3532_s23  ;;  %v3720_v5 = vld [vmem:[#allocation2] sm:$0xff] }
 0x235   : > { %693 = vst.msk [vmem:[#allocation2 + $0x10] sm:$0xff] %vm690_vm1, %v688_v3  ;;  %719 = vrot.lane.b32.xlu0 %v3720_v5, %s3532_s23  ;;  %3102 = vmatprep.mubr.msk.bf16.mxu1 %vm727_vm2, %v3720_v5 }
 0x23b   : > { %v3729_v7 = vld [vmem:[#allocation2 + $0x18] sm:$0xff] }
 0x23c   : > { %v3726_v6 = vld [vmem:[#allocation2 + $0x10] sm:$0xff] }
 0x23d   : > { %723 = vrot.lane.b32.xlu1 %v3726_v6, %s3532_s23 }
 0x241   : > { %725 = vrot.lane.b32.xlu1 %v3729_v7, %s3532_s23  ;;  %s3537_s23 = smov 112  }
 0x2a6   : > { %v722_v10 = vpop.permute.xlu1 %721 }
 0x2a7   : > { %v720_v8 = vpop.permute.xlu0 %719  ;;  %v744_v11 = vsel %vm727_vm2, %v722_v10, 0 }
 0x2a8   : > { %3270 = vmatprep.subr.msk.bf16.mxu1 %vm727_vm2, %v720_v8  ;;  %v741_v9 = vsel %vm727_vm2, %v720_v8, 0 }
 0x2a9   : > { %3095 = vmatpush3.bf16.xpose.msra.mxu1 %v741_v9 }
 0x2aa   : > { %3271 = vmatprep.subr.msk.bf16.mxu1 %vm727_vm2, %v722_v10 }
 0x2af   : > { %v724_v12 = vpop.permute.xlu1 %723 }
 0x2b0   : > { %v747_v13 = vsel %vm727_vm2, %v724_v12, 0 }
 0x2b1   : > { %3097 = vmatpush3.bf16.xpose.msra.mxu1 %v744_v11 }
 0x2b2   : > { %3272 = vmatprep.subr.msk.bf16.mxu1 %vm727_vm2, %v724_v12 }
 0x2b3   : > { %v726_v14 = vpop.permute.xlu1 %725 }
 0x2b4   : > { %v750_v15 = vsel %vm727_vm2, %v726_v14, 0 }
 0x2b9   : > { %3099 = vmatpush3.bf16.xpose.msra.mxu1 %v747_v13 }
 0x2ba   : > { %3273 = vmatprep.subr.msk.bf16.mxu1 %vm727_vm2, %v726_v14 }
 0x2c1   : > { %3101 = vmatpush3.bf16.xpose.msra.mxu1 %v750_v15 }
 0x2c8   : > { %3103 = vmatmul.mubr.msk.bf16.vlgmr.msra.gmra.mrb[0].mxu1 %vm727_vm2, %v3716_v4 }
 0x2c9   : > { %3106 = vmatprep.mubr.msk.bf16.mxu1 %vm727_vm2, %v3726_v6 }
 0x2d0   : > { %3107 = vmatmul.mubr.msk.bf16.gmra.mrb[4].mxu1 %vm727_vm2, %v3729_v7 }
 0x39b   : > { %v3104_v22 = vpop.f32.mrb[0].mxu1 }
 0x39c   : > { %v795_v24 = vadd.f32 %v3104_v22, %v2915_v18  ;;  %v786_v25 = vpop.f32.mrb[1].mxu1 }
 0x39d   : > { %v3105_v26 = vpop.f32.mrb[2].mxu1  ;;  %v787_v27 = vadd.f32 %v2911_v19, %v786_v25 }
 0x39e   : > { %v789_v30 = vpop.f32.mrb[3].mxu1  ;;  %v824_v31 = vsel %vm817_vm3, %v795_v24, -inf  ;;  %v798_v35 = vadd.f32 %v3105_v26, %v2916_v20 }
 0x39f   : > { %v790_v32 = vadd.f32 %v2912_v23, %v789_v30  ;;  %825 = vmax.xlane.f32.xlu0 %v824_v31  ;;  %v818_v37 = vsel %vm817_vm3, %v787_v27, -inf }
 0x3a0   : > { %v827_v45 = vsel %vm817_vm3, %v798_v35, -inf }
 0x3a1   : > { %v821_v34 = vsel %vm817_vm3, %v790_v32, -inf }
 0x3a2   : > { %822 = vmax.xlane.f32.xlu1 %v821_v34 }
 0x3a3   : > { %v3108_v40 = vpop.f32.mrb[4].mxu1  ;;  %819 = vmax.xlane.f32.xlu0 %v818_v37 }
 0x3a4   : > { %v802_v41 = vpop.f32.mrb[5].mxu1  ;;  %v3761_v43 = vadd.f32 %v3108_v40, %v2923_v36 }
 0x3a5   : > { %v3109_v42 = vpop.f32.mrb[6].mxu1  ;;  %v3764_v46 = vadd.f32 %v2919_v44, %v802_v41 }
 0x3a6   : > { %v805_v21 = vpop.f32.mrb[7].mxu1  ;;  %v836_v47 = vsel %vm817_vm3, %v3761_v43, -inf  ;;  %v3774_v29 = vadd.f32 %v3109_v42, %v2924_v51 }
 0x3a7   : > { %828 = vmax.xlane.f32.xlu0 %v827_v45  ;;  %v830_v50 = vsel %vm817_vm3, %v3764_v46, -inf  ;;  %v3776_v52 = vadd.f32 %v2920_v38, %v805_v21 }
 0x3a8   : > { %v839_v53 = vsel %vm817_vm3, %v3774_v29, -inf }
 0x3a9   : > { %v833_v54 = vsel %vm817_vm3, %v3776_v52, -inf }
 0x3ab   : > { %837 = vmax.xlane.f32.xlu0 %v836_v47 }
 0x3af   : > { %831 = vmax.xlane.f32.xlu0 %v830_v50 }
 0x3b3   : > { %912 = vrot.lane.b32.xlu1 %v3716_v4, %s3533_s19 }
 0x3b7   : > { %914 = vrot.lane.b32.xlu1 %v3726_v6, %s3533_s19 }
 0x3bb   : > { %916 = vrot.lane.b32.xlu1 %v3729_v7, %s3533_s19 }
 0x3c5   : > { %910 = vrot.lane.b32.xlu0 %v3720_v5, %s3533_s19 }
 0x3df   : > { %840 = vmax.xlane.f32.xlu1 %v839_v53 }
 0x3e3   : > { %834 = vmax.xlane.f32.xlu1 %v833_v54 }
 0x3f4   : > { %1042 = vrot.lane.b32.xlu1 %v3716_v4, %s3534_s20 }
 0x3f8   : > { %1044 = vrot.lane.b32.xlu1 %v3726_v6, %s3534_s20 }
 0x42c   : > { %v826_v55 = vpop.xlane.xlu0 %825 }
 0x42d   : > { %v844_v56 = vsub.f32 %v795_v24, %v826_v55 }
 0x42f   : > { %v854_v57 = vmul.f32 1.442695, %v844_v56  ;;  %v823_v39 = vpop.xlane.xlu1 %822 }
 0x430   : > { %v820_v48 = vpop.xlane.xlu0 %819  ;;  %v843_v59 = vsub.f32 %v790_v32, %v823_v39 }
 0x431   : > { %3338 = vpow2.f32 %v854_v57  ;;  %v842_v58 = vsub.f32 %v787_v27, %v820_v48 }
 0x432   : > { %v852_v49 = vmul.f32 1.442695, %v843_v59 }
 0x433   : > { %v850_v60 = vmul.f32 1.442695, %v842_v58  ;;  %v913_v8 = vpop.permute.xlu1 %912 }
 0x434   : > { %v829_v61 = vpop.xlane.xlu0 %828 }
 0x435   : > { %3340 = vpow2.f32 %v850_v60  ;;  %v845_v62 = vsub.f32 %v798_v35, %v829_v61 }
 0x437   : > { %v856_v63 = vmul.f32 1.442695, %v845_v62  ;;  %v915_v13 = vpop.permute.xlu1 %914 }
 0x438   : > { %v838_v0 = vpop.xlane.xlu0 %837 }
 0x439   : > { %3342 = vpow2.f32 %v856_v63  ;;  %v848_v18 = vsub.f32 %v3761_v43, %v838_v0 }
 0x43a   : > { %3344 = vpow2.f32 %v852_v49 }
 0x43b   : > { %v3786_v1 = vpop.eup %3338  ;;  %v917_v17 = vpop.permute.xlu1 %916  ;;  %v862_v19 = vmul.f32 1.442695, %v848_v18 }
 0x43c   : > { %v832_v2 = vpop.xlane.xlu0 %831  ;;  %v872_v3 = vsel %vm817_vm3, %v3786_v1, 0.0 }
 0x43d   : > { %873 = vadd.xlane.f32.xlu0 %v872_v3  ;;  %v846_v22 = vsub.f32 %v3764_v46, %v832_v2  ;;  %3346 = vpow2.f32 %v862_v19 }
 0x43f   : > { %v3790_v9 = vpop.eup %3340  ;;  %v858_v23 = vmul.f32 1.442695, %v846_v22 }
 0x440   : > { %v911_v10 = vpop.permute.xlu0 %910  ;;  %v866_v11 = vsel %vm817_vm3, %v3790_v9, 0.0 }
 0x441   : > { %867 = vadd.xlane.f32.xlu0 %v866_v11  ;;  %3110 = vmatprep.subr.bf16.mxu0 %v911_v10  ;;  %3348 = vpow2.f32 %v858_v23 }
 0x442   : > { %3111 = vmatpush3.bf16.msra.mxu0 %v911_v10 }
 0x443   : > { %v3794_v12 = vpop.eup %3342  ;;  %3112 = vmatprep.subr.bf16.mxu0 %v913_v8 }
 0x444   : > { %v875_v14 = vsel %vm817_vm3, %v3794_v12, 0.0  ;;  %v3798_v15 = vpop.eup %3344 }
 0x445   : > { %876 = vadd.xlane.f32.xlu1 %v875_v14  ;;  %v869_v16 = vsel %vm817_vm3, %v3798_v15, 0.0 }
 0x446   : > { %3113 = vmatpush3.bf16.msra.mxu0 %v913_v8 }
 0x447   : > { %3114 = vmatprep.subr.bf16.mxu0 %v915_v13  ;;  %v3810_v30 = vpop.eup %3346 }
 0x448   : > { %v884_v32 = vsel %vm817_vm3, %v3810_v30, 0.0 }
 0x449   : > { %870 = vadd.xlane.f32.xlu1 %v869_v16 }
 0x44a   : > { %3115 = vmatpush3.bf16.msra.mxu0 %v915_v13 }
 0x44b   : > { %3116 = vmatprep.subr.bf16.mxu0 %v917_v17  ;;  %v3814_v33 = vpop.eup %3348 }
 0x44c   : > { %v878_v34 = vsel %vm817_vm3, %v3814_v33, 0.0 }
 0x44e   : > { %3117 = vmatpush3.bf16.msra.mxu0 %v917_v17 }
 0x457   : > { %1040 = vrot.lane.b32.xlu0 %v3720_v5, %s3534_s20 }
 0x45a   : > { %1376 = vrot.lane.b32.xlu1 %v3720_v5, %s3535_s21 }
 0x46c   : > { %v841_v24 = vpop.xlane.xlu1 %840 }
 0x46d   : > { %v849_v25 = vsub.f32 %v3774_v29, %v841_v24 }
 0x46f   : > { %v864_v26 = vmul.f32 1.442695, %v849_v25 }
 0x470   : > { %v835_v27 = vpop.xlane.xlu1 %834 }
 0x471   : > { %3350 = vpow2.f32 %v864_v26  ;;  %v847_v20 = vsub.f32 %v3776_v52, %v835_v27 }
 0x473   : > { %v860_v31 = vmul.f32 1.442695, %v847_v20 }
 0x474   : > { %v1043_v28 = vpop.permute.xlu1 %1042 }
 0x475   : > { %3352 = vpow2.f32 %v860_v31  ;;  %v1064_v48 = vsel %vm727_vm2, %v1043_v28, 0 }
 0x476   : > { %885 = vadd.xlane.f32.xlu0 %v884_v32 }
 0x478   : > { %v1045_v42 = vpop.permute.xlu1 %1044 }
 0x479   : > { %v1067_v58 = vsel %vm727_vm2, %v1045_v42, 0 }
 0x47a   : > { %879 = vadd.xlane.f32.xlu0 %v878_v34 }
 0x47b   : > { %v3818_v35 = vpop.eup %3350 }
 0x47c   : > { %v887_v36 = vsel %vm817_vm3, %v3818_v35, 0.0 }
 0x47e   : > { %888 = vadd.xlane.f32.xlu0 %v887_v36 }
 0x47f   : > { %v3822_v37 = vpop.eup %3352 }
 0x480   : > { %v881_v40 = vsel %vm817_vm3, %v3822_v37, 0.0 }
 0x481   : > { %882 = vadd.xlane.f32.xlu1 %v881_v40 }
 0x492   : > { %1378 = vrot.lane.b32.xlu1 %v3716_v4, %s3535_s21 }
 0x494   : > { %1046 = vrot.lane.b32.xlu0 %v3729_v7, %s3534_s20  ;;  %s3545_s20 = smov 24  }
 0x496   : > { %1034 = vrot.lane.b32.xlu1 %v3716_v4, %s3536_s22 }
 0x498   : > { %1032 = vrot.lane.b32.xlu0 %v3720_v5, %s3536_s22 }
 0x49a   : > { %1036 = vrot.lane.b32.xlu1 %v3726_v6, %s3536_s22 }
 0x49c   : > { %1380 = vrot.lane.b32.xlu0 %v3726_v6, %s3535_s21 }
 0x49e   : > { %1382 = vrot.lane.b32.xlu1 %v3729_v7, %s3535_s21 }
 0x4a0   : > { %1038 = vrot.lane.b32.xlu0 %v3729_v7, %s3536_s22 }
 0x4a2   : > { %1370 = vrot.lane.b32.xlu1 %v3716_v4, %s3537_s23 }
 0x4a4   : > { %1368 = vrot.lane.b32.xlu0 %v3720_v5, %s3537_s23 }
 0x4a6   : > { %1374 = vrot.lane.b32.xlu1 %v3729_v7, %s3537_s23 }
 0x4a8   : > { %1372 = vrot.lane.b32.xlu0 %v3726_v6, %s3537_s23  ;;  %s3538_s23 = smov 56  }
 0x4ca   : > { %v874_v41 = vpop.xlane.xlu0 %873 }
 0x4ce   : > { %v868_v43 = vpop.xlane.xlu0 %867 }
 0x4d2   : > { %v877_v44 = vpop.xlane.xlu1 %876  ;;  %v1041_v21 = vpop.permute.xlu0 %1040 }
 0x4d3   : > { %3274 = vmatprep.subr.msk.bf16.mxu0 %vm727_vm2, %v1041_v21  ;;  %3354 = vrcp.f32 %v877_v44  ;;  %v1061_v39 = vsel %vm727_vm2, %v1041_v21, 0  ;;  %v2980_v44 = vld [vmem:[%s4638_s4 + $0x40] sm:$0xff]  }
 0x4d4   : > { %3356 = vrcp.f32 %v868_v43 }
 0x4d5   : > { %3358 = vrcp.f32 %v874_v41 }
 0x4d6   : > { %v871_v45 = vpop.xlane.xlu1 %870 }
 0x4d7   : > { %3360 = vrcp.f32 %v871_v45 }
 0x4da   : > { %v1377_v46 = vpop.permute.xlu1 %1376 }
 0x4db   : > { %3278 = vmatprep.subr.msk.bf16.mxu1 %vm727_vm2, %v1377_v46  ;;  %v1397_v47 = vsel %vm727_vm2, %v1377_v46, 0  ;;  %v2981_v46 = vld [vmem:[%s4638_s4 + $0x48] sm:$0xff]  }
 0x4dc   : > { %3159 = vmatpush3.bf16.xpose.msra.mxu1 %v1397_v47 }
 0x4dd   : > { %v3355_v50 = vpop.eup %3354 }
 0x4de   : > { %v3357_v51 = vpop.eup %3356  ;;  %v901_v52 = vmul.f32 %v3355_v50, %v3794_v12  ;;  %v2943_v50 = vunpack.c.l.bf16 %v2980_v44 }
 0x4df   : > { %v3359_v29 = vpop.eup %3358  ;;  %v898_v53 = vmul.f32 %v3357_v51, %v3790_v9 }
 0x4e0   : > { %v900_v55 = vmul.f32 %v3359_v29, %v3786_v1  ;;  %v2947_v29 = vunpack.c.l.bf16 %v2981_v46 }
 0x4e1   : > { %v3361_v38 = vpop.eup %3360 }
 0x4e2   : > { %v899_v54 = vmul.f32 %v3361_v38, %v3798_v15  ;;  %v907_v57 = vpack.c.bf16 %v901_v52, %v900_v55  ;;  %v2944_v52 = vunpack.c.h.bf16 %v2980_v44  ;;  %v2948_v55 = vunpack.c.h.bf16 %v2981_v46 }
 0x4e4   : > { %v906_v56 = vpack.c.bf16 %v899_v54, %v898_v53 }
 0x4e6   : > { %3118 = vmatprep.mubr.msk.bf16.mxu0 %vm817_vm3, %v906_v56 }
 0x4e7   : > { %3119 = vmatmul.mubr.msk.bf16.vlgmr.msra.gmra.mrb[8].mxu0 %vm817_vm3, %v907_v57  ;;  %v3899_v57 = vld [vmem:[%s4638_s4 + $0x38] sm:$0xff]  }
 0x4e8   : > { %3127 = vmatpush3.bf16.xpose.msra.mxu0 %v1061_v39 }
 0x4e9   : > { %3275 = vmatprep.subr.msk.bf16.mxu0 %vm727_vm2, %v1043_v28 }
 0x4f0   : > { %3129 = vmatpush3.bf16.xpose.msra.mxu0 %v1064_v48  ;;  %v3904_v48 = vld [vmem:[%s4638_s4 + $0x30] sm:$0xff]  }
 0x4f1   : > { %3276 = vmatprep.subr.msk.bf16.mxu0 %vm727_vm2, %v1045_v42 }
 0x4f8   : > { %3131 = vmatpush3.bf16.xpose.msra.mxu0 %v1067_v58  ;;  %v2940_v58 = vunpack.c.h.bf16 %v3899_v57 }
 0x503   : > { %v886_v59 = vpop.xlane.xlu0 %885 }
 0x507   : > { %v880_v60 = vpop.xlane.xlu0 %879 }
 0x50b   : > { %v889_v61 = vpop.xlane.xlu0 %888 }
 0x50c   : > { %3362 = vrcp.f32 %v889_v61 }
 0x50d   : > { %3364 = vrcp.f32 %v880_v60 }
 0x50e   : > { %3366 = vrcp.f32 %v886_v59  ;;  %v883_v62 = vpop.xlane.xlu1 %882  ;;  %v2982_v59 = vld [vmem:[%s4638_s4 + $0x50] sm:$0xff]  }
 0x50f   : > { %3368 = vrcp.f32 %v883_v62  ;;  %v1047_v49 = vpop.permute.xlu0 %1046 }
 0x510   : > { %3277 = vmatprep.subr.msk.bf16.mxu0 %vm727_vm2, %v1047_v49  ;;  %v1070_v63 = vsel %vm727_vm2, %v1047_v49, 0 }
 0x511   : > { %3133 = vmatpush3.bf16.xpose.msra.mxu0 %v1070_v63  ;;  %v2936_v63 = vunpack.c.h.bf16 %v3904_v48 }
 0x512   : > { %v1379_v0 = vpop.permute.xlu1 %1378 }
 0x513   : > { %3279 = vmatprep.subr.msk.bf16.mxu1 %vm727_vm2, %v1379_v0  ;;  %v1033_v1 = vpop.permute.xlu0 %1032  ;;  %v1400_v2 = vsel %vm727_vm2, %v1379_v0, 0 }
 0x514   : > { %3161 = vmatpush3.bf16.xpose.msra.mxu1 %v1400_v2 }
 0x516   : > { %v3363_v3 = vpop.eup %3362  ;;  %v1035_v8 = vpop.permute.xlu1 %1034 }
 0x517   : > { %v3365_v9 = vpop.eup %3364  ;;  %v1381_v10 = vpop.permute.xlu0 %1380  ;;  %v905_v13 = vmul.f32 %v3363_v3, %v3818_v35 }
 0x518   : > { %v3367_v11 = vpop.eup %3366  ;;  %3280 = vmatprep.subr.msk.bf16.mxu1 %vm727_vm2, %v1381_v10  ;;  %v902_v15 = vmul.f32 %v3365_v9, %v3814_v33  ;;  %v1403_v18 = vsel %vm727_vm2, %v1381_v10, 0  ;;  %v2951_v9 = vunpack.c.l.bf16 %v2982_v59 }
 0x519   : > { %v3369_v12 = vpop.eup %3368  ;;  %v904_v19 = vmul.f32 %v3367_v11, %v3810_v30 }
 0x51a   : > { %v1037_v14 = vpop.permute.xlu1 %1036  ;;  %v903_v16 = vmul.f32 %v3369_v12, %v3822_v37 }
 0x51b   : > { %v1039_v17 = vpop.permute.xlu0 %1038  ;;  %v909_v23 = vpack.c.bf16 %v905_v13, %v904_v19 }
 0x51c   : > { %3163 = vmatpush3.bf16.xpose.msra.mxu1 %v1403_v18  ;;  %v908_v22 = vpack.c.bf16 %v903_v16, %v902_v15  ;;  %v2952_v16 = vunpack.c.h.bf16 %v2982_v59 }
 0x51e   : > { %v1383_v24 = vpop.permute.xlu1 %1382  ;;  %3122 = vmatprep.mubr.msk.bf16.mxu0 %vm817_vm3, %v908_v22 }
 0x51f   : > { %3123 = vmatmul.mubr.msk.bf16.gmra.mrb[12].mxu0 %vm817_vm3, %v909_v23  ;;  %3281 = vmatprep.subr.msk.bf16.mxu1 %vm727_vm2, %v1383_v24  ;;  %v1369_v25 = vpop.permute.xlu0 %1368  ;;  %v1406_v26 = vsel %vm727_vm2, %v1383_v24, 0 }
 0x520   : > { %3134 = vmatprep.mubr.msk.bf16.mxu0 %vm727_vm2, %v1033_v1  ;;  %3166 = vmatprep.mubr.msk.bf16.mxu1 %vm727_vm2, %v1369_v25  ;;  %v2983_v1 = vld [vmem:[%s4638_s4 + $0x58] sm:$0xff]  }
 0x521   : > { %v2955_v13 = vunpack.c.l.bf16 %v2983_v1  ;;  %v2956_v19 = vunpack.c.h.bf16 %v2983_v1 }
 0x522   : > { %v1371_v27 = vpop.permute.xlu1 %1370 }
 0x523   : > { %v1373_v20 = vpop.permute.xlu0 %1372 }
 0x524   : > { %3165 = vmatpush3.bf16.xpose.msra.mxu1 %v1406_v26 }
 0x526   : > { %v1375_v30 = vpop.permute.xlu1 %1374 }
 0x527   : > { %3135 = vmatmul.mubr.msk.bf16.vlgmr.msra.gmra.mrb[16].mxu0 %vm727_vm2, %v1035_v8 }
 0x528   : > { %3138 = vmatprep.mubr.msk.bf16.mxu0 %vm727_vm2, %v1037_v14 }
 0x52b   : > { %3167 = vmatmul.mubr.msk.bf16.vlgmr.msra.gmra.mrb[8].mxu1 %vm727_vm2, %v1371_v27 }
 0x52c   : > { %3170 = vmatprep.mubr.msk.bf16.mxu1 %vm727_vm2, %v1373_v20 }
 0x52f   : > { %3139 = vmatmul.mubr.msk.bf16.gmra.mrb[20].mxu0 %vm727_vm2, %v1039_v17 }
 0x533   : > { %3171 = vmatmul.mubr.msk.bf16.gmra.mrb[12].mxu1 %vm727_vm2, %v1375_v30 }
 0x5ba   : > { %v3120_v31 = vpop.f32.mrb[8].mxu0 }
 0x5bb   : > { %v968_v32 = vpop.f32.mrb[9].mxu0 }
 0x5bc   : > { %v3121_v33 = vpop.f32.mrb[10].mxu0 }
 0x5bd   : > { %v1000_v34 = vpack.c.bf16 %v3121_v33, %v3120_v31  ;;  %v971_v35 = vpop.f32.mrb[11].mxu0  ;;  %v2977_v33 = vld [vmem:[%s4638_s4 + $0x28] sm:$0xff]  }
 0x5be   : > { %v999_v36 = vpack.c.bf16 %v971_v35, %v968_v32  ;;  %v2976_v35 = vld [vmem:[%s4638_s4 + $0x20] sm:$0xff]  }
 0x5bf   : > { %1004 = vst.msk [vmem:[#allocation3 + $0x8] sm:$0xff] %vm727_vm2, %v1000_v34  ;;  %v2931_v34 = vunpack.c.l.bf16 %v2977_v33 }
 0x5c0   : > { %1003 = vst.msk [vmem:[#allocation3] sm:$0xff] %vm727_vm2, %v999_v36  ;;  %v2928_v36 = vunpack.c.h.bf16 %v2976_v35 }
 0x5f2   : > { %v3124_v37 = vpop.f32.mrb[12].mxu0 }
 0x5f3   : > { %v984_v40 = vpop.f32.mrb[13].mxu0 }
 0x5f4   : > { %v3125_v28 = vpop.f32.mrb[14].mxu0 }
 0x5f5   : > { %v1002_v41 = vpack.c.bf16 %v3125_v28, %v3124_v37  ;;  %v987_v42 = vpop.f32.mrb[15].mxu0 }
 0x5f6   : > { %v1001_v43 = vpack.c.bf16 %v987_v42, %v984_v40  ;;  %v2927_v40 = vunpack.c.l.bf16 %v2976_v35  ;;  %v2932_v42 = vunpack.c.h.bf16 %v2977_v33 }
 0x5f7   : > { %1006 = vst.msk [vmem:[#allocation3 + $0x18] sm:$0xff] %vm727_vm2, %v1002_v41 }
 0x5f8   : > { %1005 = vst.msk [vmem:[#allocation3 + $0x10] sm:$0xff] %vm727_vm2, %v1001_v43 }
 0x5fa   : > { %v3885_v21 = vpop.f32.mrb[16].mxu0 }
 0x5fb   : > { %v3887_v45 = vpop.f32.mrb[17].mxu0  ;;  %v3959_v37 = vadd.f32 %v3885_v21, %v2931_v34  ;;  %v2939_v21 = vunpack.c.l.bf16 %v3899_v57 }
 0x5fc   : > { %v3892_v47 = vpop.f32.mrb[18].mxu0  ;;  %v3964_v41 = vadd.f32 %v2927_v40, %v3887_v45 }
 0x5fd   : > { %v1109_v51 = vpop.f32.mrb[19].mxu0  ;;  %v1143_v43 = vsel %vm817_vm3, %v3959_v37, -inf  ;;  %v3971_v46 = vadd.f32 %v3892_v47, %v2932_v42 }
 0x5fe   : > { %v3168_v38 = vpop.f32.mrb[8].mxu1  ;;  %v3961_v28 = vadd.f32 %v2928_v36, %v1109_v51  ;;  %v2935_v51 = vunpack.c.l.bf16 %v3904_v48 }
 0x5ff   : > { %v1442_v53 = vpop.f32.mrb[9].mxu1  ;;  %v3910_v60 = vadd.f32 %v3168_v38, %v2947_v29  ;;  %v1146_v29 = vsel %vm817_vm3, %v3971_v46, -inf }
 0x600   : > { %v3894_v54 = vadd.f32 %v2943_v50, %v1442_v53  ;;  %v3169_v56 = vpop.f32.mrb[10].mxu1  ;;  %v1140_v44 = vsel %vm817_vm3, %v3961_v28, -inf  ;;  %v1137_v50 = vsel %vm817_vm3, %v3964_v41, -inf }
 0x601   : > { %v1445_v39 = vpop.f32.mrb[11].mxu1  ;;  %v3920_v2 = vadd.f32 %v3169_v56, %v2948_v55  ;;  %v1479_v15 = vsel %vm817_vm3, %v3910_v60, -inf }
 0x602   : > { %v3912_v61 = vadd.f32 %v2944_v52, %v1445_v39  ;;  %v3140_v62 = vpop.f32.mrb[20].mxu0  ;;  %v1473_v49 = vsel %vm817_vm3, %v3894_v54, -inf }
 0x603   : > { %v1122_v0 = vpop.f32.mrb[21].mxu0  ;;  %1474 = vmax.xlane.f32.xlu0 %v1473_v49  ;;  %v1482_v23 = vsel %vm817_vm3, %v3920_v2, -inf  ;;  %v3976_v45 = vadd.f32 %v3140_v62, %v2939_v21 }
 0x604   : > { %v3141_v3 = vpop.f32.mrb[22].mxu0  ;;  %v1476_v8 = vsel %vm817_vm3, %v3912_v61, -inf  ;;  %v3981_v38 = vadd.f32 %v2935_v51, %v1122_v0 }
 0x605   : > { %v3924_v10 = vadd.f32 %v3141_v3, %v2940_v58  ;;  %v1125_v11 = vpop.f32.mrb[23].mxu0  ;;  %1477 = vmax.xlane.f32.xlu1 %v1476_v8  ;;  %v1155_v47 = vsel %vm817_vm3, %v3976_v45, -inf }
 0x606   : > { %v3926_v12 = vadd.f32 %v2936_v63, %v1125_v11  ;;  %v3172_v14 = vpop.f32.mrb[12].mxu1  ;;  %v1149_v52 = vsel %vm817_vm3, %v3981_v38, -inf }
 0x607   : > { %1480 = vmax.xlane.f32.xlu0 %v1479_v15  ;;  %v1458_v17 = vpop.f32.mrb[13].mxu1  ;;  %v3934_v25 = vadd.f32 %v3172_v14, %v2955_v13 }
 0x608   : > { %v3930_v18 = vadd.f32 %v2951_v9, %v1458_v17  ;;  %v3173_v22 = vpop.f32.mrb[14].mxu1  ;;  %v1152_v33 = vsel %vm817_vm3, %v3926_v12, -inf }
 0x609   : > { %1483 = vmax.xlane.f32.xlu1 %v1482_v23  ;;  %v1461_v24 = vpop.f32.mrb[15].mxu1  ;;  %v3940_v20 = vadd.f32 %v3173_v22, %v2956_v19  ;;  %v1491_v31 = vsel %vm817_vm3, %v3934_v25, -inf }
 0x60a   : > { %v3936_v26 = vadd.f32 %v2952_v16, %v1461_v24  ;;  %v1485_v27 = vsel %vm817_vm3, %v3930_v18, -inf }
 0x60b   : > { %1486 = vmax.xlane.f32.xlu0 %v1485_v27  ;;  %v1494_v32 = vsel %vm817_vm3, %v3940_v20, -inf  ;;  %v1158_v27 = vsel %vm817_vm3, %v3924_v10, -inf }
 0x60c   : > { %v1488_v30 = vsel %vm817_vm3, %v3936_v26, -inf }
 0x60d   : > { %1489 = vmax.xlane.f32.xlu1 %v1488_v30 }
 0x60f   : > { %1492 = vmax.xlane.f32.xlu0 %v1491_v31 }
 0x611   : > { %1495 = vmax.xlane.f32.xlu1 %v1494_v32 }
 0x622   : > { %1231 = vrot.lane.b32.xlu1 %v3716_v4, %s3538_s23 }
 0x625   : > { %1229 = vrot.lane.b32.xlu0 %v3720_v5, %s3538_s23 }
 0x644   : > { %1144 = vmax.xlane.f32.xlu0 %v1143_v43 }
 0x646   : > { %1141 = vmax.xlane.f32.xlu1 %v1140_v44 }
 0x648   : > { %1138 = vmax.xlane.f32.xlu0 %v1137_v50 }
 0x64c   : > { %1147 = vmax.xlane.f32.xlu0 %v1146_v29 }
 0x650   : > { %1156 = vmax.xlane.f32.xlu0 %v1155_v47 }
 0x654   : > { %1150 = vmax.xlane.f32.xlu0 %v1149_v52 }
 0x66a   : > { %1233 = vrot.lane.b32.xlu0 %v3726_v6, %s3538_s23 }
 0x690   : > { %v1475_v53 = vpop.xlane.xlu0 %1474 }
 0x691   : > { %v1497_v55 = vsub.f32 %v3894_v54, %v1475_v53 }
 0x692   : > { %v1478_v56 = vpop.xlane.xlu1 %1477 }
 0x693   : > { %v1505_v57 = vmul.f32 1.442695, %v1497_v55  ;;  %v1498_v39 = vsub.f32 %v3912_v61, %v1478_v56 }
 0x694   : > { %v1481_v48 = vpop.xlane.xlu0 %1480 }
 0x695   : > { %3370 = vpow2.f32 %v1505_v57  ;;  %v1507_v58 = vmul.f32 1.442695, %v1498_v39  ;;  %v1499_v59 = vsub.f32 %v3910_v60, %v1481_v48 }
 0x696   : > { %v1484_v62 = vpop.xlane.xlu1 %1483 }
 0x697   : > { %3372 = vpow2.f32 %v1507_v58  ;;  %v1509_v49 = vmul.f32 1.442695, %v1499_v59  ;;  %v1500_v63 = vsub.f32 %v3920_v2, %v1484_v62 }
 0x698   : > { %v3993_v0 = vpop.xlane.xlu0 %1486 }
 0x699   : > { %3374 = vpow2.f32 %v1509_v49  ;;  %v1511_v1 = vmul.f32 1.442695, %v1500_v63 }
 0x69a   : > { %v3995_v3 = vpop.xlane.xlu1 %1489 }
 0x69b   : > { %3376 = vpow2.f32 %v1511_v1 }
 0x69c   : > { %v3997_v54 = vpop.xlane.xlu0 %1492 }
 0x69e   : > { %v3999_v61 = vpop.xlane.xlu1 %1495 }
 0x69f   : > { %v4001_v8 = vpop.eup %3370  ;;  %v1504_v56 = vsub.f32 %v3940_v20, %v3999_v61 }
 0x6a0   : > { %v1230_v9 = vpop.permute.xlu0 %1229  ;;  %v1521_v60 = vsel %vm817_vm3, %v4001_v8, 0.0 }
 0x6a1   : > { %v4005_v11 = vpop.eup %3372  ;;  %1522 = vadd.xlane.f32.xlu1 %v1521_v60  ;;  %3142 = vmatprep.subr.bf16.mxu0 %v1230_v9 }
 0x6a2   : > { %v1232_v2 = vpop.permute.xlu1 %1231  ;;  %3143 = vmatpush3.bf16.msra.mxu0 %v1230_v9  ;;  %v1524_v13 = vsel %vm817_vm3, %v4005_v11, 0.0 }
 0x6a3   : > { %v4009_v14 = vpop.eup %3374  ;;  %1525 = vadd.xlane.f32.xlu0 %v1524_v13  ;;  %3144 = vmatprep.subr.bf16.mxu0 %v1232_v2 }
 0x6a4   : > { %v1527_v15 = vsel %vm817_vm3, %v4009_v14, 0.0 }
 0x6a5   : > { %v4013_v16 = vpop.eup %3376 }
 0x6a6   : > { %3145 = vmatpush3.bf16.msra.mxu0 %v1232_v2  ;;  %v1530_v17 = vsel %vm817_vm3, %v4013_v16, 0.0 }
 0x6a7   : > { %1528 = vadd.xlane.f32.xlu0 %v1527_v15 }
 0x6ab   : > { %1531 = vadd.xlane.f32.xlu0 %v1530_v17 }
 0x6b2   : > { %1235 = vrot.lane.b32.xlu1 %v3729_v7, %s3538_s23 }
 0x6d1   : > { %v1145_v19 = vpop.xlane.xlu0 %1144 }
 0x6d2   : > { %v1163_v22 = vsub.f32 %v3959_v37, %v1145_v19 }
 0x6d3   : > { %v1142_v44 = vpop.xlane.xlu1 %1141 }
 0x6d4   : > { %v1173_v23 = vmul.f32 1.442695, %v1163_v22  ;;  %v1162_v21 = vsub.f32 %v3961_v28, %v1142_v44 }
 0x6d5   : > { %v1139_v24 = vpop.xlane.xlu0 %1138 }
 0x6d6   : > { %3378 = vpow2.f32 %v1173_v23  ;;  %v1161_v30 = vsub.f32 %v3964_v41, %v1139_v24  ;;  %1159 = vmax.xlane.f32.xlu1 %v1158_v27  ;;  %v1171_v29 = vmul.f32 1.442695, %v1162_v21 }
 0x6d8   : > { %v1169_v31 = vmul.f32 1.442695, %v1161_v30 }
 0x6d9   : > { %v1148_v32 = vpop.xlane.xlu0 %1147 }
 0x6da   : > { %3380 = vpow2.f32 %v1169_v31  ;;  %1153 = vmax.xlane.f32.xlu1 %v1152_v33  ;;  %v1164_v43 = vsub.f32 %v3971_v46, %v1148_v32  ;;  %v1503_v46 = vsub.f32 %v3934_v25, %v3997_v54 }
 0x6dc   : > { %v1175_v50 = vmul.f32 1.442695, %v1164_v43 }
 0x6dd   : > { %v1157_v34 = vpop.xlane.xlu0 %1156 }
 0x6de   : > { %v1167_v51 = vsub.f32 %v3976_v45, %v1157_v34  ;;  %3382 = vpow2.f32 %v1175_v50  ;;  %v1517_v45 = vmul.f32 1.442695, %v1503_v46 }
 0x6df   : > { %3384 = vpow2.f32 %v1171_v29 }
 0x6e0   : > { %v4025_v35 = vpop.eup %3378  ;;  %v1181_v52 = vmul.f32 1.442695, %v1167_v51 }
 0x6e1   : > { %v1151_v36 = vpop.xlane.xlu0 %1150  ;;  %v1191_v37 = vsel %vm817_vm3, %v4025_v35, 0.0 }
 0x6e2   : > { %1192 = vadd.xlane.f32.xlu0 %v1191_v37  ;;  %v1165_v47 = vsub.f32 %v3981_v38, %v1151_v36  ;;  %3386 = vpow2.f32 %v1181_v52 }
 0x6e4   : > { %v4029_v40 = vpop.eup %3380  ;;  %v1177_v53 = vmul.f32 1.442695, %v1165_v47 }
 0x6e5   : > { %v1234_v42 = vpop.permute.xlu0 %1233  ;;  %v1185_v41 = vsel %vm817_vm3, %v4029_v40, 0.0 }
 0x6e6   : > { %1186 = vadd.xlane.f32.xlu0 %v1185_v41  ;;  %3146 = vmatprep.subr.bf16.mxu0 %v1234_v42  ;;  %3388 = vpow2.f32 %v1177_v53  ;;  %v1502_v41 = vsub.f32 %v3936_v26, %v3995_v3 }
 0x6e7   : > { %3147 = vmatpush3.bf16.msra.mxu0 %v1234_v42 }
 0x6e8   : > { %v4047_v28 = vpop.eup %3382  ;;  %v1515_v43 = vmul.f32 1.442695, %v1502_v41 }
 0x6e9   : > { %v1194_v38 = vsel %vm817_vm3, %v4047_v28, 0.0  ;;  %v4053_v57 = vpop.eup %3384 }
 0x6ea   : > { %v1188_v25 = vsel %vm817_vm3, %v4053_v57, 0.0 }
 0x6eb   : > { %1567 = vrot.lane.b32.xlu1 %v3716_v4, %s3539_s15  ;;  %v1501_v4 = vsub.f32 %v3930_v18, %v3993_v0  ;;  %v1519_v18 = vmul.f32 1.442695, %v1504_v56  ;;  %v4123_v56 = vld [vmem:[#allocation2 + $0x8] sm:$0xff] }
 0x6ec   : > { %v4055_v39 = vpop.eup %3386 }
 0x6ed   : > { %v1513_v55 = vmul.f32 1.442695, %v1501_v4  ;;  %v1203_v20 = vsel %vm817_vm3, %v4055_v39, 0.0 }
 0x6ef   : > { %1569 = vrot.lane.b32.xlu1 %v3726_v6, %s3539_s15  ;;  %3390 = vpow2.f32 %v1513_v55 }
 0x6f0   : > { %3392 = vpow2.f32 %v1517_v45  ;;  %v4059_v48 = vpop.eup %3388 }
 0x6f1   : > { %3394 = vpow2.f32 %v1519_v18  ;;  %v1197_v58 = vsel %vm817_vm3, %v4059_v48, 0.0 }
 0x6f9   : > { %v4065_v59 = vpop.eup %3390 }
 0x6fa   : > { %v1533_v62 = vsel %vm817_vm3, %v4065_v59, 0.0  ;;  %v4069_v49 = vpop.eup %3392 }
 0x6fb   : > { %v1539_v63 = vsel %vm817_vm3, %v4069_v49, 0.0  ;;  %v4073_v0 = vpop.eup %3394 }
 0x6fc   : > { %1565 = vrot.lane.b32.xlu0 %v3720_v5, %s3539_s15  ;;  %v1542_v1 = vsel %vm817_vm3, %v4073_v0, 0.0 }
 0x713   : > { %1195 = vadd.xlane.f32.xlu1 %v1194_v38 }
 0x717   : > { %1189 = vadd.xlane.f32.xlu1 %v1188_v25 }
 0x71b   : > { %1204 = vadd.xlane.f32.xlu1 %v1203_v20  ;;  %1198 = vadd.xlane.f32.xlu0 %v1197_v58 }
 0x71f   : > { %1534 = vadd.xlane.f32.xlu0 %v1533_v62 }
 0x723   : > { %1540 = vadd.xlane.f32.xlu0 %v1539_v63 }
 0x727   : > { %1543 = vadd.xlane.f32.xlu0 %v1542_v1 }
 0x72e   : > { %v1523_v54 = vpop.xlane.xlu1 %1522 }
 0x72f   : > { %3396 = vrcp.f32 %v1523_v54 }
 0x730   : > { %v1526_v61 = vpop.xlane.xlu0 %1525 }
 0x731   : > { %3398 = vrcp.f32 %v1526_v61 }
 0x732   : > { %v1236_v9 = vpop.permute.xlu1 %1235 }
 0x733   : > { %3148 = vmatprep.subr.bf16.mxu0 %v1236_v9 }
 0x734   : > { %3149 = vmatpush3.bf16.msra.mxu0 %v1236_v9  ;;  %v1529_v60 = vpop.xlane.xlu0 %1528 }
 0x735   : > { %3400 = vrcp.f32 %v1529_v60 }
 0x738   : > { %v1532_v2 = vpop.xlane.xlu0 %1531 }
 0x739   : > { %v3397_v13 = vpop.eup %3396  ;;  %3402 = vrcp.f32 %v1532_v2 }
 0x73a   : > { %v4078_v17 = vmul.f32 %v3397_v13, %v4001_v8 }
 0x73b   : > { %v3399_v15 = vpop.eup %3398 }
 0x73c   : > { %v4081_v19 = vmul.f32 %v3399_v15, %v4005_v11 }
 0x73d   : > { %1712 = vrot.lane.b32.xlu0 %v3720_v5, %s3540_s16 }
 0x73e   : > { %v1561_v22 = vpack.c.bf16 %v4081_v19, %v4078_v17 }
 0x73f   : > { %v3401_v23 = vpop.eup %3400 }
 0x740   : > { %v4090_v27 = vmul.f32 %v3401_v23, %v4009_v14 }
 0x741   : > { %1704 = vrot.lane.b32.xlu0 %v3720_v5, %s3541_s17 }
 0x743   : > { %v3403_v24 = vpop.eup %3402 }
 0x744   : > { %v4093_v8 = vmul.f32 %v3403_v24, %v4013_v16 }
 0x745   : > { %1708 = vrot.lane.b32.xlu0 %v3726_v6, %s3541_s17 }
 0x746   : > { %v1562_v11 = vpack.c.bf16 %v4093_v8, %v4090_v27 }
 0x763   : > { %v1160_v30 = vpop.xlane.xlu1 %1159 }
 0x764   : > { %v1168_v31 = vsub.f32 %v3924_v10, %v1160_v30 }
 0x766   : > { %v1183_v32 = vmul.f32 1.442695, %v1168_v31 }
 0x767   : > { %v1154_v33 = vpop.xlane.xlu1 %1153 }
 0x768   : > { %3404 = vpow2.f32 %v1183_v32  ;;  %v1166_v5 = vsub.f32 %v3926_v12, %v1154_v33 }
 0x76a   : > { %v1179_v34 = vmul.f32 1.442695, %v1166_v5 }
 0x76b   : > { %v1568_v12 = vpop.permute.xlu1 %1567 }
 0x76c   : > { %3406 = vpow2.f32 %v1179_v34 }
 0x76d   : > { %3408 = vpow2.f32 %v1515_v43 }
 0x76f   : > { %v1193_v14 = vpop.xlane.xlu0 %1192  ;;  %v1570_v44 = vpop.permute.xlu1 %1569 }
 0x772   : > { %v4101_v36 = vpop.eup %3404 }
 0x773   : > { %v1187_v16 = vpop.xlane.xlu0 %1186  ;;  %v1206_v6 = vsel %vm817_vm3, %v4101_v36, 0.0 }
 0x774   : > { %1207 = vadd.xlane.f32.xlu1 %v1206_v6 }
 0x776   : > { %v4105_v37 = vpop.eup %3406 }
 0x777   : > { %v1566_v42 = vpop.permute.xlu0 %1565  ;;  %v1200_v10 = vsel %vm817_vm3, %v4105_v37, 0.0  ;;  %v4113_v51 = vpop.eup %3408 }
 0x778   : > { %1201 = vadd.xlane.f32.xlu1 %v1200_v10  ;;  %3174 = vmatprep.subr.bf16.mxu0 %v1566_v42  ;;  %v1536_v47 = vsel %vm817_vm3, %v4113_v51, 0.0 }
 0x789   : > { %1571 = vrot.lane.b32.xlu1 %v3729_v7, %s3539_s15  ;;  %s3544_s15 = smov 16  }
 0x7a0   : > { %v1196_v21 = vpop.xlane.xlu1 %1195 }
 0x7a1   : > { %3410 = vrcp.f32 %v1196_v21 }
 0x7a2   : > { %3412 = vrcp.f32 %v1187_v16 }
 0x7a3   : > { %3414 = vrcp.f32 %v1193_v14 }
 0x7a4   : > { %v1190_v50 = vpop.xlane.xlu1 %1189 }
 0x7a5   : > { %3416 = vrcp.f32 %v1190_v50 }
 0x7ab   : > { %v3411_v29 = vpop.eup %3410 }
 0x7ac   : > { %v3413_v7 = vpop.eup %3412  ;;  %v1220_v26 = vmul.f32 %v3411_v29, %v4047_v28  ;;  %v1199_v28 = vpop.xlane.xlu0 %1198 }
 0x7ad   : > { %1537 = vadd.xlane.f32.xlu1 %v1536_v47  ;;  %v3415_v52 = vpop.eup %3414  ;;  %v1217_v3 = vmul.f32 %v3413_v7, %v4029_v40  ;;  %v4127_v40 = vld [vmem:[#allocation2 + $0x10] sm:$0xff] }
 0x7ae   : > { %v1219_v55 = vmul.f32 %v3415_v52, %v4025_v35  ;;  %v4131_v35 = vld [vmem:[#allocation2 + $0x18] sm:$0xff] }
 0x7af   : > { %v3417_v4 = vpop.eup %3416 }
 0x7b0   : > { %v1218_v53 = vmul.f32 %v3417_v4, %v4053_v57  ;;  %v1226_v45 = vpack.c.bf16 %v1220_v26, %v1219_v55  ;;  %v1535_v38 = vpop.xlane.xlu0 %1534  ;;  %v1205_v57 = vpop.xlane.xlu1 %1204 }
 0x7b2   : > { %v1225_v46 = vpack.c.bf16 %v1218_v53, %v1217_v3 }
 0x7b4   : > { %3150 = vmatprep.mubr.msk.bf16.mxu0 %vm817_vm3, %v1225_v46  ;;  %v1541_v18 = vpop.xlane.xlu0 %1540 }
 0x7b5   : > { %3151 = vmatmul.mubr.msk.bf16.vlgmr.msra.gmra.mrb[24].mxu0 %vm817_vm3, %v1226_v45 }
 0x7b6   : > { %3175 = vmatpush3.bf16.msra.mxu0 %v1566_v42 }
 0x7b7   : > { %3176 = vmatprep.subr.bf16.mxu0 %v1568_v12 }
 0x7b8   : > { %v1544_v20 = vpop.xlane.xlu0 %1543 }
 0x7ba   : > { %3177 = vmatpush3.bf16.msra.mxu0 %v1568_v12 }
 0x7bb   : > { %3178 = vmatprep.subr.bf16.mxu0 %v1570_v44 }
 0x7bc   : > { %v1713_v63 = vpop.permute.xlu0 %1712 }
 0x7bd   : > { %v1733_v30 = vsel %vm727_vm2, %v1713_v63, 0 }
 0x7be   : > { %3179 = vmatpush3.bf16.msra.mxu0 %v1570_v44  ;;  %1714 = vrot.lane.b32.xlu1 %v4123_v56, %s3540_s16 }
 0x7c0   : > { %v1705_v6 = vpop.permute.xlu0 %1704 }
 0x7c2   : > { %1716 = vrot.lane.b32.xlu1 %v4127_v40, %s3540_s16 }
 0x7c6   : > { %1718 = vrot.lane.b32.xlu1 %v4131_v35, %s3540_s16 }
 0x7ca   : > { %1706 = vrot.lane.b32.xlu1 %v4123_v56, %s3541_s17 }
 0x7ce   : > { %1710 = vrot.lane.b32.xlu1 %v4131_v35, %s3541_s17 }
 0x801   : > { %v1208_v25 = vpop.xlane.xlu1 %1207 }
 0x802   : > { %3418 = vrcp.f32 %v1208_v25  ;;  %v2984_v25 = vld [vmem:[%s4638_s4 + $0x60] sm:$0xff]  }
 0x803   : > { %3420 = vrcp.f32 %v1199_v28 }
 0x804   : > { %3422 = vrcp.f32 %v1205_v57 }
 0x805   : > { %v1202_v58 = vpop.xlane.xlu1 %1201 }
 0x806   : > { %3424 = vrcp.f32 %v1202_v58  ;;  %v2959_v58 = vunpack.c.l.bf16 %v2984_v25 }
 0x807   : > { %3426 = vrcp.f32 %v1544_v20  ;;  %v2985_v20 = vld [vmem:[%s4638_s4 + $0x68] sm:$0xff]  }
 0x808   : > { %3428 = vrcp.f32 %v1535_v38 }
 0x809   : > { %v1572_v62 = vpop.permute.xlu1 %1571  ;;  %3430 = vrcp.f32 %v1541_v18 }
 0x80a   : > { %3180 = vmatprep.subr.bf16.mxu0 %v1572_v62 }
 0x80b   : > { %3181 = vmatpush3.bf16.msra.mxu0 %v1572_v62  ;;  %v2963_v62 = vunpack.c.l.bf16 %v2985_v20 }
 0x80c   : > { %3282 = vmatprep.subr.msk.bf16.mxu0 %vm727_vm2, %v1713_v63  ;;  %v3419_v1 = vpop.eup %3418 }
 0x80d   : > { %v3421_v54 = vpop.eup %3420  ;;  %v1224_v60 = vmul.f32 %v3419_v1, %v4101_v36  ;;  %v2960_v1 = vunpack.c.h.bf16 %v2984_v25 }
 0x80e   : > { %v3423_v61 = vpop.eup %3422  ;;  %v1221_v2 = vmul.f32 %v3421_v54, %v4059_v48 }
 0x80f   : > { %v1223_v15 = vmul.f32 %v3423_v61, %v4055_v39 }
 0x810   : > { %v3425_v9 = vpop.eup %3424 }
 0x811   : > { %v1222_v13 = vmul.f32 %v3425_v9, %v4105_v37  ;;  %v1228_v24 = vpack.c.bf16 %v1224_v60, %v1223_v15  ;;  %v3427_v17 = vpop.eup %3426  ;;  %v1709_v37 = vpop.permute.xlu0 %1708 }
 0x813   : > { %v1227_v23 = vpack.c.bf16 %v1222_v13, %v1221_v2  ;;  %v2964_v13 = vunpack.c.h.bf16 %v2985_v20 }
 0x815   : > { %3154 = vmatprep.mubr.msk.bf16.mxu0 %vm817_vm3, %v1227_v23 }
 0x816   : > { %3155 = vmatmul.mubr.msk.bf16.gmra.mrb[28].mxu0 %vm817_vm3, %v1228_v24  ;;  %v2986_v24 = vld [vmem:[%s4638_s4 + $0x70] sm:$0xff]  }
 0x817   : > { %3182 = vmatprep.mubr.msk.bf16.mxu0 %vm817_vm3, %v1561_v22  ;;  %v3429_v22 = vpop.eup %3428 }
 0x818   : > { %v3431_v27 = vpop.eup %3430  ;;  %v1557_v32 = vmul.f32 %v3429_v22, %v4065_v59  ;;  %v2987_v22 = vld [vmem:[%s4638_s4 + $0x78] sm:$0xff]  }
 0x819   : > { %v1559_v34 = vmul.f32 %v3431_v27, %v4069_v49 }
 0x81e   : > { %3183 = vmatmul.mubr.msk.bf16.vlgmr.msra.gmra.mrb[32].mxu0 %vm817_vm3, %v1562_v11  ;;  %v1560_v11 = vmul.f32 %v3427_v17, %v4073_v0  ;;  %v2967_v17 = vunpack.c.l.bf16 %v2986_v24 }
 0x81f   : > { %3191 = vmatpush3.bf16.xpose.msra.mxu0 %v1733_v30 }
 0x820   : > { %v1564_v16 = vpack.c.bf16 %v1560_v11, %v1559_v34 }
 0x83a   : > { %v1538_v39 = vpop.xlane.xlu1 %1537 }
 0x83b   : > { %3432 = vrcp.f32 %v1538_v39 }
 0x83e   : > { %v1715_v48 = vpop.permute.xlu1 %1714 }
 0x83f   : > { %v1736_v31 = vsel %vm727_vm2, %v1715_v48, 0  ;;  %3283 = vmatprep.subr.msk.bf16.mxu0 %vm727_vm2, %v1715_v48 }
 0x840   : > { %3193 = vmatpush3.bf16.xpose.msra.mxu0 %v1736_v31 }
 0x842   : > { %v1717_v19 = vpop.permute.xlu1 %1716 }
 0x843   : > { %3284 = vmatprep.subr.msk.bf16.mxu0 %vm727_vm2, %v1717_v19  ;;  %v1739_v5 = vsel %vm727_vm2, %v1717_v19, 0  ;;  %v2968_v19 = vunpack.c.h.bf16 %v2986_v24 }
 0x845   : > { %v3433_v8 = vpop.eup %3432 }
 0x846   : > { %v1558_v33 = vmul.f32 %v3433_v8, %v4113_v51  ;;  %v1719_v14 = vpop.permute.xlu1 %1718  ;;  %v2972_v8 = vunpack.c.h.bf16 %v2987_v22 }
 0x847   : > { %v1742_v59 = vsel %vm727_vm2, %v1719_v14, 0 }
 0x848   : > { %3195 = vmatpush3.bf16.xpose.msra.mxu0 %v1739_v5  ;;  %v1563_v36 = vpack.c.bf16 %v1558_v33, %v1557_v32  ;;  %v2971_v33 = vunpack.c.l.bf16 %v2987_v22 }
 0x849   : > { %3285 = vmatprep.subr.msk.bf16.mxu0 %vm727_vm2, %v1719_v14 }
 0x84a   : > { %3186 = vmatprep.mubr.msk.bf16.mxu0 %vm817_vm3, %v1563_v36  ;;  %v1707_v0 = vpop.permute.xlu1 %1706 }
 0x84b   : > { %3187 = vmatmul.mubr.msk.bf16.gmra.mrb[36].mxu0 %vm817_vm3, %v1564_v16 }
 0x84c   : > { %3198 = vmatprep.mubr.msk.bf16.mxu0 %vm727_vm2, %v1705_v6 }
 0x84e   : > { %v1711_v49 = vpop.permute.xlu1 %1710 }
 0x850   : > { %3197 = vmatpush3.bf16.xpose.msra.mxu0 %v1742_v59 }
 0x857   : > { %3199 = vmatmul.mubr.msk.bf16.vlgmr.msra.gmra.mrb[40].mxu0 %vm727_vm2, %v1707_v0 }
 0x858   : > { %3202 = vmatprep.mubr.msk.bf16.mxu0 %vm727_vm2, %v1709_v37 }
 0x85f   : > { %3203 = vmatmul.mubr.msk.bf16.gmra.mrb[44].mxu0 %vm727_vm2, %v1711_v49 }
 0x888   : > { %v4171_v42 = vpop.f32.mrb[24].mxu0 }
 0x889   : > { %v4173_v10 = vpop.f32.mrb[25].mxu0 }
 0x88a   : > { %v4175_v12 = vpop.f32.mrb[26].mxu0 }
 0x88b   : > { %v1319_v41 = vpack.c.bf16 %v4175_v12, %v4171_v42  ;;  %v4179_v43 = vpop.f32.mrb[27].mxu0 }
 0x88c   : > { %v1318_v44 = vpack.c.bf16 %v4179_v43, %v4173_v10 }
 0x8e9   : > { %v4183_v21 = vpop.f32.mrb[28].mxu0 }
 0x8ea   : > { %v4185_v50 = vpop.f32.mrb[29].mxu0 }
 0x8eb   : > { %v4187_v51 = vpop.f32.mrb[30].mxu0 }
 0x8ec   : > { %v1321_v29 = vpack.c.bf16 %v4187_v51, %v4183_v21  ;;  %v4191_v47 = vpop.f32.mrb[31].mxu0 }
 0x8ed   : > { %v1320_v7 = vpack.c.bf16 %v4191_v47, %v4185_v50 }
 0x8f1   : > { %v4195_v52 = vpop.f32.mrb[32].mxu0 }
 0x8f2   : > { %v4197_v4 = vpop.f32.mrb[33].mxu0 }
 0x8f3   : > { %v4199_v26 = vpop.f32.mrb[34].mxu0 }
 0x8f4   : > { %v1655_v3 = vpack.c.bf16 %v4199_v26, %v4195_v52  ;;  %v4203_v53 = vpop.f32.mrb[35].mxu0 }
 0x8f5   : > { %v1654_v55 = vpack.c.bf16 %v4203_v53, %v4197_v4 }
 0x91e   : > { %v4207_v46 = vpop.f32.mrb[36].mxu0 }
 0x91f   : > { %v4209_v45 = vpop.f32.mrb[37].mxu0 }
 0x920   : > { %v4211_v28 = vpop.f32.mrb[38].mxu0 }
 0x921   : > { %v1657_v38 = vpack.c.bf16 %v4211_v28, %v4207_v46  ;;  %v4215_v57 = vpop.f32.mrb[39].mxu0 }
 0x922   : > { %v1656_v18 = vpack.c.bf16 %v4215_v57, %v4209_v45 }
 0x92a   : > { %v3200_v63 = vpop.f32.mrb[40].mxu0 }
 0x92b   : > { %v1778_v54 = vpop.f32.mrb[41].mxu0  ;;  %v1787_v2 = vadd.f32 %v3200_v63, %v2963_v62 }
 0x92c   : > { %v1779_v61 = vadd.f32 %v2959_v58, %v1778_v54  ;;  %v3201_v9 = vpop.f32.mrb[42].mxu0 }
 0x92d   : > { %v1781_v60 = vpop.f32.mrb[43].mxu0  ;;  %v1790_v39 = vadd.f32 %v3201_v9, %v2964_v13  ;;  %v1815_v31 = vsel %vm817_vm3, %v1787_v2, -inf }
 0x92e   : > { %v1782_v15 = vadd.f32 %v2960_v1, %v1781_v60  ;;  %v1809_v23 = vsel %vm817_vm3, %v1779_v61, -inf }
 0x92f   : > { %1810 = vmax.xlane.f32.xlu0 %v1809_v23  ;;  %v1818_v14 = vsel %vm817_vm3, %v1790_v39, -inf }
 0x930   : > { %v1812_v30 = vsel %vm817_vm3, %v1782_v15, -inf }
 0x931   : > { %1813 = vmax.xlane.f32.xlu1 %v1812_v30 }
 0x932   : > { %v3204_v48 = vpop.f32.mrb[44].mxu0 }
 0x933   : > { %1816 = vmax.xlane.f32.xlu0 %v1815_v31  ;;  %v1794_v27 = vpop.f32.mrb[45].mxu0  ;;  %v1803_v6 = vadd.f32 %v3204_v48, %v2971_v33 }
 0x934   : > { %v3205_v11 = vpop.f32.mrb[46].mxu0  ;;  %v1795_v5 = vadd.f32 %v2967_v17, %v1794_v27 }
 0x935   : > { %v1797_v32 = vpop.f32.mrb[47].mxu0  ;;  %v4237_v36 = vadd.f32 %v3205_v11, %v2972_v8  ;;  %v1827_v37 = vsel %vm817_vm3, %v1803_v6, -inf }
 0x936   : > { %v4234_v34 = vadd.f32 %v2968_v19, %v1797_v32  ;;  %v1821_v59 = vsel %vm817_vm3, %v1795_v5, -inf }
 0x937   : > { %1819 = vmax.xlane.f32.xlu0 %v1818_v14  ;;  %v1830_v0 = vsel %vm817_vm3, %v4237_v36, -inf }
 0x938   : > { %v1824_v16 = vsel %vm817_vm3, %v4234_v34, -inf }
 0x939   : > { %1825 = vmax.xlane.f32.xlu1 %v1824_v16 }
 0x93b   : > { %1822 = vmax.xlane.f32.xlu0 %v1821_v59 }
 0x93d   : > { %1831 = vmax.xlane.f32.xlu1 %v1830_v0 }
 0x93f   : > { %1828 = vmax.xlane.f32.xlu0 %v1827_v37 }
 0x9bc   : > { %v1811_v49 = vpop.xlane.xlu0 %1810 }
 0x9bd   : > { %v1833_v25 = vsub.f32 %v1779_v61, %v1811_v49 }
 0x9be   : > { %v1814_v20 = vpop.xlane.xlu1 %1813 }
 0x9bf   : > { %v1841_v63 = vmul.f32 1.442695, %v1833_v25  ;;  %v1834_v1 = vsub.f32 %v1782_v15, %v1814_v20 }
 0x9c0   : > { %v1817_v58 = vpop.xlane.xlu0 %1816 }
 0x9c1   : > { %v1835_v62 = vsub.f32 %v1787_v2, %v1817_v58  ;;  %v1843_v13 = vmul.f32 1.442695, %v1834_v1 }
 0x9c3   : > { %v1845_v54 = vmul.f32 1.442695, %v1835_v62 }
 0x9c4   : > { %v1820_v9 = vpop.xlane.xlu0 %1819 }
 0x9c5   : > { %3434 = vpow2.f32 %v1845_v54  ;;  %v1836_v60 = vsub.f32 %v1790_v39, %v1820_v9 }
 0x9c6   : > { %3436 = vpow2.f32 %v1841_v63  ;;  %v1826_v16 = vpop.xlane.xlu1 %1825 }
 0x9c7   : > { %v1847_v23 = vmul.f32 1.442695, %v1836_v60 }
 0x9c8   : > { %v1823_v24 = vpop.xlane.xlu0 %1822 }
 0x9c9   : > { %3438 = vpow2.f32 %v1847_v23  ;;  %v1837_v30 = vsub.f32 %v1795_v5, %v1823_v24 }
 0x9ca   : > { %3440 = vpow2.f32 %v1843_v13  ;;  %v1832_v59 = vpop.xlane.xlu1 %1831 }
 0x9cb   : > { %v1849_v61 = vmul.f32 1.442695, %v1837_v30  ;;  %v1840_v0 = vsub.f32 %v4237_v36, %v1832_v59 }
 0x9cc   : > { %v1829_v48 = vpop.xlane.xlu0 %1828 }
 0x9cd   : > { %v1839_v31 = vsub.f32 %v1803_v6, %v1829_v48  ;;  %v3515_v6 = vld [vmem:[#allocation2] sm:$0xff] }
 0x9cf   : > { %v4245_v17 = vpop.eup %3434  ;;  %v1853_v19 = vmul.f32 1.442695, %v1839_v31 }
 0x9d0   : > { %v1863_v2 = vsel %vm817_vm3, %v4245_v17, 0.0  ;;  %v3437_v15 = vpop.eup %3436 }
 0x9d1   : > { %3442 = vpow2.f32 %v1853_v19  ;;  %1864 = vadd.xlane.f32.xlu0 %v1863_v2  ;;  %v1857_v22 = vsel %vm817_vm3, %v3437_v15, 0.0 }
 0x9d2   : > { %3444 = vpow2.f32 %v1849_v61 }
 0x9d3   : > { %v4249_v39 = vpop.eup %3438 }
 0x9d4   : > { %v1866_v27 = vsel %vm817_vm3, %v4249_v39, 0.0  ;;  %v3441_v8 = vpop.eup %3440 }
 0x9d5   : > { %1858 = vadd.xlane.f32.xlu0 %v1857_v22  ;;  %1867 = vadd.xlane.f32.xlu1 %v1866_v27  ;;  %v1860_v11 = vsel %vm817_vm3, %v3441_v8, 0.0  ;;  %v3311_v22 = vld [vmem:[%s4639_s5 + $0x8] sm:$0xff]  }
 0x9d9   : > { %1861 = vadd.xlane.f32.xlu1 %v1860_v11 }
 0x9db   : > { %v4255_v32 = vpop.eup %3442 }
 0x9dc   : > { %v1875_v33 = vsel %vm817_vm3, %v4255_v32, 0.0  ;;  %v4259_v5 = vpop.eup %3444 }
 0x9dd   : > { %1876 = vadd.xlane.f32.xlu0 %v1875_v33  ;;  %v1869_v14 = vsel %vm817_vm3, %v4259_v5, 0.0 }
 0x9e1   : > { %1870 = vadd.xlane.f32.xlu0 %v1869_v14 }
 0x9ea   : > { %1903 = vrot.lane.b32.xlu1 %v4123_v56, %s3542_s29  ;;  %v1838_v56 = vsub.f32 %v4234_v34, %v1826_v16 }
 0x9ec   : > { %v1851_v37 = vmul.f32 1.442695, %v1838_v56 }
 0x9ee   : > { %1905 = vrot.lane.b32.xlu1 %v4127_v40, %s3542_s29  ;;  %v1855_v40 = vmul.f32 1.442695, %v1840_v0 }
 0x9f0   : > { %3446 = vpow2.f32 %v1855_v40 }
 0x9f1   : > { %3448 = vpow2.f32 %v1851_v37 }
 0x9f7   : > { %1901 = vrot.lane.b32.xlu0 %v3515_v6, %s3542_s29 }
 0x9fa   : > { %v4277_v10 = vpop.eup %3446 }
 0x9fb   : > { %1326 = vrot.lane.b32.xlu0 %v1318_v44, %s3543_s30  ;;  %v1878_v43 = vsel %vm817_vm3, %v4277_v10, 0.0  ;;  %v4281_v44 = vpop.eup %3448 }
 0x9fc   : > { %v1872_v4 = vsel %vm817_vm3, %v4281_v44, 0.0 }
 0x9ff   : > { %1662 = vrot.lane.b32.xlu0 %v1654_v55, %s3544_s15 }
 0xa03   : > { %1330 = vrot.lane.b32.xlu0 %v1320_v7, %s3543_s30 }
 0xa12   : > { %1879 = vadd.xlane.f32.xlu1 %v1878_v43 }
 0xa16   : > { %1873 = vadd.xlane.f32.xlu1 %v1872_v4 }
 0xa27   : > { %1907 = vrot.lane.b32.xlu1 %v4131_v35, %s3542_s29 }
 0xa2b   : > { %1328 = vrot.lane.b32.xlu1 %v1319_v41, %s3543_s30 }
 0xa2f   : > { %1664 = vrot.lane.b32.xlu1 %v1655_v3, %s3544_s15 }
 0xa33   : > { %1332 = vrot.lane.b32.xlu1 %v1321_v29, %s3543_s30 }
 0xa5e   : > { %v1865_v50 = vpop.xlane.xlu0 %1864 }
 0xa62   : > { %v1868_v47 = vpop.xlane.xlu1 %1867  ;;  %v1859_v7 = vpop.xlane.xlu0 %1858 }
 0xa63   : > { %3450 = vrcp.f32 %v1859_v7 }
 0xa66   : > { %v1862_v53 = vpop.xlane.xlu1 %1861 }
 0xa67   : > { %3452 = vrcp.f32 %v1862_v53 }
 0xa68   : > { %3454 = vrcp.f32 %v1868_v47 }
 0xa69   : > { %3456 = vrcp.f32 %v1865_v50 }
 0xa6a   : > { %v1877_v35 = vpop.xlane.xlu0 %1876  ;;  %v1904_v12 = vpop.permute.xlu1 %1903 }
 0xa6d   : > { %v3451_v34 = vpop.eup %3450 }
 0xa6e   : > { %v1871_v55 = vpop.xlane.xlu0 %1870  ;;  %v1889_v36 = vmul.f32 %v3451_v34, %v3437_v15  ;;  %v1906_v51 = vpop.permute.xlu1 %1905 }
 0xa71   : > { %v3453_v42 = vpop.eup %3452 }
 0xa72   : > { %v1902_v41 = vpop.permute.xlu0 %1901  ;;  %v1890_v49 = vmul.f32 %v3453_v42, %v3441_v8  ;;  %v3455_v25 = vpop.eup %3454 }
 0xa73   : > { %3206 = vmatprep.subr.bf16.mxu1 %v1902_v41  ;;  %v3457_v58 = vpop.eup %3456  ;;  %v1892_v62 = vmul.f32 %v3455_v25, %v4249_v39  ;;  %v3310_v39 = vld [vmem:[%s4639_s5] sm:$0xff]  }
 0xa74   : > { %3207 = vmatpush3.bf16.msra.mxu1 %v1902_v41  ;;  %v1897_v52 = vpack.c.bf16 %v1890_v49, %v1889_v36  ;;  %v1891_v1 = vmul.f32 %v3457_v58, %v4245_v17  ;;  %v3518_v49 = vld [vmem:[%s3632_s14 + $0x8] sm:$0xff] }
 0xa75   : > { %3208 = vmatprep.subr.bf16.mxu1 %v1904_v12 }
 0xa76   : > { %3214 = vmatprep.mubr.msk.bf16.mxu1 %vm817_vm3, %v1897_v52  ;;  %v1327_v21 = vpop.permute.xlu0 %1326  ;;  %v1898_v54 = vpack.c.bf16 %v1892_v62, %v1891_v1 }
 0xa77   : > { %1339 = vst.msk [vmem:[#allocation3] sm:$0xff] %vm1338_vm4, %v1327_v21 }
 0xa78   : > { %3209 = vmatpush3.bf16.msra.mxu1 %v1904_v12  ;;  %v3517_v12 = vld [vmem:[%s3632_s14 + $0x10] sm:$0xff] }
 0xa79   : > { %3210 = vmatprep.subr.bf16.mxu1 %v1906_v51 }
 0xa7a   : > { %v1663_v29 = vpop.permute.xlu0 %1662 }
 0xa7b   : > { %1675 = vst.msk [vmem:[#allocation3] sm:$0xff] %vm1674_vm5, %v1663_v29 }
 0xa7c   : > { %3211 = vmatpush3.bf16.msra.mxu1 %v1906_v51 }
 0xa7e   : > { %v1331_v26 = vpop.permute.xlu0 %1330 }
 0xa7f   : > { %1341 = vst.msk [vmem:[#allocation3 + $0x10] sm:$0xff] %vm1338_vm4, %v1331_v26 }
 0xa9f   : > { %v1880_v3 = vpop.xlane.xlu1 %1879 }
 0xaa0   : > { %3458 = vrcp.f32 %v1880_v3  ;;  %v3519_v3 = vld [vmem:[%s3632_s14 + $0x18] sm:$0xff] }
 0xaa1   : > { %3460 = vrcp.f32 %v1871_v55  ;;  %v3516_v55 = vld [vmem:[%s3632_s14] sm:$0xff] }
 0xaa2   : > { %3462 = vrcp.f32 %v1877_v35 }
 0xaa3   : > { %v1874_v20 = vpop.xlane.xlu1 %1873 }
 0xaa4   : > { %3464 = vrcp.f32 %v1874_v20 }
 0xaa7   : > { %v1908_v63 = vpop.permute.xlu1 %1907 }
 0xaa8   : > { %3212 = vmatprep.subr.bf16.mxu1 %v1908_v63 }
 0xaa9   : > { %3213 = vmatpush3.bf16.msra.mxu1 %v1908_v63 }
 0xaaa   : > { %v3459_v9 = vpop.eup %3458  ;;  %3222 = vmatprep.subr.bf16.mxu1 %v3310_v39 }
 0xaab   : > { %v1329_v60 = vpop.permute.xlu1 %1328  ;;  %v3461_v13 = vpop.eup %3460  ;;  %v1896_v30 = vmul.f32 %v3459_v9, %v4277_v10 }
 0xaac   : > { %1340 = vst.msk [vmem:[#allocation3 + $0x8] sm:$0xff] %vm1338_vm4, %v1329_v60  ;;  %3215 = vmatmul.mubr.msk.bf16.vlgmr.msra.gmra.mrb[16].mxu1 %vm817_vm3, %v1898_v54  ;;  %v3463_v23 = vpop.eup %3462  ;;  %v1893_v31 = vmul.f32 %v3461_v13, %v4259_v5  ;;  %v3520_v60 = vld [vmem:[%s3632_s14 + $0x20] sm:$0xff] }
 0xaad   : > { %v1895_v17 = vmul.f32 %v3463_v23, %v4255_v32  ;;  %3223 = vmatpush3.bf16.msra.mxu1 %v3310_v39  ;;  %v3521_v23 = vld [vmem:[%s3632_s14 + $0x28] sm:$0xff] }
 0xaae   : > { %v3465_v24 = vpop.eup %3464  ;;  %3224 = vmatprep.subr.bf16.mxu1 %v3311_v22 }
 0xaaf   : > { %v1665_v48 = vpop.permute.xlu1 %1664  ;;  %v1894_v61 = vmul.f32 %v3465_v24, %v4281_v44  ;;  %v1900_v2 = vpack.c.bf16 %v1896_v30, %v1895_v17  ;;  %v2866_v44 = vld [vmem:[%s4640_s6] ss:$0 sm:$0xff]  ;;  %v3523_v17 = vld [vmem:[%s3632_s14 + $0x30] sm:$0xff] }
 0xab0   : > { %1676 = vst.msk [vmem:[#allocation3 + $0x8] sm:$0xff] %vm1674_vm5, %v1665_v48  ;;  %v3522_v48 = vld [vmem:[%s3632_s14 + $0x38] sm:$0xff] }
 0xab1   : > { %v1899_v19 = vpack.c.bf16 %v1894_v61, %v1893_v31  ;;  %3225 = vmatpush3.bf16.msra.mxu1 %v3311_v22 }
 0xab3   : > { %v1333_v15 = vpop.permute.xlu1 %1332  ;;  %3218 = vmatprep.mubr.msk.bf16.mxu1 %vm817_vm3, %v1899_v19 }
 0xab4   : > { %1342 = vst.msk [vmem:[#allocation3 + $0x18] sm:$0xff] %vm1338_vm4, %v1333_v15  ;;  %3219 = vmatmul.mubr.msk.bf16.gmra.mrb[20].mxu1 %vm817_vm3, %v1900_v2 }
 0xb7f   : > { %v3216_v27 = vpop.f32.mrb[16].mxu1 }
 0xb80   : > { %v1959_v8 = vpop.f32.mrb[17].mxu1 }
 0xb81   : > { %v3217_v11 = vpop.f32.mrb[18].mxu1 }
 0xb82   : > { %v1991_v32 = vpack.c.bf16 %v3217_v11, %v3216_v27  ;;  %v1962_v33 = vpop.f32.mrb[19].mxu1 }
 0xb83   : > { %v1990_v5 = vpack.c.bf16 %v1962_v33, %v1959_v8 }
 0xb84   : > { %2000 = vrot.lane.b32.xlu1 %v1991_v32, %s3545_s20 }
 0xb85   : > { %1998 = vrot.lane.b32.xlu0 %v1990_v5, %s3545_s20 }
 0xb87   : > { %v3220_v14 = vpop.f32.mrb[20].mxu1 }
 0xb88   : > { %1668 = vrot.lane.b32.xlu1 %v1657_v38, %s3544_s15  ;;  %v1975_v16 = vpop.f32.mrb[21].mxu1 }
 0xb89   : > { %1666 = vrot.lane.b32.xlu0 %v1656_v18, %s3544_s15  ;;  %v3221_v6 = vpop.f32.mrb[22].mxu1 }
 0xb8a   : > { %v1993_v59 = vpack.c.bf16 %v3221_v6, %v3220_v14  ;;  %v1978_v0 = vpop.f32.mrb[23].mxu1 }
 0xb8b   : > { %v1992_v56 = vpack.c.bf16 %v1978_v0, %v1975_v16 }
 0xb8c   : > { %2004 = vrot.lane.b32.xlu1 %v1993_v59, %s3545_s20 }
 0xb8d   : > { %2002 = vrot.lane.b32.xlu0 %v1992_v56, %s3545_s20 }
 0xbf6   : > { %v2001_v40 = vpop.permute.xlu1 %2000 }
 0xbf7   : > { %2012 = vst.msk [vmem:[#allocation3 + $0x8] sm:$0xff] %vm2010_vm6, %v2001_v40  ;;  %v1999_v37 = vpop.permute.xlu0 %1998 }
 0xbf8   : > { %2011 = vst.msk [vmem:[#allocation3] sm:$0xff] %vm2010_vm6, %v1999_v37 }
 0xbfa   : > { %v1669_v10 = vpop.permute.xlu1 %1668 }
 0xbfb   : > { %1678 = vst.msk [vmem:[#allocation3 + $0x18] sm:$0xff] %vm1674_vm5, %v1669_v10  ;;  %v1667_v46 = vpop.permute.xlu0 %1666 }
 0xbfc   : > { %1677 = vst.msk [vmem:[#allocation3 + $0x10] sm:$0xff] %vm1674_vm5, %v1667_v46 }
 0xbfe   : > { %v2005_v28 = vpop.permute.xlu1 %2004  ;;  %v2016_v57 = vld [vmem:[#allocation3 + $0x8] sm:$0xff] }
 0xbff   : > { %2014 = vst.msk [vmem:[#allocation3 + $0x18] sm:$0xff] %vm2010_vm6, %v2005_v28  ;;  %v2003_v45 = vpop.permute.xlu0 %2002  ;;  %v2015_v38 = vld [vmem:[#allocation3] sm:$0xff] }
 0xc00   : > { %2013 = vst.msk [vmem:[#allocation3 + $0x10] sm:$0xff] %vm2010_vm6, %v2003_v45  ;;  %3226 = vmatprep.mubr.msk.bf16.mxu1 %vm455_vm0, %v2015_v38 }
 0xc01   : > { %3227 = vmatmul.mubr.msk.bf16.vlgmr.msra.gmra.mrb[24].mxu1 %vm455_vm0, %v2016_v57 }
 0xc06   : > { %v2018_v43 = vld [vmem:[#allocation3 + $0x18] sm:$0xff] }
 0xc07   : > { %v2017_v18 = vld [vmem:[#allocation3 + $0x10] sm:$0xff] }
 0xc08   : > { %3230 = vmatprep.mubr.msk.bf16.mxu1 %vm455_vm0, %v2017_v18 }
 0xc09   : > { %3231 = vmatmul.mubr.msk.bf16.gmra.mrb[28].mxu1 %vm455_vm0, %v2018_v43 }
 0xcd4   : > { %v3228_v4 = vpop.f32.mrb[24].mxu1 }
 0xcd5   : > { %v2088_v50 = vpop.f32.mrb[25].mxu1  ;;  %v2097_v47 = vadd.f32 %v3228_v4, %v2866_v44 }
 0xcd6   : > { %v2089_v7 = vadd.f32 %v2866_v44, %v2088_v50  ;;  %v3229_v53 = vpop.f32.mrb[26].mxu1 }
 0xcd7   : > { %v2091_v35 = vpop.f32.mrb[27].mxu1  ;;  %v4339_v41 = vadd.f32 %v3517_v12, %v2097_v47  ;;  %v2100_v36 = vadd.f32 %v3229_v53, %v2866_v44 }
 0xcd8   : > { %v4336_v34 = vadd.f32 %v3516_v55, %v2089_v7  ;;  %v2092_v42 = vadd.f32 %v2866_v44, %v2091_v35 }
 0xcd9   : > { %v4349_v25 = vadd.f32 %v3519_v3, %v2100_v36  ;;  %v2135_v62 = vsel %vm455_vm0, %v4339_v41, 0.0 }
 0xcda   : > { %v4342_v52 = vadd.f32 %v3518_v49, %v2092_v42  ;;  %v2129_v21 = vsel %vm455_vm0, %v4336_v34, 0.0 }
 0xcdb   : > { %2130 = vadd.xlane.f32.xlu0 %v2129_v21  ;;  %v2138_v30 = vsel %vm455_vm0, %v4349_v25, 0.0 }
 0xcdc   : > { %v3232_v51 = vpop.f32.mrb[28].mxu1  ;;  %v2132_v29 = vsel %vm455_vm0, %v4342_v52, 0.0 }
 0xcdd   : > { %2133 = vadd.xlane.f32.xlu1 %v2132_v29  ;;  %v2104_v26 = vpop.f32.mrb[29].mxu1  ;;  %v2113_v9 = vadd.f32 %v3232_v51, %v2866_v44 }
 0xcde   : > { %v2105_v20 = vadd.f32 %v2866_v44, %v2104_v26  ;;  %v3233_v58 = vpop.f32.mrb[30].mxu1 }
 0xcdf   : > { %2136 = vadd.xlane.f32.xlu0 %v2135_v62  ;;  %v2107_v63 = vpop.f32.mrb[31].mxu1  ;;  %v2116_v1 = vadd.f32 %v3233_v58, %v2866_v44  ;;  %v4367_v19 = vadd.f32 %v3523_v17, %v2113_v9  ;;  %v3313_v58 = vld [vmem:[%s4643_s9 + $0x8] sm:$0xff]  }
 0xce0   : > { %v2108_v54 = vadd.f32 %v2866_v44, %v2107_v63  ;;  %v4354_v13 = vadd.f32 %v3520_v60, %v2105_v20  ;;  %v3312_v20 = vld [vmem:[%s4643_s9] sm:$0xff]  }
 0xce1   : > { %v4362_v31 = vadd.f32 %v3522_v48, %v2116_v1  ;;  %v2147_v39 = vsel %vm455_vm0, %v4367_v19, 0.0  ;;  %3234 = vmatprep.subr.bf16.mxu0 %v3312_v20 }
 0xce2   : > { %v4357_v24 = vadd.f32 %v3521_v23, %v2108_v54  ;;  %v2141_v2 = vsel %vm455_vm0, %v4354_v13, 0.0  ;;  %3235 = vmatpush3.bf16.msra.mxu0 %v3312_v20 }
 0xce3   : > { %2139 = vadd.xlane.f32.xlu0 %v2138_v30  ;;  %v2150_v15 = vsel %vm455_vm0, %v4362_v31, 0.0  ;;  %3236 = vmatprep.subr.bf16.mxu0 %v3313_v58 }
 0xce4   : > { %v2144_v61 = vsel %vm455_vm0, %v4357_v24, 0.0 }
 0xce5   : > { %2145 = vadd.xlane.f32.xlu1 %v2144_v61 }
 0xce6   : > { %3237 = vmatpush3.bf16.msra.mxu0 %v3313_v58 }
 0xce7   : > { %2142 = vadd.xlane.f32.xlu0 %v2141_v2 }
 0xce9   : > { %2151 = vadd.xlane.f32.xlu1 %v2150_v15 }
 0xceb   : > { %2148 = vadd.xlane.f32.xlu0 %v2147_v39 }
 0xd68   : > { %v2131_v22 = vpop.xlane.xlu0 %2130 }
 0xd69   : > { %v2153_v27 = vmul.f32 0.03125, %v2131_v22 }
 0xd6a   : > { %v2134_v8 = vpop.xlane.xlu1 %2133 }
 0xd6b   : > { %v4376_v11 = vsub.f32 %v4336_v34, %v2153_v27  ;;  %v2154_v32 = vmul.f32 0.03125, %v2134_v8 }
 0xd6c   : > { %v2137_v33 = vpop.xlane.xlu0 %2136 }
 0xd6d   : > { %v4379_v5 = vsub.f32 %v4342_v52, %v2154_v32  ;;  %v2155_v14 = vmul.f32 0.03125, %v2137_v33  ;;  %v2169_v16 = vmul.f32 %v4376_v11, %v4376_v11  ;;  %v2873_v32 = vld [vmem:[%s4641_s7] ss:$0 sm:$0xff] }
 0xd6f   : > { %v4384_v6 = vsub.f32 %v4339_v41, %v2155_v14  ;;  %v2177_v59 = vsel %vm455_vm0, %v2169_v16, 0.0  ;;  %v2170_v0 = vmul.f32 %v4379_v5, %v4379_v5 }
 0xd70   : > { %2178 = vadd.xlane.f32.xlu0 %v2177_v59  ;;  %v2140_v56 = vpop.xlane.xlu0 %2139 }
 0xd71   : > { %v2156_v40 = vmul.f32 0.03125, %v2140_v56  ;;  %v2180_v37 = vsel %vm455_vm0, %v2170_v0, 0.0  ;;  %v2171_v10 = vmul.f32 %v4384_v6, %v4384_v6 }
 0xd72   : > { %2181 = vadd.xlane.f32.xlu1 %v2180_v37  ;;  %v2146_v46 = vpop.xlane.xlu1 %2145 }
 0xd73   : > { %v4393_v28 = vsub.f32 %v4349_v25, %v2156_v40  ;;  %v2158_v45 = vmul.f32 0.03125, %v2146_v46  ;;  %v2183_v38 = vsel %vm455_vm0, %v2171_v10, 0.0 }
 0xd74   : > { %2184 = vadd.xlane.f32.xlu0 %v2183_v38  ;;  %v2143_v57 = vpop.xlane.xlu0 %2142  ;;  %v2874_v38 = vld [vmem:[%s4642_s8] ss:$0 sm:$0xff] }
 0xd75   : > { %v4397_v18 = vsub.f32 %v4357_v24, %v2158_v45  ;;  %v2157_v43 = vmul.f32 0.03125, %v2143_v57  ;;  %v2172_v44 = vmul.f32 %v4393_v28, %v4393_v28 }
 0xd76   : > { %v2152_v4 = vpop.xlane.xlu1 %2151 }
 0xd77   : > { %v4402_v50 = vsub.f32 %v4354_v13, %v2157_v43  ;;  %v2160_v47 = vmul.f32 0.03125, %v2152_v4  ;;  %v2186_v7 = vsel %vm455_vm0, %v2172_v44, 0.0  ;;  %v2174_v53 = vmul.f32 %v4397_v18, %v4397_v18 }
 0xd78   : > { %2187 = vadd.xlane.f32.xlu1 %v2186_v7  ;;  %v2149_v35 = vpop.xlane.xlu0 %2148 }
 0xd79   : > { %v4408_v55 = vsub.f32 %v4362_v31, %v2160_v47  ;;  %v2159_v42 = vmul.f32 0.03125, %v2149_v35  ;;  %v2173_v12 = vmul.f32 %v4402_v50, %v4402_v50  ;;  %v2192_v49 = vsel %vm455_vm0, %v2174_v53, 0.0 }
 0xd7b   : > { %v4413_v36 = vsub.f32 %v4367_v19, %v2159_v42  ;;  %v2189_v21 = vsel %vm455_vm0, %v2173_v12, 0.0  ;;  %v2176_v51 = vmul.f32 %v4408_v55, %v4408_v55 }
 0xd7c   : > { %2193 = vadd.xlane.f32.xlu1 %v2192_v49  ;;  %2190 = vadd.xlane.f32.xlu0 %v2189_v21 }
 0xd7d   : > { %v2175_v29 = vmul.f32 %v4413_v36, %v4413_v36  ;;  %v2198_v26 = vsel %vm455_vm0, %v2176_v51, 0.0 }
 0xd7f   : > { %v2195_v3 = vsel %vm455_vm0, %v2175_v29, 0.0 }
 0xd80   : > { %2199 = vadd.xlane.f32.xlu1 %v2198_v26  ;;  %2196 = vadd.xlane.f32.xlu0 %v2195_v3 }
 0xdfd   : > { %v2179_v62 = vpop.xlane.xlu0 %2178 }
 0xdfe   : > { %v2201_v63 = vmul.f32 0.03125, %v2179_v62 }
 0xdff   : > { %v2182_v1 = vpop.xlane.xlu1 %2181 }
 0xe00   : > { %v2209_v54 = vadd.f32 1e-05, %v2201_v63  ;;  %v2202_v9 = vmul.f32 0.03125, %v2182_v1 }
 0xe01   : > { %v2185_v60 = vpop.xlane.xlu0 %2184 }
 0xe02   : > { %3466 = vrsqrt.f32 %v2209_v54  ;;  %v2210_v23 = vadd.f32 1e-05, %v2202_v9  ;;  %v2203_v30 = vmul.f32 0.03125, %v2185_v60 }
 0xe04   : > { %3468 = vrsqrt.f32 %v2210_v23  ;;  %v2211_v48 = vadd.f32 1e-05, %v2203_v30 }
 0xe05   : > { %v2188_v61 = vpop.xlane.xlu1 %2187 }
 0xe06   : > { %3470 = vrsqrt.f32 %v2211_v48  ;;  %v2204_v17 = vmul.f32 0.03125, %v2188_v61  ;;  %v3316_v48 = vld [vmem:[%s4645_s11 + $0x10] sm:$0xff]   ;;  %v3317_v61 = vld [vmem:[%s4645_s11 + $0x18] sm:$0xff]  }
 0xe08   : > { %v2212_v2 = vadd.f32 1e-05, %v2204_v17  ;;  %v3318_v17 = vld [vmem:[%s4645_s11 + $0x20] sm:$0xff]  }
 0xe09   : > { %v2194_v15 = vpop.xlane.xlu1 %2193  ;;  %v2191_v39 = vpop.xlane.xlu0 %2190 }
 0xe0a   : > { %3472 = vrsqrt.f32 %v2212_v2  ;;  %v2206_v22 = vmul.f32 0.03125, %v2194_v15  ;;  %v2205_v27 = vmul.f32 0.03125, %v2191_v39  ;;  %v3319_v2 = vld [vmem:[%s4645_s11 + $0x28] sm:$0xff]   ;;  %v3320_v15 = vld [vmem:[%s4645_s11 + $0x30] sm:$0xff]   ;;  %v3321_v39 = vld [vmem:[%s4645_s11 + $0x38] sm:$0xff]  }
 0xe0c   : > { %v3467_v8 = vpop.eup %3466  ;;  %v2214_v33 = vadd.f32 1e-05, %v2206_v22  ;;  %v2213_v14 = vadd.f32 1e-05, %v2205_v27  ;;  %v2875_v22 = vld [vmem:[%s4644_s10] ss:$0 sm:$0xff] }
 0xe0d   : > { %v2225_v16 = vmul.f32 %v3467_v8, %v4376_v11  ;;  %v2200_v59 = vpop.xlane.xlu1 %2199  ;;  %v2197_v0 = vpop.xlane.xlu0 %2196 }
 0xe0e   : > { %v3469_v56 = vpop.eup %3468  ;;  %3474 = vrsqrt.f32 %v2214_v33  ;;  %v2208_v40 = vmul.f32 0.03125, %v2200_v59  ;;  %v2207_v37 = vmul.f32 0.03125, %v2197_v0 }
 0xe0f   : > { %v2226_v10 = vmul.f32 %v3469_v56, %v4379_v5  ;;  %3476 = vrsqrt.f32 %v2213_v14  ;;  %v2239_v46 = vmul.f32 %v2873_v32, %v2225_v16 }
 0xe10   : > { %v3471_v45 = vpop.eup %3470  ;;  %v2216_v57 = vadd.f32 1e-05, %v2208_v40  ;;  %v2215_v43 = vadd.f32 1e-05, %v2207_v37 }
 0xe11   : > { %v2227_v44 = vmul.f32 %v3471_v45, %v4384_v6  ;;  %v2240_v11 = vmul.f32 %v2873_v32, %v2226_v10  ;;  %v2253_v4 = vadd.f32 %v2874_v38, %v2239_v46 }
 0xe12   : > { %3478 = vrsqrt.f32 %v2216_v57 }
 0xe13   : > { %3480 = vrsqrt.f32 %v2215_v43  ;;  %v2254_v47 = vadd.f32 %v2874_v38, %v2240_v11  ;;  %v2241_v53 = vmul.f32 %v2873_v32, %v2227_v44 }
 0xe14   : > { %v3473_v7 = vpop.eup %3472 }
 0xe15   : > { %v2228_v5 = vmul.f32 %v3473_v7, %v4393_v28  ;;  %v2261_v35 = vpack.c.bf16 %v2254_v47, %v2253_v4  ;;  %v2255_v21 = vadd.f32 %v2874_v38, %v2241_v53 }
 0xe17   : > { %v2242_v42 = vmul.f32 %v2873_v32, %v2228_v5  ;;  %3238 = vmatprep.mubr.msk.bf16.mxu0 %vm455_vm0, %v2261_v35 }
 0xe18   : > { %v3475_v12 = vpop.eup %3474 }
 0xe19   : > { %v3477_v49 = vpop.eup %3476  ;;  %v2256_v51 = vadd.f32 %v2874_v38, %v2242_v42  ;;  %v2230_v29 = vmul.f32 %v3475_v12, %v4397_v18 }
 0xe1a   : > { %v2229_v6 = vmul.f32 %v3477_v49, %v4402_v50 }
 0xe1b   : > { %v2262_v26 = vpack.c.bf16 %v2256_v51, %v2255_v21  ;;  %v2244_v3 = vmul.f32 %v2873_v32, %v2230_v29 }
 0xe1c   : > { %v3479_v20 = vpop.eup %3478  ;;  %v2243_v58 = vmul.f32 %v2873_v32, %v2229_v6 }
 0xe1d   : > { %v3481_v62 = vpop.eup %3480  ;;  %v2232_v63 = vmul.f32 %v3479_v20, %v4408_v55  ;;  %3239 = vmatmul.mubr.msk.bf16.vlgmr.msra.gmra.mrb[48].mxu0 %vm455_vm0, %v2262_v26  ;;  %v2258_v28 = vadd.f32 %v2874_v38, %v2244_v3  ;;  %v3314_v55 = vld [vmem:[%s4645_s11] sm:$0xff]  }
 0xe1e   : > { %v2231_v1 = vmul.f32 %v3481_v62, %v4413_v36  ;;  %v2257_v54 = vadd.f32 %v2874_v38, %v2243_v58  ;;  %3246 = vmatprep.subr.bf16.mxu1 %v3314_v55  ;;  %v3315_v36 = vld [vmem:[%s4645_s11 + $0x8] sm:$0xff]  }
 0xe1f   : > { %v2246_v9 = vmul.f32 %v2873_v32, %v2232_v63  ;;  %3247 = vmatpush3.bf16.msra.mxu1 %v3314_v55 }
 0xe20   : > { %v2263_v60 = vpack.c.bf16 %v2258_v28, %v2257_v54  ;;  %v2245_v23 = vmul.f32 %v2873_v32, %v2231_v1  ;;  %3248 = vmatprep.subr.bf16.mxu1 %v3315_v36 }
 0xe21   : > { %v2260_v30 = vadd.f32 %v2874_v38, %v2246_v9 }
 0xe22   : > { %3242 = vmatprep.mubr.msk.bf16.mxu0 %vm455_vm0, %v2263_v60  ;;  %v2259_v18 = vadd.f32 %v2874_v38, %v2245_v23 }
 0xe23   : > { %3249 = vmatpush3.bf16.msra.mxu1 %v3315_v36 }
 0xe24   : > { %v2264_v50 = vpack.c.bf16 %v2260_v30, %v2259_v18  ;;  %3250 = vmatprep.subr.bf16.mxu1 %v3316_v48 }
 0xe26   : > { %3243 = vmatmul.mubr.msk.bf16.gmra.mrb[52].mxu0 %vm455_vm0, %v2264_v50 }
 0xe27   : > { %3251 = vmatpush3.bf16.msra.mxu1 %v3316_v48 }
 0xe28   : > { %3252 = vmatprep.subr.bf16.mxu1 %v3317_v61 }
 0xe2b   : > { %3253 = vmatpush3.bf16.msra.mxu1 %v3317_v61 }
 0xe2c   : > { %3254 = vmatprep.subr.bf16.mxu1 %v3318_v17 }
 0xe2f   : > { %3255 = vmatpush3.bf16.msra.mxu1 %v3318_v17 }
 0xe30   : > { %3256 = vmatprep.subr.bf16.mxu1 %v3319_v2 }
 0xe33   : > { %3257 = vmatpush3.bf16.msra.mxu1 %v3319_v2 }
 0xe34   : > { %3258 = vmatprep.subr.bf16.mxu1 %v3320_v15 }
 0xe37   : > { %3259 = vmatpush3.bf16.msra.mxu1 %v3320_v15 }
 0xe38   : > { %3260 = vmatprep.subr.bf16.mxu1 %v3321_v39 }
 0xe3b   : > { %3261 = vmatpush3.bf16.msra.mxu1 %v3321_v39 }
 0xef0   : > { %v3240_v27 = vpop.f32.mrb[48].mxu0 }
 0xef1   : > { %v2343_v8 = vadd.f32 %v3240_v27, %v2875_v22  ;;  %v2334_v32 = vpop.f32.mrb[49].mxu0 }
 0xef2   : > { %v4474_v33 = vadd.f32 %v2875_v22, %v2334_v32  ;;  %v3241_v14 = vpop.f32.mrb[50].mxu0 }
 0xef3   : > { %v4476_v16 = vmul.f32 0.70710677, %v2343_v8  ;;  %v4478_v59 = vadd.f32 %v3241_v14, %v2875_v22  ;;  %v2337_v0 = vpop.f32.mrb[51].mxu0  ;;  %v4515_v18 = vmul.f32 0.5, %v2343_v8 }
 0xef4   : > { %v4481_v56 = vmul.f32 0.70710677, %v4474_v33  ;;  %v4483_v40 = vadd.f32 %v2875_v22, %v2337_v0 }
 0xef5   : > { %v2375_v37 = vand.u32 2147483647, %v4476_v16  ;;  %v4487_v10 = vmul.f32 0.70710677, %v4478_v59  ;;  %vm2535_vm7 = vcmp.ge.f32.partialorder %v4476_v16, 0.0 }
 0xef6   : > { %v2373_v46 = vand.u32 2147483647, %v4481_v56  ;;  %v4491_v45 = vmul.f32 0.70710677, %v4483_v40  ;;  %vm2533_vm8 = vcmp.ge.f32.partialorder %v4481_v56, 0.0 }
 0xef7   : > { %v2383_v38 = vmul.f32 0.3275911, %v2375_v37  ;;  %v2376_v57 = vand.u32 2147483647, %v4487_v10  ;;  %v2487_v3 = vsub.f32 0.0, %v2375_v37  ;;  %vm2536_vm9 = vcmp.ge.f32.partialorder %v4487_v10, 0.0 }
 0xef8   : > { %v2381_v43 = vmul.f32 0.3275911, %v2373_v46  ;;  %v2374_v44 = vand.u32 2147483647, %v4491_v45  ;;  %v2485_v62 = vsub.f32 0.0, %v2373_v46  ;;  %vm2534_vm10 = vcmp.ge.f32.partialorder %v4491_v45, 0.0 }
 0xef9   : > { %v2391_v11 = vadd.f32 1.0, %v2383_v38  ;;  %v2384_v4 = vmul.f32 0.3275911, %v2376_v57  ;;  %v3244_v47 = vpop.f32.mrb[52].mxu0  ;;  %v2488_v1 = vsub.f32 0.0, %v2376_v57  ;;  %v2495_v30 = vmul.f32 %v2487_v3, %v2375_v37 }
 0xefa   : > { %v2389_v7 = vadd.f32 1.0, %v2381_v43  ;;  %v2382_v53 = vmul.f32 0.3275911, %v2374_v44  ;;  %v2350_v5 = vpop.f32.mrb[53].mxu0  ;;  %v4495_v21 = vadd.f32 %v3244_v47, %v2875_v22  ;;  %v2486_v54 = vsub.f32 0.0, %v2374_v44 }
 0xefb   : > { %3482 = vrcp.f32 %v2391_v11  ;;  %v2392_v35 = vadd.f32 1.0, %v2384_v4  ;;  %v3245_v42 = vpop.f32.mrb[54].mxu0  ;;  %v4497_v51 = vadd.f32 %v2875_v22, %v2350_v5  ;;  %v2493_v48 = vmul.f32 %v2485_v62, %v2373_v46 }
 0xefc   : > { %3484 = vrcp.f32 %v2389_v7  ;;  %v2353_v12 = vpop.f32.mrb[55].mxu0  ;;  %v2390_v49 = vadd.f32 1.0, %v2382_v53  ;;  %v4499_v29 = vadd.f32 %v3245_v42, %v2875_v22  ;;  %v4502_v6 = vmul.f32 0.70710677, %v4495_v21 }
 0xefd   : > { %3486 = vrcp.f32 %v2392_v35  ;;  %v4505_v26 = vmul.f32 0.70710677, %v4497_v51  ;;  %v4510_v58 = vadd.f32 %v2875_v22, %v2353_v12  ;;  %v2496_v22 = vmul.f32 %v2488_v1, %v2376_v57 }
 0xefe   : > { %v4508_v20 = vmul.f32 0.70710677, %v4499_v29  ;;  %3488 = vrcp.f32 %v2390_v49  ;;  %v2379_v63 = vand.u32 2147483647, %v4502_v6  ;;  %v2494_v27 = vmul.f32 %v2486_v54, %v2374_v44 }
 0xeff   : > { %v2377_v28 = vand.u32 2147483647, %v4505_v26  ;;  %v4518_v55 = vmul.f32 0.70710677, %v4510_v58  ;;  %v2505_v38 = vmul.f32 1.442695, %v2495_v30 }
 0xf00   : > { %v2380_v9 = vand.u32 2147483647, %v4508_v20  ;;  %v2387_v60 = vmul.f32 0.3275911, %v2379_v63  ;;  %v2491_v17 = vsub.f32 0.0, %v2379_v63  ;;  %vm2539_vm11 = vcmp.ge.f32.partialorder %v4502_v6, 0.0 }
 0xf01   : > { %v2385_v23 = vmul.f32 0.3275911, %v2377_v28  ;;  %v2378_v32 = vand.u32 2147483647, %v4518_v55  ;;  %v2489_v14 = vsub.f32 0.0, %v2377_v28  ;;  %vm2540_vm12 = vcmp.ge.f32.partialorder %v4508_v20, 0.0 }
 0xf02   : > { %v2388_v50 = vmul.f32 0.3275911, %v2380_v9  ;;  %v2395_v61 = vadd.f32 1.0, %v2387_v60  ;;  %v2501_v4 = vmul.f32 1.442695, %v2493_v48  ;;  %v2499_v47 = vmul.f32 %v2491_v17, %v2379_v63 }
 0xf03   : > { %v2393_v2 = vadd.f32 1.0, %v2385_v23  ;;  %v2386_v46 = vmul.f32 0.3275911, %v2378_v32  ;;  %v2492_v7 = vsub.f32 0.0, %v2380_v9  ;;  %v2507_v53 = vmul.f32 1.442695, %v2496_v22 }
 0xf04   : > { %3490 = vrcp.f32 %v2395_v61  ;;  %v2396_v0 = vadd.f32 1.0, %v2388_v50  ;;  %v2503_v12 = vmul.f32 1.442695, %v2494_v27  ;;  %v2497_v49 = vmul.f32 %v2489_v14, %v2377_v28 }
 0xf05   : > { %v4520_v36 = vpop.eup %3482  ;;  %3492 = vrcp.f32 %v2393_v2  ;;  %v2394_v5 = vadd.f32 1.0, %v2386_v46  ;;  %v2513_v54 = vmul.f32 1.442695, %v2499_v47  ;;  %v2500_v60 = vmul.f32 %v2492_v7, %v2380_v9 }
 0xf06   : > { %v4522_v15 = vpop.eup %3484  ;;  %v2415_v39 = vmul.f32 1.0614054, %v4520_v36  ;;  %3494 = vrcp.f32 %v2396_v0  ;;  %v2509_v28 = vmul.f32 1.442695, %v2497_v49  ;;  %v2490_v61 = vsub.f32 0.0, %v2378_v32 }
 0xf07   : > { %v2413_v8 = vmul.f32 1.0614054, %v4522_v15  ;;  %v4527_v43 = vpop.eup %3486  ;;  %3496 = vpow2.f32 %v2505_v38  ;;  %v4542_v27 = vmul.f32 0.5, %v4474_v33  ;;  %vm2537_vm13 = vcmp.ge.f32.partialorder %v4505_v26, 0.0 }
 0xf08   : > { %v2884_v37 = vadd.f32 -1.4531521, %v2415_v39  ;;  %v2416_v44 = vmul.f32 1.0614054, %v4527_v43  ;;  %v4531_v35 = vpop.eup %3488  ;;  %3498 = vrcp.f32 %v2394_v5  ;;  %v2498_v47 = vmul.f32 %v2490_v61, %v2378_v32 }
 0xf09   : > { %v2882_v11 = vadd.f32 -1.4531521, %v2413_v8  ;;  %v2414_v1 = vmul.f32 1.0614054, %v4531_v35  ;;  %3500 = vpow2.f32 %v2501_v4  ;;  %v2515_v8 = vmul.f32 1.442695, %v2500_v60 }
 0xf0a   : > { %v2431_v57 = vmul.f32 %v4520_v36, %v2884_v37  ;;  %v2885_v62 = vadd.f32 -1.4531521, %v2416_v44  ;;  %3502 = vpow2.f32 %v2507_v53  ;;  %vm2538_vm14 = vcmp.ge.f32.partialorder %v4518_v55, 0.0 }
 0xf0b   : > { %v2429_v42 = vmul.f32 %v4522_v15, %v2882_v11  ;;  %v2883_v50 = vadd.f32 -1.4531521, %v2414_v1  ;;  %3504 = vpow2.f32 %v2503_v12 }
 0xf0c   : > { %v2439_v3 = vadd.f32 1.4214138, %v2431_v57  ;;  %v2432_v30 = vmul.f32 %v4527_v43, %v2885_v62  ;;  %3506 = vpow2.f32 %v2513_v54 }
 0xf0d   : > { %v2437_v63 = vadd.f32 1.4214138, %v2429_v42  ;;  %v2430_v39 = vmul.f32 %v4531_v35, %v2883_v50  ;;  %3508 = vpow2.f32 %v2509_v28  ;;  %v4556_v42 = vmul.f32 0.5, %v4478_v59 }
 0xf0e   : > { %v2447_v23 = vmul.f32 %v4520_v36, %v2439_v3  ;;  %v2440_v2 = vadd.f32 1.4214138, %v2432_v30  ;;  %v4539_v22 = vpop.eup %3490  ;;  %3510 = vpow2.f32 %v2515_v8 }
 0xf0f   : > { %v2445_v48 = vmul.f32 %v4522_v15, %v2437_v63  ;;  %v4544_v14 = vpop.eup %3492  ;;  %v2438_v38 = vadd.f32 1.4214138, %v2430_v39  ;;  %v2419_v46 = vmul.f32 1.0614054, %v4539_v22 }
 0xf10   : > { %v2892_v17 = vadd.f32 -0.28449672, %v2447_v23  ;;  %v2448_v37 = vmul.f32 %v4527_v43, %v2440_v2  ;;  %v2417_v4 = vmul.f32 1.0614054, %v4544_v14  ;;  %v4552_v53 = vpop.eup %3494  ;;  %v2511_v23 = vmul.f32 1.442695, %v2498_v47 }
 0xf11   : > { %v2890_v9 = vadd.f32 -0.28449672, %v2445_v48  ;;  %v2446_v57 = vmul.f32 %v4531_v35, %v2438_v38  ;;  %v2888_v44 = vadd.f32 -1.4531521, %v2419_v46  ;;  %v3497_v49 = vpop.eup %3496  ;;  %v2420_v59 = vmul.f32 1.0614054, %v4552_v53 }
 0xf12   : > { %v2463_v0 = vmul.f32 %v4520_v36, %v2892_v17  ;;  %v2893_v33 = vadd.f32 -0.28449672, %v2448_v37  ;;  %v2886_v12 = vadd.f32 -1.4531521, %v2417_v4  ;;  %v4562_v63 = vpop.eup %3498  ;;  %3512 = vpow2.f32 %v2511_v23 }
 0xf13   : > { %v2461_v11 = vmul.f32 %v4522_v15, %v2890_v9  ;;  %v2891_v62 = vadd.f32 -0.28449672, %v2446_v57  ;;  %v2435_v1 = vmul.f32 %v4539_v22, %v2888_v44  ;;  %v3501_v30 = vpop.eup %3500  ;;  %v2889_v39 = vadd.f32 -1.4531521, %v2420_v59 }
 0xf14   : > { %v2471_v7 = vadd.f32 0.2548296, %v2463_v0  ;;  %v2464_v32 = vmul.f32 %v4527_v43, %v2893_v33  ;;  %v2433_v60 = vmul.f32 %v4544_v14, %v2886_v12  ;;  %v3503_v61 = vpop.eup %3502  ;;  %v2418_v9 = vmul.f32 1.0614054, %v4562_v63 }
 0xf15   : > { %v2469_v5 = vadd.f32 0.2548296, %v2461_v11  ;;  %v2443_v28 = vadd.f32 1.4214138, %v2435_v1  ;;  %v2436_v47 = vmul.f32 %v4552_v53, %v2889_v39  ;;  %v2558_v23 = vmul.f32 0.5, %v4483_v40 }
 0xf16   : > { %v2479_v3 = vmul.f32 %v4520_v36, %v2471_v7  ;;  %v2472_v48 = vadd.f32 0.2548296, %v2464_v32  ;;  %v2462_v36 = vmul.f32 %v4531_v35, %v2891_v62  ;;  %v2441_v2 = vadd.f32 1.4214138, %v2433_v60 }
 0xf17   : > { %v2477_v54 = vmul.f32 %v4522_v15, %v2469_v5  ;;  %v3505_v15 = vpop.eup %3504  ;;  %v2451_v38 = vmul.f32 %v4539_v22, %v2443_v28  ;;  %v2887_v7 = vadd.f32 -1.4531521, %v2418_v9  ;;  %v2444_v32 = vadd.f32 1.4214138, %v2436_v47 }
 0xf18   : > { %v2519_v50 = vmul.f32 %v3497_v49, %v2479_v3  ;;  %v2480_v0 = vmul.f32 %v4527_v43, %v2472_v48  ;;  %v2470_v37 = vadd.f32 0.2548296, %v2462_v36  ;;  %v3507_v46 = vpop.eup %3506  ;;  %v2449_v4 = vmul.f32 %v4544_v14, %v2441_v2 }
 0xf19   : > { %v2517_v17 = vmul.f32 %v3501_v30, %v2477_v54  ;;  %v2896_v5 = vadd.f32 -0.28449672, %v2451_v38  ;;  %v3509_v12 = vpop.eup %3508  ;;  %v2434_v43 = vmul.f32 %v4562_v63, %v2887_v7 }
 0xf1a   : > { %v2527_v8 = vsub.f32 1.0, %v2519_v50  ;;  %v2520_v57 = vmul.f32 %v3503_v61, %v2480_v0  ;;  %v2478_v44 = vmul.f32 %v4531_v35, %v2470_v37  ;;  %v2894_v3 = vadd.f32 -0.28449672, %v2449_v4  ;;  %v3511_v59 = vpop.eup %3510 }
 0xf1b   : > { %v2525_v11 = vsub.f32 1.0, %v2517_v17  ;;  %v2467_v60 = vmul.f32 %v4539_v22, %v2896_v5  ;;  %v2452_v50 = vmul.f32 %v4552_v53, %v2444_v32  ;;  %v2442_v2 = vadd.f32 1.4214138, %v2434_v43 }
 0xf1c   : > { %v2543_v33 = vsub.f32 0.0, %v2527_v8  ;;  %v2528_v1 = vsub.f32 1.0, %v2520_v57  ;;  %v2518_v54 = vmul.f32 %v3505_v15, %v2478_v44  ;;  %v2465_v35 = vmul.f32 %v4544_v14, %v2894_v3 }
 0xf1d   : > { %v2541_v49 = vsub.f32 0.0, %v2525_v11  ;;  %v2475_v61 = vadd.f32 0.2548296, %v2467_v60  ;;  %v2897_v17 = vadd.f32 -0.28449672, %v2452_v50  ;;  %v2450_v38 = vmul.f32 %v4562_v63, %v2442_v2 }
 0xf1e   : > { %v2551_v62 = vsel %vm2535_vm7, %v2527_v8, %v2543_v33  ;;  %v2544_v36 = vsub.f32 0.0, %v2528_v1  ;;  %v2526_v28 = vsub.f32 1.0, %v2518_v54  ;;  %v2473_v16 = vadd.f32 0.2548296, %v2465_v35 }
 0xf1f   : > { %v2549_v30 = vsel %vm2533_vm8, %v2525_v11, %v2541_v49  ;;  %v2567_v48 = vadd.f32 1.0, %v2551_v62  ;;  %v2483_v15 = vmul.f32 %v4539_v22, %v2475_v61  ;;  %v2468_v37 = vmul.f32 %v4552_v53, %v2897_v17 }
 0xf20   : > { %v2565_v39 = vadd.f32 1.0, %v2549_v30  ;;  %v2552_v9 = vsel %vm2536_vm9, %v2528_v1, %v2544_v36  ;;  %v2542_v56 = vsub.f32 0.0, %v2526_v28  ;;  %v2481_v0 = vmul.f32 %v4544_v14, %v2473_v16 }
 0xf21   : > { %v2568_v8 = vadd.f32 1.0, %v2552_v9  ;;  %v2575_v11 = vmul.f32 %v2567_v48, %v4515_v18  ;;  %v2523_v47 = vmul.f32 %v3507_v46, %v2483_v15  ;;  %v2476_v22 = vadd.f32 0.2548296, %v2468_v37  ;;  %v3513_v46 = vpop.eup %3512 }
 0xf22   : > { %v2550_v4 = vsel %vm2534_vm10, %v2526_v28, %v2542_v56  ;;  %v2521_v33 = vmul.f32 %v3509_v12, %v2481_v0  ;;  %v2895_v44 = vadd.f32 -0.28449672, %v2450_v38  ;;  %v2573_v14 = vmul.f32 %v2565_v39, %v4542_v27 }
 0xf23   : > { %v2576_v10 = vmul.f32 %v2568_v8, %v4556_v42  ;;  %v2566_v7 = vadd.f32 1.0, %v2550_v4  ;;  %v2531_v57 = vsub.f32 1.0, %v2523_v47  ;;  %v2484_v3 = vmul.f32 %v4552_v53, %v2476_v22 }
 0xf24   : > { %v2529_v32 = vsub.f32 1.0, %v2521_v33  ;;  %v2466_v45 = vmul.f32 %v4562_v63, %v2895_v44  ;;  %v2563_v30 = vmul.f32 0.5, %v4495_v21  ;;  %v2564_v35 = vmul.f32 0.5, %v4499_v29  ;;  %v2898_v29 = vld [vmem:[%s4646_s12] ss:$0 sm:$0xff] }
 0xf25   : > { %v2582_v5 = vpack.c.bf16 %v2576_v10, %v2575_v11  ;;  %v2574_v49 = vmul.f32 %v2566_v7, %v2558_v23  ;;  %v2547_v18 = vsub.f32 0.0, %v2531_v57  ;;  %v2524_v43 = vmul.f32 %v3511_v59, %v2484_v3 }
 0xf26   : > { %v2474_v42 = vadd.f32 0.2548296, %v2466_v45  ;;  %v2545_v1 = vsub.f32 0.0, %v2529_v32  ;;  %v2561_v17 = vmul.f32 0.5, %v4497_v51  ;;  %v2562_v21 = vmul.f32 0.5, %v4510_v58 }
 0xf27   : > { %v2581_v40 = vpack.c.bf16 %v2574_v49, %v2573_v14  ;;  %v2555_v12 = vsel %vm2539_vm11, %v2531_v57, %v2547_v18  ;;  %v2532_v62 = vsub.f32 1.0, %v2524_v43 }
 0xf28   : > { %v2482_v27 = vmul.f32 %v4562_v63, %v2474_v42  ;;  %v2571_v60 = vadd.f32 1.0, %v2555_v12  ;;  %v2553_v6 = vsel %vm2537_vm13, %v2529_v32, %v2545_v1 }
 0xf29   : > { %3262 = vmatprep.mubr.bf16.mxu1 %v2581_v40  ;;  %v2548_v54 = vsub.f32 0.0, %v2532_v62  ;;  %v2569_v63 = vadd.f32 1.0, %v2553_v6 }
 0xf2a   : > { %3263 = vmatmul.mubr.bf16.vlgmr.msra.gmra.mrb[32].mxu1 %v2582_v5  ;;  %v2522_v53 = vmul.f32 %v3513_v46, %v2482_v27  ;;  %v2579_v36 = vmul.f32 %v2571_v60, %v2563_v30 }
 0xf2b   : > { %v2556_v59 = vsel %vm2540_vm12, %v2532_v62, %v2548_v54  ;;  %v2577_v2 = vmul.f32 %v2569_v63, %v2561_v17 }
 0xf2c   : > { %v2572_v50 = vadd.f32 1.0, %v2556_v59  ;;  %v2530_v48 = vsub.f32 1.0, %v2522_v53 }
 0xf2e   : > { %v2580_v28 = vmul.f32 %v2572_v50, %v2564_v35  ;;  %v2546_v61 = vsub.f32 0.0, %v2530_v48 }
 0xf30   : > { %v2554_v16 = vsel %vm2538_vm14, %v2530_v48, %v2546_v61  ;;  %v2584_v20 = vpack.c.bf16 %v2580_v28, %v2579_v36 }
 0xf31   : > { %v2570_v26 = vadd.f32 1.0, %v2554_v16 }
 0xf33   : > { %v2578_v39 = vmul.f32 %v2570_v26, %v2562_v21 }
 0xf35   : > { %v2583_v9 = vpack.c.bf16 %v2578_v39, %v2577_v2 }
 0xf37   : > { %3266 = vmatprep.mubr.bf16.mxu1 %v2583_v9 }
 0xf38   : > { %3267 = vmatmul.mubr.bf16.gmra.mrb[36].mxu1 %v2584_v20 }
 0xffd   : > { %v3264_v56 = vpop.f32.mrb[32].mxu1 }
 0xffe   : > { %v2699_v15 = vadd.f32 %v3264_v56, %v2898_v29  ;;  %v2690_v8 = vpop.f32.mrb[33].mxu1 }
 0xfff   : > { %v2691_v51 = vadd.f32 %v2898_v29, %v2690_v8  ;;  %v3265_v58 = vpop.f32.mrb[34].mxu1 }
0x1000   : > { %v2723_v55 = vadd.f32 %v2699_v15, %v4339_v41  ;;  %v2702_v0 = vadd.f32 %v3265_v58, %v2898_v29  ;;  %v2693_v37 = vpop.f32.mrb[35].mxu1 }
0x1001   : > { %v2721_v38 = vadd.f32 %v2691_v51, %v4336_v34  ;;  %v2694_v11 = vadd.f32 %v2898_v29, %v2693_v37 }
0x1002   : > { %2731 = vst.msk [vmem:[%s442_s24 + $0x10] sm:$0xff] %vm455_vm0, %v2723_v55  ;;  %v2724_v4 = vadd.f32 %v2702_v0, %v4349_v25 }
0x1003   : > { %2729 = vst.msk [vmem:[%s442_s24] sm:$0xff] %vm455_vm0, %v2721_v38  ;;  %v2722_v23 = vadd.f32 %v2694_v11, %v4342_v52 }
0x1004   : > { %2732 = vst.msk [vmem:[%s442_s24 + $0x18] sm:$0xff] %vm455_vm0, %v2724_v4 }
0x1005   : > { %2730 = vst.msk [vmem:[%s442_s24 + $0x8] sm:$0xff] %vm455_vm0, %v2722_v23 }
0x100b   : > { %v3268_v47 = vpop.f32.mrb[36].mxu1 }
0x100c   : > { %v2715_v10 = vadd.f32 %v3268_v47, %v2898_v29  ;;  %v2706_v41 = vpop.f32.mrb[37].mxu1 }
0x100d   : > { %v2707_v7 = vadd.f32 %v2898_v29, %v2706_v41  ;;  %v3269_v33 = vpop.f32.mrb[38].mxu1 }
0x100e   : > { %v2727_v34 = vadd.f32 %v2715_v10, %v4367_v19  ;;  %v2718_v22 = vadd.f32 %v3269_v33, %v2898_v29  ;;  %v2709_v57 = vpop.f32.mrb[39].mxu1 }
0x100f   : > { %v2725_v44 = vadd.f32 %v2707_v7, %v4354_v13  ;;  %v2710_v25 = vadd.f32 %v2898_v29, %v2709_v57 }
0x1010   : > { %2735 = vst.msk [vmem:[%s442_s24 + $0x30] sm:$0xff] %vm455_vm0, %v2727_v34  ;;  %v2728_v52 = vadd.f32 %v2718_v22, %v4362_v31 }
0x1011   : > { %2733 = vst.msk [vmem:[%s442_s24 + $0x20] sm:$0xff] %vm455_vm0, %v2725_v44  ;;  %v2726_v14 = vadd.f32 %v2710_v25, %v4357_v24 }
0x1012   : > { %2736 = vst.msk [vmem:[%s442_s24 + $0x38] sm:$0xff] %vm455_vm0, %v2728_v52 }
0x1013   : > { %2734 = vst.msk [vmem:[%s442_s24 + $0x28] sm:$0xff] %vm455_vm0, %v2726_v14 }
0x1014 PF: > { %s23_s25 = sadd.s32 1, %s3530_s25  }
0x1015   : > { %p20_p4 = scmp.ge.s32.totalorder %s23_s25, 4  }
0x1017   :  { %22 = sbr.rel (!%p20_p4) target bundleno = 1 (0x1), region = 105 }

// kernel: tpu_custom_call.1
= control target key start
LH: loop header
LB: loop body
LE: loop exit
PB: predicated region body
PF: predicated region fallthrough
CT: control target
= control target key end

     0   :  { %s3616_s25 = smov 0   ;;  %s4634_s0 = inlined_call_operand.vmem [shape: f32[128,32], index: 0, kind: input, shape index: {}]   ;;  %s4635_s1 = inlined_call_operand.vmem [shape: f32[1,32], index: 1, kind: input, shape index: {}]   ;;  %s4636_s2 = inlined_call_operand.vmem [shape: f32[1,32], index: 2, kind: input, shape index: {}]   ;;  %s4637_s3 = inlined_call_operand.vmem [shape: bf16[32,96], index: 3, kind: input, shape index: {}]   ;;  %s4638_s4 = inlined_call_operand.vmem [shape: bf16[4,64,64], index: 4, kind: input, shape index: {}]   ;;  %s4639_s5 = inlined_call_operand.vmem [shape: bf16[32,32], index: 5, kind: input, shape index: {}]   ;;  %s4640_s6 = inlined_call_operand.vmem [shape: f32[1,32], index: 6, kind: input, shape index: {}]   ;;  %s4641_s7 = inlined_call_operand.vmem [shape: f32[1,32], index: 7, kind: input, shape index: {}]   ;;  %s4642_s8 = inlined_call_operand.vmem [shape: f32[1,32], index: 8, kind: input, shape index: {}]   ;;  %s4643_s9 = inlined_call_operand.vmem [shape: bf16[32,128], index: 9, kind: input, shape index: {}]   ;;  %s4644_s10 = inlined_call_operand.vmem [shape: f32[1,128], index: 10, kind: input, shape index: {}]   ;;  %s4645_s11 = inlined_call_operand.vmem [shape: bf16[128,32], index: 11, kind: input, shape index: {}]   ;;  %s4646_s12 = inlined_call_operand.vmem [shape: f32[1,32], index: 12, kind: input, shape index: {}]   ;;  %s4647_s13 = inlined_call_operand.vmem [shape: f32[128,32], index: 13, kind: output, shape index: {}]  }
   0x1 LB: > { %s2793_s26 = sadd.s32 4294967295, %s3530_s25   ;;  %p2797_p0 = scmp.ge.s32.totalorder %s3530_s25, 1  ;;  %s3530_s25 = sphi %s3616_s25, %s23_s25  }
   0x2   : > { %p388_p1 = scmp.lt.s32.totalorder %s3530_s25, 3 }
   0x4   : > { %p389_p2 = pnand %p2797_p0, %p388_p1 }
   0x5   : > { %s2798_s27 = sshll.u32 (!%p389_p2), %s2793_s26, 3  ;;  %vm455_vm0 = vcmask (!%p389_p2), 261120   ;;  %v3308_v56 = vld [vmem:[%s4637_s3] sm:$0xff] (!%p389_p2)   ;;  %v3309_v57 = vld [vmem:[%s4637_s3 + $0x8] sm:$0xff] (!%p389_p2)   ;;  %vm690_vm1 = vcmask (!%p389_p2), 785408   ;;  %vm727_vm2 = vcmask (!%p389_p2), 64512  }
   0x6   : > { %392 = sbr.rel (%p389_p2) target bundleno = 4116 (0x1014), region = 72  ;;  %p433_p3 = scmp.lt.s32.totalorder (!%p389_p2), %s2798_s27, 15  ;;  %3082 = vmatprep.subr.bf16.mxu0 (!%p389_p2), %v3308_v56  ;;  %vm817_vm3 = vcmask (!%p389_p2), 523264   ;;  %vm1338_vm4 = vcmask (!%p389_p2), 130112   ;;  %vm1674_vm5 = vcmask (!%p389_p2), 195712   ;;  %vm2010_vm6 = vcmask (!%p389_p2), 261312  }
   0x7   : > { %3083 = vmatpush3.bf16.msra.mxu0 (!%p389_p2), %v3308_v56  ;;  %s3532_s23 = smov (!%p389_p2), 96   ;;  %s3533_s19 = smov (!%p389_p2), 64  }
   0x8   : > { %3084 = vmatprep.subr.bf16.mxu0 (!%p389_p2), %v3309_v57  ;;  %s3534_s20 = smov (!%p389_p2), 88   ;;  %s3535_s21 = smov (!%p389_p2), 80  }
   0x9   : > { %s3536_s22 = smov (!%p389_p2), 120   ;;  %s3539_s15 = smov (!%p389_p2), 48  }
   0xa   : > { %s3540_s16 = smov (!%p389_p2), 72   ;;  %s3541_s17 = smov (!%p389_p2), 104  }
   0xb   : > { %3085 = vmatpush3.bf16.msra.mxu0 (!%p389_p2), %v3309_v57  ;;  %s3542_s29 = smov (!%p389_p2), 40   ;;  %s3543_s30 = smov (!%p389_p2), 8  }
   0xd   : > { %s4649_s27 = smov (!%p433_p3, %s2798_s27), 15 }
   0xe   : > { %s2799_s28 = sshll.u32 %s4649_s27, 3 }
   0xf   : > { %s3632_s14 = scalar_lea.vmem %s4634_s0, %s2799_s28  ;;  %s442_s24 = scalar_lea.vmem %s4647_s13, %s2799_s28 }
  0x10   : > { %v445_v0 = vld [vmem:[%s3632_s14] sm:$0xff]  ;;  %v447_v1 = vld [vmem:[%s3632_s14 + $0x10] sm:$0xff]  ;;  %v446_v2 = vld [vmem:[%s3632_s14 + $0x8] sm:$0xff] }
  0x11   : > { %v456_v3 = vsel %vm455_vm0, %v445_v0, 0.0  ;;  %v462_v4 = vsel %vm455_vm0, %v447_v1, 0.0  ;;  %v448_v5 = vld [vmem:[%s3632_s14 + $0x18] sm:$0xff]  ;;  %v459_v6 = vsel %vm455_vm0, %v446_v2, 0.0  ;;  %v449_v7 = vld [vmem:[%s3632_s14 + $0x20] sm:$0xff]  ;;  %v450_v9 = vld [vmem:[%s3632_s14 + $0x28] sm:$0xff] }
  0x12   : > { %457 = vadd.xlane.f32.xlu0 %v456_v3  ;;  %463 = vadd.xlane.f32.xlu1 %v462_v4  ;;  %v465_v8 = vsel %vm455_vm0, %v448_v5, 0.0  ;;  %v468_v10 = vsel %vm455_vm0, %v449_v7, 0.0  ;;  %v471_v11 = vsel %vm455_vm0, %v450_v9, 0.0  ;;  %v451_v12 = vld [vmem:[%s3632_s14 + $0x30] sm:$0xff]  ;;  %v452_v13 = vld [vmem:[%s3632_s14 + $0x38] sm:$0xff] }
  0x13   : > { %v474_v14 = vsel %vm455_vm0, %v451_v12, 0.0  ;;  %v477_v15 = vsel %vm455_vm0, %v452_v13, 0.0 }
  0x16   : > { %460 = vadd.xlane.f32.xlu0 %v459_v6  ;;  %466 = vadd.xlane.f32.xlu1 %v465_v8 }
  0x1a   : > { %469 = vadd.xlane.f32.xlu0 %v468_v10  ;;  %472 = vadd.xlane.f32.xlu1 %v471_v11 }
  0x1e   : > { %475 = vadd.xlane.f32.xlu0 %v474_v14  ;;  %478 = vadd.xlane.f32.xlu1 %v477_v15 }
  0x9f   : > { %v458_v16 = vpop.xlane.xlu0 %457  ;;  %v464_v17 = vpop.xlane.xlu1 %463 }
  0xa0   : > { %v481_v18 = vmul.f32 0.03125, %v458_v16  ;;  %v483_v19 = vmul.f32 0.03125, %v464_v17 }
  0xa2   : > { %v3650_v20 = vsub.f32 %v445_v0, %v481_v18  ;;  %v3652_v21 = vsub.f32 %v447_v1, %v483_v19  ;;  %v2802_v19 = vld [vmem:[%s4635_s1] ss:$0 sm:$0xff] }
  0xa3   : > { %v461_v22 = vpop.xlane.xlu0 %460  ;;  %v467_v23 = vpop.xlane.xlu1 %466 }
  0xa4   : > { %v482_v24 = vmul.f32 0.03125, %v461_v22  ;;  %v484_v25 = vmul.f32 0.03125, %v467_v23  ;;  %v497_v26 = vmul.f32 %v3650_v20, %v3650_v20  ;;  %v499_v27 = vmul.f32 %v3652_v21, %v3652_v21 }
  0xa6   : > { %v3658_v28 = vsub.f32 %v446_v2, %v482_v24  ;;  %v3660_v29 = vsub.f32 %v448_v5, %v484_v25  ;;  %v505_v30 = vsel %vm455_vm0, %v497_v26, 0.0  ;;  %v511_v33 = vsel %vm455_vm0, %v499_v27, 0.0  ;;  %v2803_v27 = vld [vmem:[%s4636_s2] ss:$0 sm:$0xff] }
  0xa7   : > { %506 = vadd.xlane.f32.xlu0 %v505_v30  ;;  %v470_v31 = vpop.xlane.xlu0 %469  ;;  %v473_v32 = vpop.xlane.xlu1 %472 }
  0xa8   : > { %v485_v34 = vmul.f32 0.03125, %v470_v31  ;;  %v486_v35 = vmul.f32 0.03125, %v473_v32  ;;  %v498_v36 = vmul.f32 %v3658_v28, %v3658_v28  ;;  %v500_v37 = vmul.f32 %v3660_v29, %v3660_v29 }
  0xaa   : > { %v3668_v38 = vsub.f32 %v449_v7, %v485_v34  ;;  %v3670_v39 = vsub.f32 %v450_v9, %v486_v35  ;;  %v508_v40 = vsel %vm455_vm0, %v498_v36, 0.0  ;;  %v514_v43 = vsel %vm455_vm0, %v500_v37, 0.0 }
  0xab   : > { %512 = vadd.xlane.f32.xlu0 %v511_v33  ;;  %509 = vadd.xlane.f32.xlu1 %v508_v40  ;;  %v476_v41 = vpop.xlane.xlu0 %475  ;;  %v479_v42 = vpop.xlane.xlu1 %478 }
  0xac   : > { %v487_v44 = vmul.f32 0.03125, %v476_v41  ;;  %v488_v45 = vmul.f32 0.03125, %v479_v42  ;;  %v501_v46 = vmul.f32 %v3668_v38, %v3668_v38  ;;  %v502_v47 = vmul.f32 %v3670_v39, %v3670_v39 }
  0xae   : > { %v3678_v48 = vsub.f32 %v451_v12, %v487_v44  ;;  %v3680_v49 = vsub.f32 %v452_v13, %v488_v45  ;;  %v517_v50 = vsel %vm455_vm0, %v501_v46, 0.0  ;;  %v520_v51 = vsel %vm455_vm0, %v502_v47, 0.0 }
  0xaf   : > { %515 = vadd.xlane.f32.xlu1 %v514_v43  ;;  %518 = vadd.xlane.f32.xlu0 %v517_v50 }
  0xb0   : > { %v503_v52 = vmul.f32 %v3678_v48, %v3678_v48  ;;  %v504_v53 = vmul.f32 %v3680_v49, %v3680_v49 }
  0xb2   : > { %v523_v54 = vsel %vm455_vm0, %v503_v52, 0.0  ;;  %v526_v55 = vsel %vm455_vm0, %v504_v53, 0.0 }
  0xb3   : > { %521 = vadd.xlane.f32.xlu1 %v520_v51  ;;  %524 = vadd.xlane.f32.xlu0 %v523_v54 }
  0xb7   : > { %527 = vadd.xlane.f32.xlu1 %v526_v55 }
 0x134   : > { %v507_v58 = vpop.xlane.xlu0 %506 }
 0x135   : > { %v529_v59 = vmul.f32 0.03125, %v507_v58 }
 0x137   : > { %v537_v60 = vadd.f32 1e-05, %v529_v59 }
 0x138   : > { %v510_v61 = vpop.xlane.xlu1 %509  ;;  %v513_v62 = vpop.xlane.xlu0 %512 }
 0x139   : > { %3322 = vrsqrt.f32 %v537_v60  ;;  %v530_v63 = vmul.f32 0.03125, %v510_v61  ;;  %v531_v0 = vmul.f32 0.03125, %v513_v62 }
 0x13b   : > { %v538_v1 = vadd.f32 1e-05, %v530_v63  ;;  %v539_v2 = vadd.f32 1e-05, %v531_v0 }
 0x13c   : > { %v516_v3 = vpop.xlane.xlu1 %515  ;;  %v519_v4 = vpop.xlane.xlu0 %518 }
 0x13d   : > { %3324 = vrsqrt.f32 %v538_v1  ;;  %v532_v5 = vmul.f32 0.03125, %v516_v3  ;;  %v533_v6 = vmul.f32 0.03125, %v519_v4 }
 0x13e   : > { %3326 = vrsqrt.f32 %v539_v2 }
 0x13f   : > { %v540_v7 = vadd.f32 1e-05, %v532_v5  ;;  %v541_v8 = vadd.f32 1e-05, %v533_v6 }
 0x140   : > { %v522_v9 = vpop.xlane.xlu1 %521  ;;  %v525_v10 = vpop.xlane.xlu0 %524 }
 0x141   : > { %3328 = vrsqrt.f32 %v540_v7  ;;  %v534_v11 = vmul.f32 0.03125, %v522_v9  ;;  %v535_v12 = vmul.f32 0.03125, %v525_v10 }
 0x142   : > { %3330 = vrsqrt.f32 %v541_v8 }
 0x143   : > { %v3323_v13 = vpop.eup %3322  ;;  %v542_v14 = vadd.f32 1e-05, %v534_v11  ;;  %v543_v15 = vadd.f32 1e-05, %v535_v12 }
 0x144   : > { %v528_v16 = vpop.xlane.xlu1 %527  ;;  %v553_v17 = vmul.f32 %v3323_v13, %v3650_v20 }
 0x145   : > { %3332 = vrsqrt.f32 %v542_v14  ;;  %v536_v18 = vmul.f32 0.03125, %v528_v16  ;;  %v2973_v16 = vld [vmem:[%s4638_s4 + $0x8] sm:$0xff]  }
 0x146   : > { %3334 = vrsqrt.f32 %v543_v15  ;;  %v567_v26 = vmul.f32 %v2802_v19, %v553_v17  ;;  %v2910_v17 = vld [vmem:[%s4638_s4] sm:$0xff]  }
 0x147   : > { %v3325_v22 = vpop.eup %3324  ;;  %v544_v23 = vadd.f32 1e-05, %v536_v18  ;;  %v2915_v18 = vunpack.c.l.bf16 %v2973_v16 }
 0x148   : > { %v3327_v24 = vpop.eup %3326  ;;  %v554_v25 = vmul.f32 %v3325_v22, %v3658_v28  ;;  %v581_v33 = vadd.f32 %v2803_v27, %v567_v26 }
 0x149   : > { %3336 = vrsqrt.f32 %v544_v23  ;;  %v555_v20 = vmul.f32 %v3327_v24, %v3652_v21  ;;  %v2912_v23 = vunpack.c.h.bf16 %v2910_v17 }
 0x14a   : > { %v568_v30 = vmul.f32 %v2802_v19, %v554_v25 }
 0x14b   : > { %v3329_v31 = vpop.eup %3328  ;;  %v569_v36 = vmul.f32 %v2802_v19, %v555_v20  ;;  %v2916_v20 = vunpack.c.h.bf16 %v2973_v16 }
 0x14c   : > { %v3331_v32 = vpop.eup %3330  ;;  %v582_v34 = vadd.f32 %v2803_v27, %v568_v30  ;;  %v556_v35 = vmul.f32 %v3329_v31, %v3660_v29 }
 0x14d   : > { %v557_v37 = vmul.f32 %v3331_v32, %v3668_v38  ;;  %v583_v43 = vadd.f32 %v2803_v27, %v569_v36 }
 0x14e   : > { %v589_v40 = vpack.c.bf16 %v582_v34, %v581_v33  ;;  %v570_v28 = vmul.f32 %v2802_v19, %v556_v35  ;;  %v2975_v33 = vld [vmem:[%s4638_s4 + $0x18] sm:$0xff]  }
 0x14f   : > { %v3333_v41 = vpop.eup %3332  ;;  %v571_v45 = vmul.f32 %v2802_v19, %v557_v37  ;;  %v2923_v36 = vunpack.c.l.bf16 %v2975_v33 }
 0x150   : > { %v3335_v42 = vpop.eup %3334  ;;  %3086 = vmatprep.mubr.msk.bf16.mxu0 %vm455_vm0, %v589_v40  ;;  %v584_v44 = vadd.f32 %v2803_v27, %v570_v28  ;;  %v558_v21 = vmul.f32 %v3333_v41, %v3670_v39  ;;  %v2974_v28 = vld [vmem:[%s4638_s4 + $0x10] sm:$0xff]  }
 0x151   : > { %v559_v46 = vmul.f32 %v3335_v42, %v3678_v48  ;;  %v585_v29 = vadd.f32 %v2803_v27, %v571_v45 }
 0x152   : > { %v590_v47 = vpack.c.bf16 %v584_v44, %v583_v43  ;;  %v572_v50 = vmul.f32 %v2802_v19, %v558_v21  ;;  %v2919_v44 = vunpack.c.l.bf16 %v2974_v28 }
 0x153   : > { %v3337_v51 = vpop.eup %3336  ;;  %v573_v53 = vmul.f32 %v2802_v19, %v559_v46 }
 0x154   : > { %3087 = vmatmul.mubr.msk.bf16.vlgmr.msra.gmra.mrb[0].mxu0 %vm455_vm0, %v590_v47  ;;  %v586_v38 = vadd.f32 %v2803_v27, %v572_v50  ;;  %v560_v52 = vmul.f32 %v3337_v51, %v3680_v49  ;;  %v2924_v51 = vunpack.c.h.bf16 %v2975_v33 }
 0x155   : > { %v587_v56 = vadd.f32 %v2803_v27, %v573_v53 }
 0x156   : > { %v591_v54 = vpack.c.bf16 %v586_v38, %v585_v29  ;;  %v574_v55 = vmul.f32 %v2802_v19, %v560_v52  ;;  %v2911_v19 = vunpack.c.l.bf16 %v2910_v17  ;;  %v2920_v38 = vunpack.c.h.bf16 %v2974_v28 }
 0x158   : > { %3090 = vmatprep.mubr.msk.bf16.mxu0 %vm455_vm0, %v591_v54  ;;  %v588_v57 = vadd.f32 %v2803_v27, %v574_v55 }
 0x15a   : > { %v592_v39 = vpack.c.bf16 %v588_v57, %v587_v56 }
 0x15c   : > { %3091 = vmatmul.mubr.msk.bf16.gmra.mrb[4].mxu0 %vm455_vm0, %v592_v39 }
 0x227   : > { %v3088_v48 = vpop.f32.mrb[0].mxu0 }
 0x228   : > { %v655_v58 = vpop.f32.mrb[1].mxu0 }
 0x229   : > { %v3089_v59 = vpop.f32.mrb[2].mxu0 }
 0x22a   : > { %v687_v60 = vpack.c.bf16 %v3089_v59, %v3088_v48  ;;  %v658_v61 = vpop.f32.mrb[3].mxu0 }
 0x22b   : > { %v686_v62 = vpack.c.bf16 %v658_v61, %v655_v58 }
 0x22c   : > { %692 = vst.msk [vmem:[#allocation2 + $0x8] sm:$0xff] %vm690_vm1, %v687_v60 }
 0x22d   : > { %691 = vst.msk [vmem:[#allocation2] sm:$0xff] %vm690_vm1, %v686_v62 }
 0x22f   : > { %v3092_v49 = vpop.f32.mrb[4].mxu0 }
 0x230   : > { %v671_v63 = vpop.f32.mrb[5].mxu0 }
 0x231   : > { %v3093_v0 = vpop.f32.mrb[6].mxu0 }
 0x232   : > { %v689_v1 = vpack.c.bf16 %v3093_v0, %v3092_v49  ;;  %v674_v2 = vpop.f32.mrb[7].mxu0 }
 0x233   : > { %v688_v3 = vpack.c.bf16 %v674_v2, %v671_v63  ;;  %v3716_v4 = vld [vmem:[#allocation2 + $0x8] sm:$0xff] }
 0x234   : > { %694 = vst.msk [vmem:[#allocation2 + $0x18] sm:$0xff] %vm690_vm1, %v689_v1  ;;  %721 = vrot.lane.b32.xlu1 %v3716_v4, %s3532_s23  ;;  %v3720_v5 = vld [vmem:[#allocation2] sm:$0xff] }
 0x235   : > { %693 = vst.msk [vmem:[#allocation2 + $0x10] sm:$0xff] %vm690_vm1, %v688_v3  ;;  %719 = vrot.lane.b32.xlu0 %v3720_v5, %s3532_s23  ;;  %3102 = vmatprep.mubr.msk.bf16.mxu1 %vm727_vm2, %v3720_v5 }
 0x23b   : > { %v3729_v7 = vld [vmem:[#allocation2 + $0x18] sm:$0xff] }
 0x23c   : > { %v3726_v6 = vld [vmem:[#allocation2 + $0x10] sm:$0xff] }
 0x23d   : > { %723 = vrot.lane.b32.xlu1 %v3726_v6, %s3532_s23 }
 0x241   : > { %725 = vrot.lane.b32.xlu1 %v3729_v7, %s3532_s23  ;;  %s3537_s23 = smov 112  }
 0x2a6   : > { %v722_v10 = vpop.permute.xlu1 %721 }
 0x2a7   : > { %v720_v8 = vpop.permute.xlu0 %719  ;;  %v744_v11 = vsel %vm727_vm2, %v722_v10, 0 }
 0x2a8   : > { %3270 = vmatprep.subr.msk.bf16.mxu1 %vm727_vm2, %v720_v8  ;;  %v741_v9 = vsel %vm727_vm2, %v720_v8, 0 }
 0x2a9   : > { %3095 = vmatpush3.bf16.xpose.msra.mxu1 %v741_v9 }
 0x2aa   : > { %3271 = vmatprep.subr.msk.bf16.mxu1 %vm727_vm2, %v722_v10 }
 0x2af   : > { %v724_v12 = vpop.permute.xlu1 %723 }
 0x2b0   : > { %v747_v13 = vsel %vm727_vm2, %v724_v12, 0 }
 0x2b1   : > { %3097 = vmatpush3.bf16.xpose.msra.mxu1 %v744_v11 }
 0x2b2   : > { %3272 = vmatprep.subr.msk.bf16.mxu1 %vm727_vm2, %v724_v12 }
 0x2b3   : > { %v726_v14 = vpop.permute.xlu1 %725 }
 0x2b4   : > { %v750_v15 = vsel %vm727_vm2, %v726_v14, 0 }
 0x2b9   : > { %3099 = vmatpush3.bf16.xpose.msra.mxu1 %v747_v13 }
 0x2ba   : > { %3273 = vmatprep.subr.msk.bf16.mxu1 %vm727_vm2, %v726_v14 }
 0x2c1   : > { %3101 = vmatpush3.bf16.xpose.msra.mxu1 %v750_v15 }
 0x2c8   : > { %3103 = vmatmul.mubr.msk.bf16.vlgmr.msra.gmra.mrb[0].mxu1 %vm727_vm2, %v3716_v4 }
 0x2c9   : > { %3106 = vmatprep.mubr.msk.bf16.mxu1 %vm727_vm2, %v3726_v6 }
 0x2d0   : > { %3107 = vmatmul.mubr.msk.bf16.gmra.mrb[4].mxu1 %vm727_vm2, %v3729_v7 }
 0x39b   : > { %v3104_v22 = vpop.f32.mrb[0].mxu1 }
 0x39c   : > { %v795_v24 = vadd.f32 %v3104_v22, %v2915_v18  ;;  %v786_v25 = vpop.f32.mrb[1].mxu1 }
 0x39d   : > { %v3105_v26 = vpop.f32.mrb[2].mxu1  ;;  %v787_v27 = vadd.f32 %v2911_v19, %v786_v25 }
 0x39e   : > { %v789_v30 = vpop.f32.mrb[3].mxu1  ;;  %v824_v31 = vsel %vm817_vm3, %v795_v24, -inf  ;;  %v798_v35 = vadd.f32 %v3105_v26, %v2916_v20 }
 0x39f   : > { %v790_v32 = vadd.f32 %v2912_v23, %v789_v30  ;;  %825 = vmax.xlane.f32.xlu0 %v824_v31  ;;  %v818_v37 = vsel %vm817_vm3, %v787_v27, -inf }
 0x3a0   : > { %v827_v45 = vsel %vm817_vm3, %v798_v35, -inf }
 0x3a1   : > { %v821_v34 = vsel %vm817_vm3, %v790_v32, -inf }
 0x3a2   : > { %822 = vmax.xlane.f32.xlu1 %v821_v34 }
 0x3a3   : > { %v3108_v40 = vpop.f32.mrb[4].mxu1  ;;  %819 = vmax.xlane.f32.xlu0 %v818_v37 }
 0x3a4   : > { %v802_v41 = vpop.f32.mrb[5].mxu1  ;;  %v3761_v43 = vadd.f32 %v3108_v40, %v2923_v36 }
 0x3a5   : > { %v3109_v42 = vpop.f32.mrb[6].mxu1  ;;  %v3764_v46 = vadd.f32 %v2919_v44, %v802_v41 }
 0x3a6   : > { %v805_v21 = vpop.f32.mrb[7].mxu1  ;;  %v836_v47 = vsel %vm817_vm3, %v3761_v43, -inf  ;;  %v3774_v29 = vadd.f32 %v3109_v42, %v2924_v51 }
 0x3a7   : > { %828 = vmax.xlane.f32.xlu0 %v827_v45  ;;  %v830_v50 = vsel %vm817_vm3, %v3764_v46, -inf  ;;  %v3776_v52 = vadd.f32 %v2920_v38, %v805_v21 }
 0x3a8   : > { %v839_v53 = vsel %vm817_vm3, %v3774_v29, -inf }
 0x3a9   : > { %v833_v54 = vsel %vm817_vm3, %v3776_v52, -inf }
 0x3ab   : > { %837 = vmax.xlane.f32.xlu0 %v836_v47 }
 0x3af   : > { %831 = vmax.xlane.f32.xlu0 %v830_v50 }
 0x3b3   : > { %912 = vrot.lane.b32.xlu1 %v3716_v4, %s3533_s19 }
 0x3b7   : > { %914 = vrot.lane.b32.xlu1 %v3726_v6, %s3533_s19 }
 0x3bb   : > { %916 = vrot.lane.b32.xlu1 %v3729_v7, %s3533_s19 }
 0x3c5   : > { %910 = vrot.lane.b32.xlu0 %v3720_v5, %s3533_s19 }
 0x3df   : > { %840 = vmax.xlane.f32.xlu1 %v839_v53 }
 0x3e3   : > { %834 = vmax.xlane.f32.xlu1 %v833_v54 }
 0x3f4   : > { %1042 = vrot.lane.b32.xlu1 %v3716_v4, %s3534_s20 }
 0x3f8   : > { %1044 = vrot.lane.b32.xlu1 %v3726_v6, %s3534_s20 }
 0x42c   : > { %v826_v55 = vpop.xlane.xlu0 %825 }
 0x42d   : > { %v844_v56 = vsub.f32 %v795_v24, %v826_v55 }
 0x42f   : > { %v854_v57 = vmul.f32 1.442695, %v844_v56  ;;  %v823_v39 = vpop.xlane.xlu1 %822 }
 0x430   : > { %v820_v48 = vpop.xlane.xlu0 %819  ;;  %v843_v59 = vsub.f32 %v790_v32, %v823_v39 }
 0x431   : > { %3338 = vpow2.f32 %v854_v57  ;;  %v842_v58 = vsub.f32 %v787_v27, %v820_v48 }
 0x432   : > { %v852_v49 = vmul.f32 1.442695, %v843_v59 }
 0x433   : > { %v850_v60 = vmul.f32 1.442695, %v842_v58  ;;  %v913_v8 = vpop.permute.xlu1 %912 }
 0x434   : > { %v829_v61 = vpop.xlane.xlu0 %828 }
 0x435   : > { %3340 = vpow2.f32 %v850_v60  ;;  %v845_v62 = vsub.f32 %v798_v35, %v829_v61 }
 0x437   : > { %v856_v63 = vmul.f32 1.442695, %v845_v62  ;;  %v915_v13 = vpop.permute.xlu1 %914 }
 0x438   : > { %v838_v0 = vpop.xlane.xlu0 %837 }
 0x439   : > { %3342 = vpow2.f32 %v856_v63  ;;  %v848_v18 = vsub.f32 %v3761_v43, %v838_v0 }
 0x43a   : > { %3344 = vpow2.f32 %v852_v49 }
 0x43b   : > { %v3786_v1 = vpop.eup %3338  ;;  %v917_v17 = vpop.permute.xlu1 %916  ;;  %v862_v19 = vmul.f32 1.442695, %v848_v18 }
 0x43c   : > { %v832_v2 = vpop.xlane.xlu0 %831  ;;  %v872_v3 = vsel %vm817_vm3, %v3786_v1, 0.0 }
 0x43d   : > { %873 = vadd.xlane.f32.xlu0 %v872_v3  ;;  %v846_v22 = vsub.f32 %v3764_v46, %v832_v2  ;;  %3346 = vpow2.f32 %v862_v19 }
 0x43f   : > { %v3790_v9 = vpop.eup %3340  ;;  %v858_v23 = vmul.f32 1.442695, %v846_v22 }
 0x440   : > { %v911_v10 = vpop.permute.xlu0 %910  ;;  %v866_v11 = vsel %vm817_vm3, %v3790_v9, 0.0 }
 0x441   : > { %867 = vadd.xlane.f32.xlu0 %v866_v11  ;;  %3110 = vmatprep.subr.bf16.mxu0 %v911_v10  ;;  %3348 = vpow2.f32 %v858_v23 }
 0x442   : > { %3111 = vmatpush3.bf16.msra.mxu0 %v911_v10 }
 0x443   : > { %v3794_v12 = vpop.eup %3342  ;;  %3112 = vmatprep.subr.bf16.mxu0 %v913_v8 }
 0x444   : > { %v875_v14 = vsel %vm817_vm3, %v3794_v12, 0.0  ;;  %v3798_v15 = vpop.eup %3344 }
 0x445   : > { %876 = vadd.xlane.f32.xlu1 %v875_v14  ;;  %v869_v16 = vsel %vm817_vm3, %v3798_v15, 0.0 }
 0x446   : > { %3113 = vmatpush3.bf16.msra.mxu0 %v913_v8 }
 0x447   : > { %3114 = vmatprep.subr.bf16.mxu0 %v915_v13  ;;  %v3810_v30 = vpop.eup %3346 }
 0x448   : > { %v884_v32 = vsel %vm817_vm3, %v3810_v30, 0.0 }
 0x449   : > { %870 = vadd.xlane.f32.xlu1 %v869_v16 }
 0x44a   : > { %3115 = vmatpush3.bf16.msra.mxu0 %v915_v13 }
 0x44b   : > { %3116 = vmatprep.subr.bf16.mxu0 %v917_v17  ;;  %v3814_v33 = vpop.eup %3348 }
 0x44c   : > { %v878_v34 = vsel %vm817_vm3, %v3814_v33, 0.0 }
 0x44e   : > { %3117 = vmatpush3.bf16.msra.mxu0 %v917_v17 }
 0x457   : > { %1040 = vrot.lane.b32.xlu0 %v3720_v5, %s3534_s20 }
 0x45a   : > { %1376 = vrot.lane.b32.xlu1 %v3720_v5, %s3535_s21 }
 0x46c   : > { %v841_v24 = vpop.xlane.xlu1 %840 }
 0x46d   : > { %v849_v25 = vsub.f32 %v3774_v29, %v841_v24 }
 0x46f   : > { %v864_v26 = vmul.f32 1.442695, %v849_v25 }
 0x470   : > { %v835_v27 = vpop.xlane.xlu1 %834 }
 0x471   : > { %3350 = vpow2.f32 %v864_v26  ;;  %v847_v20 = vsub.f32 %v3776_v52, %v835_v27 }
 0x473   : > { %v860_v31 = vmul.f32 1.442695, %v847_v20 }
 0x474   : > { %v1043_v28 = vpop.permute.xlu1 %1042 }
 0x475   : > { %3352 = vpow2.f32 %v860_v31  ;;  %v1064_v48 = vsel %vm727_vm2, %v1043_v28, 0 }
 0x476   : > { %885 = vadd.xlane.f32.xlu0 %v884_v32 }
 0x478   : > { %v1045_v42 = vpop.permute.xlu1 %1044 }
 0x479   : > { %v1067_v58 = vsel %vm727_vm2, %v1045_v42, 0 }
 0x47a   : > { %879 = vadd.xlane.f32.xlu0 %v878_v34 }
 0x47b   : > { %v3818_v35 = vpop.eup %3350 }
 0x47c   : > { %v887_v36 = vsel %vm817_vm3, %v3818_v35, 0.0 }
 0x47e   : > { %888 = vadd.xlane.f32.xlu0 %v887_v36 }
 0x47f   : > { %v3822_v37 = vpop.eup %3352 }
 0x480   : > { %v881_v40 = vsel %vm817_vm3, %v3822_v37, 0.0 }
 0x481   : > { %882 = vadd.xlane.f32.xlu1 %v881_v40 }
 0x492   : > { %1378 = vrot.lane.b32.xlu1 %v3716_v4, %s3535_s21 }
 0x494   : > { %1046 = vrot.lane.b32.xlu0 %v3729_v7, %s3534_s20  ;;  %s3545_s20 = smov 24  }
 0x496   : > { %1034 = vrot.lane.b32.xlu1 %v3716_v4, %s3536_s22 }
 0x498   : > { %1032 = vrot.lane.b32.xlu0 %v3720_v5, %s3536_s22 }
 0x49a   : > { %1036 = vrot.lane.b32.xlu1 %v3726_v6, %s3536_s22 }
 0x49c   : > { %1380 = vrot.lane.b32.xlu0 %v3726_v6, %s3535_s21 }
 0x49e   : > { %1382 = vrot.lane.b32.xlu1 %v3729_v7, %s3535_s21 }
 0x4a0   : > { %1038 = vrot.lane.b32.xlu0 %v3729_v7, %s3536_s22 }
 0x4a2   : > { %1370 = vrot.lane.b32.xlu1 %v3716_v4, %s3537_s23 }
 0x4a4   : > { %1368 = vrot.lane.b32.xlu0 %v3720_v5, %s3537_s23 }
 0x4a6   : > { %1374 = vrot.lane.b32.xlu1 %v3729_v7, %s3537_s23 }
 0x4a8   : > { %1372 = vrot.lane.b32.xlu0 %v3726_v6, %s3537_s23  ;;  %s3538_s23 = smov 56  }
 0x4ca   : > { %v874_v41 = vpop.xlane.xlu0 %873 }
 0x4ce   : > { %v868_v43 = vpop.xlane.xlu0 %867 }
 0x4d2   : > { %v877_v44 = vpop.xlane.xlu1 %876  ;;  %v1041_v21 = vpop.permute.xlu0 %1040 }
 0x4d3   : > { %3274 = vmatprep.subr.msk.bf16.mxu0 %vm727_vm2, %v1041_v21  ;;  %3354 = vrcp.f32 %v877_v44  ;;  %v1061_v39 = vsel %vm727_vm2, %v1041_v21, 0  ;;  %v2980_v44 = vld [vmem:[%s4638_s4 + $0x40] sm:$0xff]  }
 0x4d4   : > { %3356 = vrcp.f32 %v868_v43 }
 0x4d5   : > { %3358 = vrcp.f32 %v874_v41 }
 0x4d6   : > { %v871_v45 = vpop.xlane.xlu1 %870 }
 0x4d7   : > { %3360 = vrcp.f32 %v871_v45 }
 0x4da   : > { %v1377_v46 = vpop.permute.xlu1 %1376 }
 0x4db   : > { %3278 = vmatprep.subr.msk.bf16.mxu1 %vm727_vm2, %v1377_v46  ;;  %v1397_v47 = vsel %vm727_vm2, %v1377_v46, 0  ;;  %v2981_v46 = vld [vmem:[%s4638_s4 + $0x48] sm:$0xff]  }
 0x4dc   : > { %3159 = vmatpush3.bf16.xpose.msra.mxu1 %v1397_v47 }
 0x4dd   : > { %v3355_v50 = vpop.eup %3354 }
 0x4de   : > { %v3357_v51 = vpop.eup %3356  ;;  %v901_v52 = vmul.f32 %v3355_v50, %v3794_v12  ;;  %v2943_v50 = vunpack.c.l.bf16 %v2980_v44 }
 0x4df   : > { %v3359_v29 = vpop.eup %3358  ;;  %v898_v53 = vmul.f32 %v3357_v51, %v3790_v9 }
 0x4e0   : > { %v900_v55 = vmul.f32 %v3359_v29, %v3786_v1  ;;  %v2947_v29 = vunpack.c.l.bf16 %v2981_v46 }
 0x4e1   : > { %v3361_v38 = vpop.eup %3360 }
 0x4e2   : > { %v899_v54 = vmul.f32 %v3361_v38, %v3798_v15  ;;  %v907_v57 = vpack.c.bf16 %v901_v52, %v900_v55  ;;  %v2944_v52 = vunpack.c.h.bf16 %v2980_v44  ;;  %v2948_v55 = vunpack.c.h.bf16 %v2981_v46 }
 0x4e4   : > { %v906_v56 = vpack.c.bf16 %v899_v54, %v898_v53 }
 0x4e6   : > { %3118 = vmatprep.mubr.msk.bf16.mxu0 %vm817_vm3, %v906_v56 }
 0x4e7   : > { %3119 = vmatmul.mubr.msk.bf16.vlgmr.msra.gmra.mrb[8].mxu0 %vm817_vm3, %v907_v57  ;;  %v3899_v57 = vld [vmem:[%s4638_s4 + $0x38] sm:$0xff]  }
 0x4e8   : > { %3127 = vmatpush3.bf16.xpose.msra.mxu0 %v1061_v39 }
 0x4e9   : > { %3275 = vmatprep.subr.msk.bf16.mxu0 %vm727_vm2, %v1043_v28 }
 0x4f0   : > { %3129 = vmatpush3.bf16.xpose.msra.mxu0 %v1064_v48  ;;  %v3904_v48 = vld [vmem:[%s4638_s4 + $0x30] sm:$0xff]  }
 0x4f1   : > { %3276 = vmatprep.subr.msk.bf16.mxu0 %vm727_vm2, %v1045_v42 }
 0x4f8   : > { %3131 = vmatpush3.bf16.xpose.msra.mxu0 %v1067_v58  ;;  %v2940_v58 = vunpack.c.h.bf16 %v3899_v57 }
 0x503   : > { %v886_v59 = vpop.xlane.xlu0 %885 }
 0x507   : > { %v880_v60 = vpop.xlane.xlu0 %879 }
 0x50b   : > { %v889_v61 = vpop.xlane.xlu0 %888 }
 0x50c   : > { %3362 = vrcp.f32 %v889_v61 }
 0x50d   : > { %3364 = vrcp.f32 %v880_v60 }
 0x50e   : > { %3366 = vrcp.f32 %v886_v59  ;;  %v883_v62 = vpop.xlane.xlu1 %882  ;;  %v2982_v59 = vld [vmem:[%s4638_s4 + $0x50] sm:$0xff]  }
 0x50f   : > { %3368 = vrcp.f32 %v883_v62  ;;  %v1047_v49 = vpop.permute.xlu0 %1046 }
 0x510   : > { %3277 = vmatprep.subr.msk.bf16.mxu0 %vm727_vm2, %v1047_v49  ;;  %v1070_v63 = vsel %vm727_vm2, %v1047_v49, 0 }
 0x511   : > { %3133 = vmatpush3.bf16.xpose.msra.mxu0 %v1070_v63  ;;  %v2936_v63 = vunpack.c.h.bf16 %v3904_v48 }
 0x512   : > { %v1379_v0 = vpop.permute.xlu1 %1378 }
 0x513   : > { %3279 = vmatprep.subr.msk.bf16.mxu1 %vm727_vm2, %v1379_v0  ;;  %v1033_v1 = vpop.permute.xlu0 %1032  ;;  %v1400_v2 = vsel %vm727_vm2, %v1379_v0, 0 }
 0x514   : > { %3161 = vmatpush3.bf16.xpose.msra.mxu1 %v1400_v2 }
 0x516   : > { %v3363_v3 = vpop.eup %3362  ;;  %v1035_v8 = vpop.permute.xlu1 %1034 }
 0x517   : > { %v3365_v9 = vpop.eup %3364  ;;  %v1381_v10 = vpop.permute.xlu0 %1380  ;;  %v905_v13 = vmul.f32 %v3363_v3, %v3818_v35 }
 0x518   : > { %v3367_v11 = vpop.eup %3366  ;;  %3280 = vmatprep.subr.msk.bf16.mxu1 %vm727_vm2, %v1381_v10  ;;  %v902_v15 = vmul.f32 %v3365_v9, %v3814_v33  ;;  %v1403_v18 = vsel %vm727_vm2, %v1381_v10, 0  ;;  %v2951_v9 = vunpack.c.l.bf16 %v2982_v59 }
 0x519   : > { %v3369_v12 = vpop.eup %3368  ;;  %v904_v19 = vmul.f32 %v3367_v11, %v3810_v30 }
 0x51a   : > { %v1037_v14 = vpop.permute.xlu1 %1036  ;;  %v903_v16 = vmul.f32 %v3369_v12, %v3822_v37 }
 0x51b   : > { %v1039_v17 = vpop.permute.xlu0 %1038  ;;  %v909_v23 = vpack.c.bf16 %v905_v13, %v904_v19 }
 0x51c   : > { %3163 = vmatpush3.bf16.xpose.msra.mxu1 %v1403_v18  ;;  %v908_v22 = vpack.c.bf16 %v903_v16, %v902_v15  ;;  %v2952_v16 = vunpack.c.h.bf16 %v2982_v59 }
 0x51e   : > { %v1383_v24 = vpop.permute.xlu1 %1382  ;;  %3122 = vmatprep.mubr.msk.bf16.mxu0 %vm817_vm3, %v908_v22 }
 0x51f   : > { %3123 = vmatmul.mubr.msk.bf16.gmra.mrb[12].mxu0 %vm817_vm3, %v909_v23  ;;  %3281 = vmatprep.subr.msk.bf16.mxu1 %vm727_vm2, %v1383_v24  ;;  %v1369_v25 = vpop.permute.xlu0 %1368  ;;  %v1406_v26 = vsel %vm727_vm2, %v1383_v24, 0 }
 0x520   : > { %3134 = vmatprep.mubr.msk.bf16.mxu0 %vm727_vm2, %v1033_v1  ;;  %3166 = vmatprep.mubr.msk.bf16.mxu1 %vm727_vm2, %v1369_v25  ;;  %v2983_v1 = vld [vmem:[%s4638_s4 + $0x58] sm:$0xff]  }
 0x521   : > { %v2955_v13 = vunpack.c.l.bf16 %v2983_v1  ;;  %v2956_v19 = vunpack.c.h.bf16 %v2983_v1 }
 0x522   : > { %v1371_v27 = vpop.permute.xlu1 %1370 }
 0x523   : > { %v1373_v20 = vpop.permute.xlu0 %1372 }
 0x524   : > { %3165 = vmatpush3.bf16.xpose.msra.mxu1 %v1406_v26 }
 0x526   : > { %v1375_v30 = vpop.permute.xlu1 %1374 }
 0x527   : > { %3135 = vmatmul.mubr.msk.bf16.vlgmr.msra.gmra.mrb[16].mxu0 %vm727_vm2, %v1035_v8 }
 0x528   : > { %3138 = vmatprep.mubr.msk.bf16.mxu0 %vm727_vm2, %v1037_v14 }
 0x52b   : > { %3167 = vmatmul.mubr.msk.bf16.vlgmr.msra.gmra.mrb[8].mxu1 %vm727_vm2, %v1371_v27 }
 0x52c   : > { %3170 = vmatprep.mubr.msk.bf16.mxu1 %vm727_vm2, %v1373_v20 }
 0x52f   : > { %3139 = vmatmul.mubr.msk.bf16.gmra.mrb[20].mxu0 %vm727_vm2, %v1039_v17 }
 0x533   : > { %3171 = vmatmul.mubr.msk.bf16.gmra.mrb[12].mxu1 %vm727_vm2, %v1375_v30 }
 0x5ba   : > { %v3120_v31 = vpop.f32.mrb[8].mxu0 }
 0x5bb   : > { %v968_v32 = vpop.f32.mrb[9].mxu0 }
 0x5bc   : > { %v3121_v33 = vpop.f32.mrb[10].mxu0 }
 0x5bd   : > { %v1000_v34 = vpack.c.bf16 %v3121_v33, %v3120_v31  ;;  %v971_v35 = vpop.f32.mrb[11].mxu0  ;;  %v2977_v33 = vld [vmem:[%s4638_s4 + $0x28] sm:$0xff]  }
 0x5be   : > { %v999_v36 = vpack.c.bf16 %v971_v35, %v968_v32  ;;  %v2976_v35 = vld [vmem:[%s4638_s4 + $0x20] sm:$0xff]  }
 0x5bf   : > { %1004 = vst.msk [vmem:[#allocation3 + $0x8] sm:$0xff] %vm727_vm2, %v1000_v34  ;;  %v2931_v34 = vunpack.c.l.bf16 %v2977_v33 }
 0x5c0   : > { %1003 = vst.msk [vmem:[#allocation3] sm:$0xff] %vm727_vm2, %v999_v36  ;;  %v2928_v36 = vunpack.c.h.bf16 %v2976_v35 }
 0x5f2   : > { %v3124_v37 = vpop.f32.mrb[12].mxu0 }
 0x5f3   : > { %v984_v40 = vpop.f32.mrb[13].mxu0 }
 0x5f4   : > { %v3125_v28 = vpop.f32.mrb[14].mxu0 }
 0x5f5   : > { %v1002_v41 = vpack.c.bf16 %v3125_v28, %v3124_v37  ;;  %v987_v42 = vpop.f32.mrb[15].mxu0 }
 0x5f6   : > { %v1001_v43 = vpack.c.bf16 %v987_v42, %v984_v40  ;;  %v2927_v40 = vunpack.c.l.bf16 %v2976_v35  ;;  %v2932_v42 = vunpack.c.h.bf16 %v2977_v33 }
 0x5f7   : > { %1006 = vst.msk [vmem:[#allocation3 + $0x18] sm:$0xff] %vm727_vm2, %v1002_v41 }
 0x5f8   : > { %1005 = vst.msk [vmem:[#allocation3 + $0x10] sm:$0xff] %vm727_vm2, %v1001_v43 }
 0x5fa   : > { %v3885_v21 = vpop.f32.mrb[16].mxu0 }
 0x5fb   : > { %v3887_v45 = vpop.f32.mrb[17].mxu0  ;;  %v3959_v37 = vadd.f32 %v3885_v21, %v2931_v34  ;;  %v2939_v21 = vunpack.c.l.bf16 %v3899_v57 }
 0x5fc   : > { %v3892_v47 = vpop.f32.mrb[18].mxu0  ;;  %v3964_v41 = vadd.f32 %v2927_v40, %v3887_v45 }
 0x5fd   : > { %v1109_v51 = vpop.f32.mrb[19].mxu0  ;;  %v1143_v43 = vsel %vm817_vm3, %v3959_v37, -inf  ;;  %v3971_v46 = vadd.f32 %v3892_v47, %v2932_v42 }
 0x5fe   : > { %v3168_v38 = vpop.f32.mrb[8].mxu1  ;;  %v3961_v28 = vadd.f32 %v2928_v36, %v1109_v51  ;;  %v2935_v51 = vunpack.c.l.bf16 %v3904_v48 }
 0x5ff   : > { %v1442_v53 = vpop.f32.mrb[9].mxu1  ;;  %v3910_v60 = vadd.f32 %v3168_v38, %v2947_v29  ;;  %v1146_v29 = vsel %vm817_vm3, %v3971_v46, -inf }
 0x600   : > { %v3894_v54 = vadd.f32 %v2943_v50, %v1442_v53  ;;  %v3169_v56 = vpop.f32.mrb[10].mxu1  ;;  %v1140_v44 = vsel %vm817_vm3, %v3961_v28, -inf  ;;  %v1137_v50 = vsel %vm817_vm3, %v3964_v41, -inf }
 0x601   : > { %v1445_v39 = vpop.f32.mrb[11].mxu1  ;;  %v3920_v2 = vadd.f32 %v3169_v56, %v2948_v55  ;;  %v1479_v15 = vsel %vm817_vm3, %v3910_v60, -inf }
 0x602   : > { %v3912_v61 = vadd.f32 %v2944_v52, %v1445_v39  ;;  %v3140_v62 = vpop.f32.mrb[20].mxu0  ;;  %v1473_v49 = vsel %vm817_vm3, %v3894_v54, -inf }
 0x603   : > { %v1122_v0 = vpop.f32.mrb[21].mxu0  ;;  %1474 = vmax.xlane.f32.xlu0 %v1473_v49  ;;  %v1482_v23 = vsel %vm817_vm3, %v3920_v2, -inf  ;;  %v3976_v45 = vadd.f32 %v3140_v62, %v2939_v21 }
 0x604   : > { %v3141_v3 = vpop.f32.mrb[22].mxu0  ;;  %v1476_v8 = vsel %vm817_vm3, %v3912_v61, -inf  ;;  %v3981_v38 = vadd.f32 %v2935_v51, %v1122_v0 }
 0x605   : > { %v3924_v10 = vadd.f32 %v3141_v3, %v2940_v58  ;;  %v1125_v11 = vpop.f32.mrb[23].mxu0  ;;  %1477 = vmax.xlane.f32.xlu1 %v1476_v8  ;;  %v1155_v47 = vsel %vm817_vm3, %v3976_v45, -inf }
 0x606   : > { %v3926_v12 = vadd.f32 %v2936_v63, %v1125_v11  ;;  %v3172_v14 = vpop.f32.mrb[12].mxu1  ;;  %v1149_v52 = vsel %vm817_vm3, %v3981_v38, -inf }
 0x607   : > { %1480 = vmax.xlane.f32.xlu0 %v1479_v15  ;;  %v1458_v17 = vpop.f32.mrb[13].mxu1  ;;  %v3934_v25 = vadd.f32 %v3172_v14, %v2955_v13 }
 0x608   : > { %v3930_v18 = vadd.f32 %v2951_v9, %v1458_v17  ;;  %v3173_v22 = vpop.f32.mrb[14].mxu1  ;;  %v1152_v33 = vsel %vm817_vm3, %v3926_v12, -inf }
 0x609   : > { %1483 = vmax.xlane.f32.xlu1 %v1482_v23  ;;  %v1461_v24 = vpop.f32.mrb[15].mxu1  ;;  %v3940_v20 = vadd.f32 %v3173_v22, %v2956_v19  ;;  %v1491_v31 = vsel %vm817_vm3, %v3934_v25, -inf }
 0x60a   : > { %v3936_v26 = vadd.f32 %v2952_v16, %v1461_v24  ;;  %v1485_v27 = vsel %vm817_vm3, %v3930_v18, -inf }
 0x60b   : > { %1486 = vmax.xlane.f32.xlu0 %v1485_v27  ;;  %v1494_v32 = vsel %vm817_vm3, %v3940_v20, -inf  ;;  %v1158_v27 = vsel %vm817_vm3, %v3924_v10, -inf }
 0x60c   : > { %v1488_v30 = vsel %vm817_vm3, %v3936_v26, -inf }
 0x60d   : > { %1489 = vmax.xlane.f32.xlu1 %v1488_v30 }
 0x60f   : > { %1492 = vmax.xlane.f32.xlu0 %v1491_v31 }
 0x611   : > { %1495 = vmax.xlane.f32.xlu1 %v1494_v32 }
 0x622   : > { %1231 = vrot.lane.b32.xlu1 %v3716_v4, %s3538_s23 }
 0x625   : > { %1229 = vrot.lane.b32.xlu0 %v3720_v5, %s3538_s23 }
 0x644   : > { %1144 = vmax.xlane.f32.xlu0 %v1143_v43 }
 0x646   : > { %1141 = vmax.xlane.f32.xlu1 %v1140_v44 }
 0x648   : > { %1138 = vmax.xlane.f32.xlu0 %v1137_v50 }
 0x64c   : > { %1147 = vmax.xlane.f32.xlu0 %v1146_v29 }
 0x650   : > { %1156 = vmax.xlane.f32.xlu0 %v1155_v47 }
 0x654   : > { %1150 = vmax.xlane.f32.xlu0 %v1149_v52 }
 0x66a   : > { %1233 = vrot.lane.b32.xlu0 %v3726_v6, %s3538_s23 }
 0x690   : > { %v1475_v53 = vpop.xlane.xlu0 %1474 }
 0x691   : > { %v1497_v55 = vsub.f32 %v3894_v54, %v1475_v53 }
 0x692   : > { %v1478_v56 = vpop.xlane.xlu1 %1477 }
 0x693   : > { %v1505_v57 = vmul.f32 1.442695, %v1497_v55  ;;  %v1498_v39 = vsub.f32 %v3912_v61, %v1478_v56 }
 0x694   : > { %v1481_v48 = vpop.xlane.xlu0 %1480 }
 0x695   : > { %3370 = vpow2.f32 %v1505_v57  ;;  %v1507_v58 = vmul.f32 1.442695, %v1498_v39  ;;  %v1499_v59 = vsub.f32 %v3910_v60, %v1481_v48 }
 0x696   : > { %v1484_v62 = vpop.xlane.xlu1 %1483 }
 0x697   : > { %3372 = vpow2.f32 %v1507_v58  ;;  %v1509_v49 = vmul.f32 1.442695, %v1499_v59  ;;  %v1500_v63 = vsub.f32 %v3920_v2, %v1484_v62 }
 0x698   : > { %v3993_v0 = vpop.xlane.xlu0 %1486 }
 0x699   : > { %3374 = vpow2.f32 %v1509_v49  ;;  %v1511_v1 = vmul.f32 1.442695, %v1500_v63 }
 0x69a   : > { %v3995_v3 = vpop.xlane.xlu1 %1489 }
 0x69b   : > { %3376 = vpow2.f32 %v1511_v1 }
 0x69c   : > { %v3997_v54 = vpop.xlane.xlu0 %1492 }
 0x69e   : > { %v3999_v61 = vpop.xlane.xlu1 %1495 }
 0x69f   : > { %v4001_v8 = vpop.eup %3370  ;;  %v1504_v56 = vsub.f32 %v3940_v20, %v3999_v61 }
 0x6a0   : > { %v1230_v9 = vpop.permute.xlu0 %1229  ;;  %v1521_v60 = vsel %vm817_vm3, %v4001_v8, 0.0 }
 0x6a1   : > { %v4005_v11 = vpop.eup %3372  ;;  %1522 = vadd.xlane.f32.xlu1 %v1521_v60  ;;  %3142 = vmatprep.subr.bf16.mxu0 %v1230_v9 }
 0x6a2   : > { %v1232_v2 = vpop.permute.xlu1 %1231  ;;  %3143 = vmatpush3.bf16.msra.mxu0 %v1230_v9  ;;  %v1524_v13 = vsel %vm817_vm3, %v4005_v11, 0.0 }
 0x6a3   : > { %v4009_v14 = vpop.eup %3374  ;;  %1525 = vadd.xlane.f32.xlu0 %v1524_v13  ;;  %3144 = vmatprep.subr.bf16.mxu0 %v1232_v2 }
 0x6a4   : > { %v1527_v15 = vsel %vm817_vm3, %v4009_v14, 0.0 }
 0x6a5   : > { %v4013_v16 = vpop.eup %3376 }
 0x6a6   : > { %3145 = vmatpush3.bf16.msra.mxu0 %v1232_v2  ;;  %v1530_v17 = vsel %vm817_vm3, %v4013_v16, 0.0 }
 0x6a7   : > { %1528 = vadd.xlane.f32.xlu0 %v1527_v15 }
 0x6ab   : > { %1531 = vadd.xlane.f32.xlu0 %v1530_v17 }
 0x6b2   : > { %1235 = vrot.lane.b32.xlu1 %v3729_v7, %s3538_s23 }
 0x6d1   : > { %v1145_v19 = vpop.xlane.xlu0 %1144 }
 0x6d2   : > { %v1163_v22 = vsub.f32 %v3959_v37, %v1145_v19 }
 0x6d3   : > { %v1142_v44 = vpop.xlane.xlu1 %1141 }
 0x6d4   : > { %v1173_v23 = vmul.f32 1.442695, %v1163_v22  ;;  %v1162_v21 = vsub.f32 %v3961_v28, %v1142_v44 }
 0x6d5   : > { %v1139_v24 = vpop.xlane.xlu0 %1138 }
 0x6d6   : > { %3378 = vpow2.f32 %v1173_v23  ;;  %v1161_v30 = vsub.f32 %v3964_v41, %v1139_v24  ;;  %1159 = vmax.xlane.f32.xlu1 %v1158_v27  ;;  %v1171_v29 = vmul.f32 1.442695, %v1162_v21 }
 0x6d8   : > { %v1169_v31 = vmul.f32 1.442695, %v1161_v30 }
 0x6d9   : > { %v1148_v32 = vpop.xlane.xlu0 %1147 }
 0x6da   : > { %3380 = vpow2.f32 %v1169_v31  ;;  %1153 = vmax.xlane.f32.xlu1 %v1152_v33  ;;  %v1164_v43 = vsub.f32 %v3971_v46, %v1148_v32  ;;  %v1503_v46 = vsub.f32 %v3934_v25, %v3997_v54 }
 0x6dc   : > { %v1175_v50 = vmul.f32 1.442695, %v1164_v43 }
 0x6dd   : > { %v1157_v34 = vpop.xlane.xlu0 %1156 }
 0x6de   : > { %v1167_v51 = vsub.f32 %v3976_v45, %v1157_v34  ;;  %3382 = vpow2.f32 %v1175_v50  ;;  %v1517_v45 = vmul.f32 1.442695, %v1503_v46 }
 0x6df   : > { %3384 = vpow2.f32 %v1171_v29 }
 0x6e0   : > { %v4025_v35 = vpop.eup %3378  ;;  %v1181_v52 = vmul.f32 1.442695, %v1167_v51 }
 0x6e1   : > { %v1151_v36 = vpop.xlane.xlu0 %1150  ;;  %v1191_v37 = vsel %vm817_vm3, %v4025_v35, 0.0 }
 0x6e2   : > { %1192 = vadd.xlane.f32.xlu0 %v1191_v37  ;;  %v1165_v47 = vsub.f32 %v3981_v38, %v1151_v36  ;;  %3386 = vpow2.f32 %v1181_v52 }
 0x6e4   : > { %v4029_v40 = vpop.eup %3380  ;;  %v1177_v53 = vmul.f32 1.442695, %v1165_v47 }
 0x6e5   : > { %v1234_v42 = vpop.permute.xlu0 %1233  ;;  %v1185_v41 = vsel %vm817_vm3, %v4029_v40, 0.0 }
 0x6e6   : > { %1186 = vadd.xlane.f32.xlu0 %v1185_v41  ;;  %3146 = vmatprep.subr.bf16.mxu0 %v1234_v42  ;;  %3388 = vpow2.f32 %v1177_v53  ;;  %v1502_v41 = vsub.f32 %v3936_v26, %v3995_v3 }
 0x6e7   : > { %3147 = vmatpush3.bf16.msra.mxu0 %v1234_v42 }
 0x6e8   : > { %v4047_v28 = vpop.eup %3382  ;;  %v1515_v43 = vmul.f32 1.442695, %v1502_v41 }
 0x6e9   : > { %v1194_v38 = vsel %vm817_vm3, %v4047_v28, 0.0  ;;  %v4053_v57 = vpop.eup %3384 }
 0x6ea   : > { %v1188_v25 = vsel %vm817_vm3, %v4053_v57, 0.0 }
 0x6eb   : > { %1567 = vrot.lane.b32.xlu1 %v3716_v4, %s3539_s15  ;;  %v1501_v4 = vsub.f32 %v3930_v18, %v3993_v0  ;;  %v1519_v18 = vmul.f32 1.442695, %v1504_v56  ;;  %v4123_v56 = vld [vmem:[#allocation2 + $0x8] sm:$0xff] }
 0x6ec   : > { %v4055_v39 = vpop.eup %3386 }
 0x6ed   : > { %v1513_v55 = vmul.f32 1.442695, %v1501_v4  ;;  %v1203_v20 = vsel %vm817_vm3, %v4055_v39, 0.0 }
 0x6ef   : > { %1569 = vrot.lane.b32.xlu1 %v3726_v6, %s3539_s15  ;;  %3390 = vpow2.f32 %v1513_v55 }
 0x6f0   : > { %3392 = vpow2.f32 %v1517_v45  ;;  %v4059_v48 = vpop.eup %3388 }
 0x6f1   : > { %3394 = vpow2.f32 %v1519_v18  ;;  %v1197_v58 = vsel %vm817_vm3, %v4059_v48, 0.0 }
 0x6f9   : > { %v4065_v59 = vpop.eup %3390 }
 0x6fa   : > { %v1533_v62 = vsel %vm817_vm3, %v4065_v59, 0.0  ;;  %v4069_v49 = vpop.eup %3392 }
 0x6fb   : > { %v1539_v63 = vsel %vm817_vm3, %v4069_v49, 0.0  ;;  %v4073_v0 = vpop.eup %3394 }
 0x6fc   : > { %1565 = vrot.lane.b32.xlu0 %v3720_v5, %s3539_s15  ;;  %v1542_v1 = vsel %vm817_vm3, %v4073_v0, 0.0 }
 0x713   : > { %1195 = vadd.xlane.f32.xlu1 %v1194_v38 }
 0x717   : > { %1189 = vadd.xlane.f32.xlu1 %v1188_v25 }
 0x71b   : > { %1204 = vadd.xlane.f32.xlu1 %v1203_v20  ;;  %1198 = vadd.xlane.f32.xlu0 %v1197_v58 }
 0x71f   : > { %1534 = vadd.xlane.f32.xlu0 %v1533_v62 }
 0x723   : > { %1540 = vadd.xlane.f32.xlu0 %v1539_v63 }
 0x727   : > { %1543 = vadd.xlane.f32.xlu0 %v1542_v1 }
 0x72e   : > { %v1523_v54 = vpop.xlane.xlu1 %1522 }
 0x72f   : > { %3396 = vrcp.f32 %v1523_v54 }
 0x730   : > { %v1526_v61 = vpop.xlane.xlu0 %1525 }
 0x731   : > { %3398 = vrcp.f32 %v1526_v61 }
 0x732   : > { %v1236_v9 = vpop.permute.xlu1 %1235 }
 0x733   : > { %3148 = vmatprep.subr.bf16.mxu0 %v1236_v9 }
 0x734   : > { %3149 = vmatpush3.bf16.msra.mxu0 %v1236_v9  ;;  %v1529_v60 = vpop.xlane.xlu0 %1528 }
 0x735   : > { %3400 = vrcp.f32 %v1529_v60 }
 0x738   : > { %v1532_v2 = vpop.xlane.xlu0 %1531 }
 0x739   : > { %v3397_v13 = vpop.eup %3396  ;;  %3402 = vrcp.f32 %v1532_v2 }
 0x73a   : > { %v4078_v17 = vmul.f32 %v3397_v13, %v4001_v8 }
 0x73b   : > { %v3399_v15 = vpop.eup %3398 }
 0x73c   : > { %v4081_v19 = vmul.f32 %v3399_v15, %v4005_v11 }
 0x73d   : > { %1712 = vrot.lane.b32.xlu0 %v3720_v5, %s3540_s16 }
 0x73e   : > { %v1561_v22 = vpack.c.bf16 %v4081_v19, %v4078_v17 }
 0x73f   : > { %v3401_v23 = vpop.eup %3400 }
 0x740   : > { %v4090_v27 = vmul.f32 %v3401_v23, %v4009_v14 }
 0x741   : > { %1704 = vrot.lane.b32.xlu0 %v3720_v5, %s3541_s17 }
 0x743   : > { %v3403_v24 = vpop.eup %3402 }
 0x744   : > { %v4093_v8 = vmul.f32 %v3403_v24, %v4013_v16 }
 0x745   : > { %1708 = vrot.lane.b32.xlu0 %v3726_v6, %s3541_s17 }
 0x746   : > { %v1562_v11 = vpack.c.bf16 %v4093_v8, %v4090_v27 }
 0x763   : > { %v1160_v30 = vpop.xlane.xlu1 %1159 }
 0x764   : > { %v1168_v31 = vsub.f32 %v3924_v10, %v1160_v30 }
 0x766   : > { %v1183_v32 = vmul.f32 1.442695, %v1168_v31 }
 0x767   : > { %v1154_v33 = vpop.xlane.xlu1 %1153 }
 0x768   : > { %3404 = vpow2.f32 %v1183_v32  ;;  %v1166_v5 = vsub.f32 %v3926_v12, %v1154_v33 }
 0x76a   : > { %v1179_v34 = vmul.f32 1.442695, %v1166_v5 }
 0x76b   : > { %v1568_v12 = vpop.permute.xlu1 %1567 }
 0x76c   : > { %3406 = vpow2.f32 %v1179_v34 }
 0x76d   : > { %3408 = vpow2.f32 %v1515_v43 }
 0x76f   : > { %v1193_v14 = vpop.xlane.xlu0 %1192  ;;  %v1570_v44 = vpop.permute.xlu1 %1569 }
 0x772   : > { %v4101_v36 = vpop.eup %3404 }
 0x773   : > { %v1187_v16 = vpop.xlane.xlu0 %1186  ;;  %v1206_v6 = vsel %vm817_vm3, %v4101_v36, 0.0 }
 0x774   : > { %1207 = vadd.xlane.f32.xlu1 %v1206_v6 }
 0x776   : > { %v4105_v37 = vpop.eup %3406 }
 0x777   : > { %v1566_v42 = vpop.permute.xlu0 %1565  ;;  %v1200_v10 = vsel %vm817_vm3, %v4105_v37, 0.0  ;;  %v4113_v51 = vpop.eup %3408 }
 0x778   : > { %1201 = vadd.xlane.f32.xlu1 %v1200_v10  ;;  %3174 = vmatprep.subr.bf16.mxu0 %v1566_v42  ;;  %v1536_v47 = vsel %vm817_vm3, %v4113_v51, 0.0 }
 0x789   : > { %1571 = vrot.lane.b32.xlu1 %v3729_v7, %s3539_s15  ;;  %s3544_s15 = smov 16  }
 0x7a0   : > { %v1196_v21 = vpop.xlane.xlu1 %1195 }
 0x7a1   : > { %3410 = vrcp.f32 %v1196_v21 }
 0x7a2   : > { %3412 = vrcp.f32 %v1187_v16 }
 0x7a3   : > { %3414 = vrcp.f32 %v1193_v14 }
 0x7a4   : > { %v1190_v50 = vpop.xlane.xlu1 %1189 }
 0x7a5   : > { %3416 = vrcp.f32 %v1190_v50 }
 0x7ab   : > { %v3411_v29 = vpop.eup %3410 }
 0x7ac   : > { %v3413_v7 = vpop.eup %3412  ;;  %v1220_v26 = vmul.f32 %v3411_v29, %v4047_v28  ;;  %v1199_v28 = vpop.xlane.xlu0 %1198 }
 0x7ad   : > { %1537 = vadd.xlane.f32.xlu1 %v1536_v47  ;;  %v3415_v52 = vpop.eup %3414  ;;  %v1217_v3 = vmul.f32 %v3413_v7, %v4029_v40  ;;  %v4127_v40 = vld [vmem:[#allocation2 + $0x10] sm:$0xff] }
 0x7ae   : > { %v1219_v55 = vmul.f32 %v3415_v52, %v4025_v35  ;;  %v4131_v35 = vld [vmem:[#allocation2 + $0x18] sm:$0xff] }
 0x7af   : > { %v3417_v4 = vpop.eup %3416 }
 0x7b0   : > { %v1218_v53 = vmul.f32 %v3417_v4, %v4053_v57  ;;  %v1226_v45 = vpack.c.bf16 %v1220_v26, %v1219_v55  ;;  %v1535_v38 = vpop.xlane.xlu0 %1534  ;;  %v1205_v57 = vpop.xlane.xlu1 %1204 }
 0x7b2   : > { %v1225_v46 = vpack.c.bf16 %v1218_v53, %v1217_v3 }
 0x7b4   : > { %3150 = vmatprep.mubr.msk.bf16.mxu0 %vm817_vm3, %v1225_v46  ;;  %v1541_v18 = vpop.xlane.xlu0 %1540 }
 0x7b5   : > { %3151 = vmatmul.mubr.msk.bf16.vlgmr.msra.gmra.mrb[24].mxu0 %vm817_vm3, %v1226_v45 }
 0x7b6   : > { %3175 = vmatpush3.bf16.msra.mxu0 %v1566_v42 }
 0x7b7   : > { %3176 = vmatprep.subr.bf16.mxu0 %v1568_v12 }
 0x7b8   : > { %v1544_v20 = vpop.xlane.xlu0 %1543 }
 0x7ba   : > { %3177 = vmatpush3.bf16.msra.mxu0 %v1568_v12 }
 0x7bb   : > { %3178 = vmatprep.subr.bf16.mxu0 %v1570_v44 }
 0x7bc   : > { %v1713_v63 = vpop.permute.xlu0 %1712 }
 0x7bd   : > { %v1733_v30 = vsel %vm727_vm2, %v1713_v63, 0 }
 0x7be   : > { %3179 = vmatpush3.bf16.msra.mxu0 %v1570_v44  ;;  %1714 = vrot.lane.b32.xlu1 %v4123_v56, %s3540_s16 }
 0x7c0   : > { %v1705_v6 = vpop.permute.xlu0 %1704 }
 0x7c2   : > { %1716 = vrot.lane.b32.xlu1 %v4127_v40, %s3540_s16 }
 0x7c6   : > { %1718 = vrot.lane.b32.xlu1 %v4131_v35, %s3540_s16 }
 0x7ca   : > { %1706 = vrot.lane.b32.xlu1 %v4123_v56, %s3541_s17 }
 0x7ce   : > { %1710 = vrot.lane.b32.xlu1 %v4131_v35, %s3541_s17 }
 0x801   : > { %v1208_v25 = vpop.xlane.xlu1 %1207 }
 0x802   : > { %3418 = vrcp.f32 %v1208_v25  ;;  %v2984_v25 = vld [vmem:[%s4638_s4 + $0x60] sm:$0xff]  }
 0x803   : > { %3420 = vrcp.f32 %v1199_v28 }
 0x804   : > { %3422 = vrcp.f32 %v1205_v57 }
 0x805   : > { %v1202_v58 = vpop.xlane.xlu1 %1201 }
 0x806   : > { %3424 = vrcp.f32 %v1202_v58  ;;  %v2959_v58 = vunpack.c.l.bf16 %v2984_v25 }
 0x807   : > { %3426 = vrcp.f32 %v1544_v20  ;;  %v2985_v20 = vld [vmem:[%s4638_s4 + $0x68] sm:$0xff]  }
 0x808   : > { %3428 = vrcp.f32 %v1535_v38 }
 0x809   : > { %v1572_v62 = vpop.permute.xlu1 %1571  ;;  %3430 = vrcp.f32 %v1541_v18 }
 0x80a   : > { %3180 = vmatprep.subr.bf16.mxu0 %v1572_v62 }
 0x80b   : > { %3181 = vmatpush3.bf16.msra.mxu0 %v1572_v62  ;;  %v2963_v62 = vunpack.c.l.bf16 %v2985_v20 }
 0x80c   : > { %3282 = vmatprep.subr.msk.bf16.mxu0 %vm727_vm2, %v1713_v63  ;;  %v3419_v1 = vpop.eup %3418 }
 0x80d   : > { %v3421_v54 = vpop.eup %3420  ;;  %v1224_v60 = vmul.f32 %v3419_v1, %v4101_v36  ;;  %v2960_v1 = vunpack.c.h.bf16 %v2984_v25 }
 0x80e   : > { %v3423_v61 = vpop.eup %3422  ;;  %v1221_v2 = vmul.f32 %v3421_v54, %v4059_v48 }
 0x80f   : > { %v1223_v15 = vmul.f32 %v3423_v61, %v4055_v39 }
 0x810   : > { %v3425_v9 = vpop.eup %3424 }
 0x811   : > { %v1222_v13 = vmul.f32 %v3425_v9, %v4105_v37  ;;  %v1228_v24 = vpack.c.bf16 %v1224_v60, %v1223_v15  ;;  %v3427_v17 = vpop.eup %3426  ;;  %v1709_v37 = vpop.permute.xlu0 %1708 }
 0x813   : > { %v1227_v23 = vpack.c.bf16 %v1222_v13, %v1221_v2  ;;  %v2964_v13 = vunpack.c.h.bf16 %v2985_v20 }
 0x815   : > { %3154 = vmatprep.mubr.msk.bf16.mxu0 %vm817_vm3, %v1227_v23 }
 0x816   : > { %3155 = vmatmul.mubr.msk.bf16.gmra.mrb[28].mxu0 %vm817_vm3, %v1228_v24  ;;  %v2986_v24 = vld [vmem:[%s4638_s4 + $0x70] sm:$0xff]  }
 0x817   : > { %3182 = vmatprep.mubr.msk.bf16.mxu0 %vm817_vm3, %v1561_v22  ;;  %v3429_v22 = vpop.eup %3428 }
 0x818   : > { %v3431_v27 = vpop.eup %3430  ;;  %v1557_v32 = vmul.f32 %v3429_v22, %v4065_v59  ;;  %v2987_v22 = vld [vmem:[%s4638_s4 + $0x78] sm:$0xff]  }
 0x819   : > { %v1559_v34 = vmul.f32 %v3431_v27, %v4069_v49 }
 0x81e   : > { %3183 = vmatmul.mubr.msk.bf16.vlgmr.msra.gmra.mrb[32].mxu0 %vm817_vm3, %v1562_v11  ;;  %v1560_v11 = vmul.f32 %v3427_v17, %v4073_v0  ;;  %v2967_v17 = vunpack.c.l.bf16 %v2986_v24 }
 0x81f   : > { %3191 = vmatpush3.bf16.xpose.msra.mxu0 %v1733_v30 }
 0x820   : > { %v1564_v16 = vpack.c.bf16 %v1560_v11, %v1559_v34 }
 0x83a   : > { %v1538_v39 = vpop.xlane.xlu1 %1537 }
 0x83b   : > { %3432 = vrcp.f32 %v1538_v39 }
 0x83e   : > { %v1715_v48 = vpop.permute.xlu1 %1714 }
 0x83f   : > { %v1736_v31 = vsel %vm727_vm2, %v1715_v48, 0  ;;  %3283 = vmatprep.subr.msk.bf16.mxu0 %vm727_vm2, %v1715_v48 }
 0x840   : > { %3193 = vmatpush3.bf16.xpose.msra.mxu0 %v1736_v31 }
 0x842   : > { %v1717_v19 = vpop.permute.xlu1 %1716 }
 0x843   : > { %3284 = vmatprep.subr.msk.bf16.mxu0 %vm727_vm2, %v1717_v19  ;;  %v1739_v5 = vsel %vm727_vm2, %v1717_v19, 0  ;;  %v2968_v19 = vunpack.c.h.bf16 %v2986_v24 }
 0x845   : > { %v3433_v8 = vpop.eup %3432 }
 0x846   : > { %v1558_v33 = vmul.f32 %v3433_v8, %v4113_v51  ;;  %v1719_v14 = vpop.permute.xlu1 %1718  ;;  %v2972_v8 = vunpack.c.h.bf16 %v2987_v22 }
 0x847   : > { %v1742_v59 = vsel %vm727_vm2, %v1719_v14, 0 }
 0x848   : > { %3195 = vmatpush3.bf16.xpose.msra.mxu0 %v1739_v5  ;;  %v1563_v36 = vpack.c.bf16 %v1558_v33, %v1557_v32  ;;  %v2971_v33 = vunpack.c.l.bf16 %v2987_v22 }
 0x849   : > { %3285 = vmatprep.subr.msk.bf16.mxu0 %vm727_vm2, %v1719_v14 }
 0x84a   : > { %3186 = vmatprep.mubr.msk.bf16.mxu0 %vm817_vm3, %v1563_v36  ;;  %v1707_v0 = vpop.permute.xlu1 %1706 }
 0x84b   : > { %3187 = vmatmul.mubr.msk.bf16.gmra.mrb[36].mxu0 %vm817_vm3, %v1564_v16 }
 0x84c   : > { %3198 = vmatprep.mubr.msk.bf16.mxu0 %vm727_vm2, %v1705_v6 }
 0x84e   : > { %v1711_v49 = vpop.permute.xlu1 %1710 }
 0x850   : > { %3197 = vmatpush3.bf16.xpose.msra.mxu0 %v1742_v59 }
 0x857   : > { %3199 = vmatmul.mubr.msk.bf16.vlgmr.msra.gmra.mrb[40].mxu0 %vm727_vm2, %v1707_v0 }
 0x858   : > { %3202 = vmatprep.mubr.msk.bf16.mxu0 %vm727_vm2, %v1709_v37 }
 0x85f   : > { %3203 = vmatmul.mubr.msk.bf16.gmra.mrb[44].mxu0 %vm727_vm2, %v1711_v49 }
 0x888   : > { %v4171_v42 = vpop.f32.mrb[24].mxu0 }
 0x889   : > { %v4173_v10 = vpop.f32.mrb[25].mxu0 }
 0x88a   : > { %v4175_v12 = vpop.f32.mrb[26].mxu0 }
 0x88b   : > { %v1319_v41 = vpack.c.bf16 %v4175_v12, %v4171_v42  ;;  %v4179_v43 = vpop.f32.mrb[27].mxu0 }
 0x88c   : > { %v1318_v44 = vpack.c.bf16 %v4179_v43, %v4173_v10 }
 0x8e9   : > { %v4183_v21 = vpop.f32.mrb[28].mxu0 }
 0x8ea   : > { %v4185_v50 = vpop.f32.mrb[29].mxu0 }
 0x8eb   : > { %v4187_v51 = vpop.f32.mrb[30].mxu0 }
 0x8ec   : > { %v1321_v29 = vpack.c.bf16 %v4187_v51, %v4183_v21  ;;  %v4191_v47 = vpop.f32.mrb[31].mxu0 }
 0x8ed   : > { %v1320_v7 = vpack.c.bf16 %v4191_v47, %v4185_v50 }
 0x8f1   : > { %v4195_v52 = vpop.f32.mrb[32].mxu0 }
 0x8f2   : > { %v4197_v4 = vpop.f32.mrb[33].mxu0 }
 0x8f3   : > { %v4199_v26 = vpop.f32.mrb[34].mxu0 }
 0x8f4   : > { %v1655_v3 = vpack.c.bf16 %v4199_v26, %v4195_v52  ;;  %v4203_v53 = vpop.f32.mrb[35].mxu0 }
 0x8f5   : > { %v1654_v55 = vpack.c.bf16 %v4203_v53, %v4197_v4 }
 0x91e   : > { %v4207_v46 = vpop.f32.mrb[36].mxu0 }
 0x91f   : > { %v4209_v45 = vpop.f32.mrb[37].mxu0 }
 0x920   : > { %v4211_v28 = vpop.f32.mrb[38].mxu0 }
 0x921   : > { %v1657_v38 = vpack.c.bf16 %v4211_v28, %v4207_v46  ;;  %v4215_v57 = vpop.f32.mrb[39].mxu0 }
 0x922   : > { %v1656_v18 = vpack.c.bf16 %v4215_v57, %v4209_v45 }
 0x92a   : > { %v3200_v63 = vpop.f32.mrb[40].mxu0 }
 0x92b   : > { %v1778_v54 = vpop.f32.mrb[41].mxu0  ;;  %v1787_v2 = vadd.f32 %v3200_v63, %v2963_v62 }
 0x92c   : > { %v1779_v61 = vadd.f32 %v2959_v58, %v1778_v54  ;;  %v3201_v9 = vpop.f32.mrb[42].mxu0 }
 0x92d   : > { %v1781_v60 = vpop.f32.mrb[43].mxu0  ;;  %v1790_v39 = vadd.f32 %v3201_v9, %v2964_v13  ;;  %v1815_v31 = vsel %vm817_vm3, %v1787_v2, -inf }
 0x92e   : > { %v1782_v15 = vadd.f32 %v2960_v1, %v1781_v60  ;;  %v1809_v23 = vsel %vm817_vm3, %v1779_v61, -inf }
 0x92f   : > { %1810 = vmax.xlane.f32.xlu0 %v1809_v23  ;;  %v1818_v14 = vsel %vm817_vm3, %v1790_v39, -inf }
 0x930   : > { %v1812_v30 = vsel %vm817_vm3, %v1782_v15, -inf }
 0x931   : > { %1813 = vmax.xlane.f32.xlu1 %v1812_v30 }
 0x932   : > { %v3204_v48 = vpop.f32.mrb[44].mxu0 }
 0x933   : > { %1816 = vmax.xlane.f32.xlu0 %v1815_v31  ;;  %v1794_v27 = vpop.f32.mrb[45].mxu0  ;;  %v1803_v6 = vadd.f32 %v3204_v48, %v2971_v33 }
 0x934   : > { %v3205_v11 = vpop.f32.mrb[46].mxu0  ;;  %v1795_v5 = vadd.f32 %v2967_v17, %v1794_v27 }
 0x935   : > { %v1797_v32 = vpop.f32.mrb[47].mxu0  ;;  %v4237_v36 = vadd.f32 %v3205_v11, %v2972_v8  ;;  %v1827_v37 = vsel %vm817_vm3, %v1803_v6, -inf }
 0x936   : > { %v4234_v34 = vadd.f32 %v2968_v19, %v1797_v32  ;;  %v1821_v59 = vsel %vm817_vm3, %v1795_v5, -inf }
 0x937   : > { %1819 = vmax.xlane.f32.xlu0 %v1818_v14  ;;  %v1830_v0 = vsel %vm817_vm3, %v4237_v36, -inf }
 0x938   : > { %v1824_v16 = vsel %vm817_vm3, %v4234_v34, -inf }
 0x939   : > { %1825 = vmax.xlane.f32.xlu1 %v1824_v16 }
 0x93b   : > { %1822 = vmax.xlane.f32.xlu0 %v1821_v59 }
 0x93d   : > { %1831 = vmax.xlane.f32.xlu1 %v1830_v0 }
 0x93f   : > { %1828 = vmax.xlane.f32.xlu0 %v1827_v37 }
 0x9bc   : > { %v1811_v49 = vpop.xlane.xlu0 %1810 }
 0x9bd   : > { %v1833_v25 = vsub.f32 %v1779_v61, %v1811_v49 }
 0x9be   : > { %v1814_v20 = vpop.xlane.xlu1 %1813 }
 0x9bf   : > { %v1841_v63 = vmul.f32 1.442695, %v1833_v25  ;;  %v1834_v1 = vsub.f32 %v1782_v15, %v1814_v20 }
 0x9c0   : > { %v1817_v58 = vpop.xlane.xlu0 %1816 }
 0x9c1   : > { %v1835_v62 = vsub.f32 %v1787_v2, %v1817_v58  ;;  %v1843_v13 = vmul.f32 1.442695, %v1834_v1 }
 0x9c3   : > { %v1845_v54 = vmul.f32 1.442695, %v1835_v62 }
 0x9c4   : > { %v1820_v9 = vpop.xlane.xlu0 %1819 }
 0x9c5   : > { %3434 = vpow2.f32 %v1845_v54  ;;  %v1836_v60 = vsub.f32 %v1790_v39, %v1820_v9 }
 0x9c6   : > { %3436 = vpow2.f32 %v1841_v63  ;;  %v1826_v16 = vpop.xlane.xlu1 %1825 }
 0x9c7   : > { %v1847_v23 = vmul.f32 1.442695, %v1836_v60 }
 0x9c8   : > { %v1823_v24 = vpop.xlane.xlu0 %1822 }
 0x9c9   : > { %3438 = vpow2.f32 %v1847_v23  ;;  %v1837_v30 = vsub.f32 %v1795_v5, %v1823_v24 }
 0x9ca   : > { %3440 = vpow2.f32 %v1843_v13  ;;  %v1832_v59 = vpop.xlane.xlu1 %1831 }
 0x9cb   : > { %v1849_v61 = vmul.f32 1.442695, %v1837_v30  ;;  %v1840_v0 = vsub.f32 %v4237_v36, %v1832_v59 }
 0x9cc   : > { %v1829_v48 = vpop.xlane.xlu0 %1828 }
 0x9cd   : > { %v1839_v31 = vsub.f32 %v1803_v6, %v1829_v48  ;;  %v3515_v6 = vld [vmem:[#allocation2] sm:$0xff] }
 0x9cf   : > { %v4245_v17 = vpop.eup %3434  ;;  %v1853_v19 = vmul.f32 1.442695, %v1839_v31 }
 0x9d0   : > { %v1863_v2 = vsel %vm817_vm3, %v4245_v17, 0.0  ;;  %v3437_v15 = vpop.eup %3436 }
 0x9d1   : > { %3442 = vpow2.f32 %v1853_v19  ;;  %1864 = vadd.xlane.f32.xlu0 %v1863_v2  ;;  %v1857_v22 = vsel %vm817_vm3, %v3437_v15, 0.0 }
 0x9d2   : > { %3444 = vpow2.f32 %v1849_v61 }
 0x9d3   : > { %v4249_v39 = vpop.eup %3438 }
 0x9d4   : > { %v1866_v27 = vsel %vm817_vm3, %v4249_v39, 0.0  ;;  %v3441_v8 = vpop.eup %3440 }
 0x9d5   : > { %1858 = vadd.xlane.f32.xlu0 %v1857_v22  ;;  %1867 = vadd.xlane.f32.xlu1 %v1866_v27  ;;  %v1860_v11 = vsel %vm817_vm3, %v3441_v8, 0.0  ;;  %v3311_v22 = vld [vmem:[%s4639_s5 + $0x8] sm:$0xff]  }
 0x9d9   : > { %1861 = vadd.xlane.f32.xlu1 %v1860_v11 }
 0x9db   : > { %v4255_v32 = vpop.eup %3442 }
 0x9dc   : > { %v1875_v33 = vsel %vm817_vm3, %v4255_v32, 0.0  ;;  %v4259_v5 = vpop.eup %3444 }
 0x9dd   : > { %1876 = vadd.xlane.f32.xlu0 %v1875_v33  ;;  %v1869_v14 = vsel %vm817_vm3, %v4259_v5, 0.0 }
 0x9e1   : > { %1870 = vadd.xlane.f32.xlu0 %v1869_v14 }
 0x9ea   : > { %1903 = vrot.lane.b32.xlu1 %v4123_v56, %s3542_s29  ;;  %v1838_v56 = vsub.f32 %v4234_v34, %v1826_v16 }
 0x9ec   : > { %v1851_v37 = vmul.f32 1.442695, %v1838_v56 }
 0x9ee   : > { %1905 = vrot.lane.b32.xlu1 %v4127_v40, %s3542_s29  ;;  %v1855_v40 = vmul.f32 1.442695, %v1840_v0 }
 0x9f0   : > { %3446 = vpow2.f32 %v1855_v40 }
 0x9f1   : > { %3448 = vpow2.f32 %v1851_v37 }
 0x9f7   : > { %1901 = vrot.lane.b32.xlu0 %v3515_v6, %s3542_s29 }
 0x9fa   : > { %v4277_v10 = vpop.eup %3446 }
 0x9fb   : > { %1326 = vrot.lane.b32.xlu0 %v1318_v44, %s3543_s30  ;;  %v1878_v43 = vsel %vm817_vm3, %v4277_v10, 0.0  ;;  %v4281_v44 = vpop.eup %3448 }
 0x9fc   : > { %v1872_v4 = vsel %vm817_vm3, %v4281_v44, 0.0 }
 0x9ff   : > { %1662 = vrot.lane.b32.xlu0 %v1654_v55, %s3544_s15 }
 0xa03   : > { %1330 = vrot.lane.b32.xlu0 %v1320_v7, %s3543_s30 }
 0xa12   : > { %1879 = vadd.xlane.f32.xlu1 %v1878_v43 }
 0xa16   : > { %1873 = vadd.xlane.f32.xlu1 %v1872_v4 }
 0xa27   : > { %1907 = vrot.lane.b32.xlu1 %v4131_v35, %s3542_s29 }
 0xa2b   : > { %1328 = vrot.lane.b32.xlu1 %v1319_v41, %s3543_s30 }
 0xa2f   : > { %1664 = vrot.lane.b32.xlu1 %v1655_v3, %s3544_s15 }
 0xa33   : > { %1332 = vrot.lane.b32.xlu1 %v1321_v29, %s3543_s30 }
 0xa5e   : > { %v1865_v50 = vpop.xlane.xlu0 %1864 }
 0xa62   : > { %v1868_v47 = vpop.xlane.xlu1 %1867  ;;  %v1859_v7 = vpop.xlane.xlu0 %1858 }
 0xa63   : > { %3450 = vrcp.f32 %v1859_v7 }
 0xa66   : > { %v1862_v53 = vpop.xlane.xlu1 %1861 }
 0xa67   : > { %3452 = vrcp.f32 %v1862_v53 }
 0xa68   : > { %3454 = vrcp.f32 %v1868_v47 }
 0xa69   : > { %3456 = vrcp.f32 %v1865_v50 }
 0xa6a   : > { %v1877_v35 = vpop.xlane.xlu0 %1876  ;;  %v1904_v12 = vpop.permute.xlu1 %1903 }
 0xa6d   : > { %v3451_v34 = vpop.eup %3450 }
 0xa6e   : > { %v1871_v55 = vpop.xlane.xlu0 %1870  ;;  %v1889_v36 = vmul.f32 %v3451_v34, %v3437_v15  ;;  %v1906_v51 = vpop.permute.xlu1 %1905 }
 0xa71   : > { %v3453_v42 = vpop.eup %3452 }
 0xa72   : > { %v1902_v41 = vpop.permute.xlu0 %1901  ;;  %v1890_v49 = vmul.f32 %v3453_v42, %v3441_v8  ;;  %v3455_v25 = vpop.eup %3454 }
 0xa73   : > { %3206 = vmatprep.subr.bf16.mxu1 %v1902_v41  ;;  %v3457_v58 = vpop.eup %3456  ;;  %v1892_v62 = vmul.f32 %v3455_v25, %v4249_v39  ;;  %v3310_v39 = vld [vmem:[%s4639_s5] sm:$0xff]  }
 0xa74   : > { %3207 = vmatpush3.bf16.msra.mxu1 %v1902_v41  ;;  %v1897_v52 = vpack.c.bf16 %v1890_v49, %v1889_v36  ;;  %v1891_v1 = vmul.f32 %v3457_v58, %v4245_v17  ;;  %v3518_v49 = vld [vmem:[%s3632_s14 + $0x8] sm:$0xff] }
 0xa75   : > { %3208 = vmatprep.subr.bf16.mxu1 %v1904_v12 }
 0xa76   : > { %3214 = vmatprep.mubr.msk.bf16.mxu1 %vm817_vm3, %v1897_v52  ;;  %v1327_v21 = vpop.permute.xlu0 %1326  ;;  %v1898_v54 = vpack.c.bf16 %v1892_v62, %v1891_v1 }
 0xa77   : > { %1339 = vst.msk [vmem:[#allocation3] sm:$0xff] %vm1338_vm4, %v1327_v21 }
 0xa78   : > { %3209 = vmatpush3.bf16.msra.mxu1 %v1904_v12  ;;  %v3517_v12 = vld [vmem:[%s3632_s14 + $0x10] sm:$0xff] }
 0xa79   : > { %3210 = vmatprep.subr.bf16.mxu1 %v1906_v51 }
 0xa7a   : > { %v1663_v29 = vpop.permute.xlu0 %1662 }
 0xa7b   : > { %1675 = vst.msk [vmem:[#allocation3] sm:$0xff] %vm1674_vm5, %v1663_v29 }
 0xa7c   : > { %3211 = vmatpush3.bf16.msra.mxu1 %v1906_v51 }
 0xa7e   : > { %v1331_v26 = vpop.permute.xlu0 %1330 }
 0xa7f   : > { %1341 = vst.msk [vmem:[#allocation3 + $0x10] sm:$0xff] %vm1338_vm4, %v1331_v26 }
 0xa9f   : > { %v1880_v3 = vpop.xlane.xlu1 %1879 }
 0xaa0   : > { %3458 = vrcp.f32 %v1880_v3  ;;  %v3519_v3 = vld [vmem:[%s3632_s14 + $0x18] sm:$0xff] }
 0xaa1   : > { %3460 = vrcp.f32 %v1871_v55  ;;  %v3516_v55 = vld [vmem:[%s3632_s14] sm:$0xff] }
 0xaa2   : > { %3462 = vrcp.f32 %v1877_v35 }
 0xaa3   : > { %v1874_v20 = vpop.xlane.xlu1 %1873 }
 0xaa4   : > { %3464 = vrcp.f32 %v1874_v20 }
 0xaa7   : > { %v1908_v63 = vpop.permute.xlu1 %1907 }
 0xaa8   : > { %3212 = vmatprep.subr.bf16.mxu1 %v1908_v63 }
 0xaa9   : > { %3213 = vmatpush3.bf16.msra.mxu1 %v1908_v63 }
 0xaaa   : > { %v3459_v9 = vpop.eup %3458  ;;  %3222 = vmatprep.subr.bf16.mxu1 %v3310_v39 }
 0xaab   : > { %v1329_v60 = vpop.permute.xlu1 %1328  ;;  %v3461_v13 = vpop.eup %3460  ;;  %v1896_v30 = vmul.f32 %v3459_v9, %v4277_v10 }
 0xaac   : > { %1340 = vst.msk [vmem:[#allocation3 + $0x8] sm:$0xff] %vm1338_vm4, %v1329_v60  ;;  %3215 = vmatmul.mubr.msk.bf16.vlgmr.msra.gmra.mrb[16].mxu1 %vm817_vm3, %v1898_v54  ;;  %v3463_v23 = vpop.eup %3462  ;;  %v1893_v31 = vmul.f32 %v3461_v13, %v4259_v5  ;;  %v3520_v60 = vld [vmem:[%s3632_s14 + $0x20] sm:$0xff] }
 0xaad   : > { %v1895_v17 = vmul.f32 %v3463_v23, %v4255_v32  ;;  %3223 = vmatpush3.bf16.msra.mxu1 %v3310_v39  ;;  %v3521_v23 = vld [vmem:[%s3632_s14 + $0x28] sm:$0xff] }
 0xaae   : > { %v3465_v24 = vpop.eup %3464  ;;  %3224 = vmatprep.subr.bf16.mxu1 %v3311_v22 }
 0xaaf   : > { %v1665_v48 = vpop.permute.xlu1 %1664  ;;  %v1894_v61 = vmul.f32 %v3465_v24, %v4281_v44  ;;  %v1900_v2 = vpack.c.bf16 %v1896_v30, %v1895_v17  ;;  %v2866_v44 = vld [vmem:[%s4640_s6] ss:$0 sm:$0xff]  ;;  %v3523_v17 = vld [vmem:[%s3632_s14 + $0x30] sm:$0xff] }
 0xab0   : > { %1676 = vst.msk [vmem:[#allocation3 + $0x8] sm:$0xff] %vm1674_vm5, %v1665_v48  ;;  %v3522_v48 = vld [vmem:[%s3632_s14 + $0x38] sm:$0xff] }
 0xab1   : > { %v1899_v19 = vpack.c.bf16 %v1894_v61, %v1893_v31  ;;  %3225 = vmatpush3.bf16.msra.mxu1 %v3311_v22 }
 0xab3   : > { %v1333_v15 = vpop.permute.xlu1 %1332  ;;  %3218 = vmatprep.mubr.msk.bf16.mxu1 %vm817_vm3, %v1899_v19 }
 0xab4   : > { %1342 = vst.msk [vmem:[#allocation3 + $0x18] sm:$0xff] %vm1338_vm4, %v1333_v15  ;;  %3219 = vmatmul.mubr.msk.bf16.gmra.mrb[20].mxu1 %vm817_vm3, %v1900_v2 }
 0xb7f   : > { %v3216_v27 = vpop.f32.mrb[16].mxu1 }
 0xb80   : > { %v1959_v8 = vpop.f32.mrb[17].mxu1 }
 0xb81   : > { %v3217_v11 = vpop.f32.mrb[18].mxu1 }
 0xb82   : > { %v1991_v32 = vpack.c.bf16 %v3217_v11, %v3216_v27  ;;  %v1962_v33 = vpop.f32.mrb[19].mxu1 }
 0xb83   : > { %v1990_v5 = vpack.c.bf16 %v1962_v33, %v1959_v8 }
 0xb84   : > { %2000 = vrot.lane.b32.xlu1 %v1991_v32, %s3545_s20 }
 0xb85   : > { %1998 = vrot.lane.b32.xlu0 %v1990_v5, %s3545_s20 }
 0xb87   : > { %v3220_v14 = vpop.f32.mrb[20].mxu1 }
 0xb88   : > { %1668 = vrot.lane.b32.xlu1 %v1657_v38, %s3544_s15  ;;  %v1975_v16 = vpop.f32.mrb[21].mxu1 }
 0xb89   : > { %1666 = vrot.lane.b32.xlu0 %v1656_v18, %s3544_s15  ;;  %v3221_v6 = vpop.f32.mrb[22].mxu1 }
 0xb8a   : > { %v1993_v59 = vpack.c.bf16 %v3221_v6, %v3220_v14  ;;  %v1978_v0 = vpop.f32.mrb[23].mxu1 }
 0xb8b   : > { %v1992_v56 = vpack.c.bf16 %v1978_v0, %v1975_v16 }
 0xb8c   : > { %2004 = vrot.lane.b32.xlu1 %v1993_v59, %s3545_s20 }
 0xb8d   : > { %2002 = vrot.lane.b32.xlu0 %v1992_v56, %s3545_s20 }
 0xbf6   : > { %v2001_v40 = vpop.permute.xlu1 %2000 }
 0xbf7   : > { %2012 = vst.msk [vmem:[#allocation3 + $0x8] sm:$0xff] %vm2010_vm6, %v2001_v40  ;;  %v1999_v37 = vpop.permute.xlu0 %1998 }
 0xbf8   : > { %2011 = vst.msk [vmem:[#allocation3] sm:$0xff] %vm2010_vm6, %v1999_v37 }
 0xbfa   : > { %v1669_v10 = vpop.permute.xlu1 %1668 }
 0xbfb   : > { %1678 = vst.msk [vmem:[#allocation3 + $0x18] sm:$0xff] %vm1674_vm5, %v1669_v10  ;;  %v1667_v46 = vpop.permute.xlu0 %1666 }
 0xbfc   : > { %1677 = vst.msk [vmem:[#allocation3 + $0x10] sm:$0xff] %vm1674_vm5, %v1667_v46 }
 0xbfe   : > { %v2005_v28 = vpop.permute.xlu1 %2004  ;;  %v2016_v57 = vld [vmem:[#allocation3 + $0x8] sm:$0xff] }
 0xbff   : > { %2014 = vst.msk [vmem:[#allocation3 + $0x18] sm:$0xff] %vm2010_vm6, %v2005_v28  ;;  %v2003_v45 = vpop.permute.xlu0 %2002  ;;  %v2015_v38 = vld [vmem:[#allocation3] sm:$0xff] }
 0xc00   : > { %2013 = vst.msk [vmem:[#allocation3 + $0x10] sm:$0xff] %vm2010_vm6, %v2003_v45  ;;  %3226 = vmatprep.mubr.msk.bf16.mxu1 %vm455_vm0, %v2015_v38 }
 0xc01   : > { %3227 = vmatmul.mubr.msk.bf16.vlgmr.msra.gmra.mrb[24].mxu1 %vm455_vm0, %v2016_v57 }
 0xc06   : > { %v2018_v43 = vld [vmem:[#allocation3 + $0x18] sm:$0xff] }
 0xc07   : > { %v2017_v18 = vld [vmem:[#allocation3 + $0x10] sm:$0xff] }
 0xc08   : > { %3230 = vmatprep.mubr.msk.bf16.mxu1 %vm455_vm0, %v2017_v18 }
 0xc09   : > { %3231 = vmatmul.mubr.msk.bf16.gmra.mrb[28].mxu1 %vm455_vm0, %v2018_v43 }
 0xcd4   : > { %v3228_v4 = vpop.f32.mrb[24].mxu1 }
 0xcd5   : > { %v2088_v50 = vpop.f32.mrb[25].mxu1  ;;  %v2097_v47 = vadd.f32 %v3228_v4, %v2866_v44 }
 0xcd6   : > { %v2089_v7 = vadd.f32 %v2866_v44, %v2088_v50  ;;  %v3229_v53 = vpop.f32.mrb[26].mxu1 }
 0xcd7   : > { %v2091_v35 = vpop.f32.mrb[27].mxu1  ;;  %v4339_v41 = vadd.f32 %v3517_v12, %v2097_v47  ;;  %v2100_v36 = vadd.f32 %v3229_v53, %v2866_v44 }
 0xcd8   : > { %v4336_v34 = vadd.f32 %v3516_v55, %v2089_v7  ;;  %v2092_v42 = vadd.f32 %v2866_v44, %v2091_v35 }
 0xcd9   : > { %v4349_v25 = vadd.f32 %v3519_v3, %v2100_v36  ;;  %v2135_v62 = vsel %vm455_vm0, %v4339_v41, 0.0 }
 0xcda   : > { %v4342_v52 = vadd.f32 %v3518_v49, %v2092_v42  ;;  %v2129_v21 = vsel %vm455_vm0, %v4336_v34, 0.0 }
 0xcdb   : > { %2130 = vadd.xlane.f32.xlu0 %v2129_v21  ;;  %v2138_v30 = vsel %vm455_vm0, %v4349_v25, 0.0 }
 0xcdc   : > { %v3232_v51 = vpop.f32.mrb[28].mxu1  ;;  %v2132_v29 = vsel %vm455_vm0, %v4342_v52, 0.0 }
 0xcdd   : > { %2133 = vadd.xlane.f32.xlu1 %v2132_v29  ;;  %v2104_v26 = vpop.f32.mrb[29].mxu1  ;;  %v2113_v9 = vadd.f32 %v3232_v51, %v2866_v44 }
 0xcde   : > { %v2105_v20 = vadd.f32 %v2866_v44, %v2104_v26  ;;  %v3233_v58 = vpop.f32.mrb[30].mxu1 }
 0xcdf   : > { %2136 = vadd.xlane.f32.xlu0 %v2135_v62  ;;  %v2107_v63 = vpop.f32.mrb[31].mxu1  ;;  %v2116_v1 = vadd.f32 %v3233_v58, %v2866_v44  ;;  %v4367_v19 = vadd.f32 %v3523_v17, %v2113_v9  ;;  %v3313_v58 = vld [vmem:[%s4643_s9 + $0x8] sm:$0xff]  }
 0xce0   : > { %v2108_v54 = vadd.f32 %v2866_v44, %v2107_v63  ;;  %v4354_v13 = vadd.f32 %v3520_v60, %v2105_v20  ;;  %v3312_v20 = vld [vmem:[%s4643_s9] sm:$0xff]  }
 0xce1   : > { %v4362_v31 = vadd.f32 %v3522_v48, %v2116_v1  ;;  %v2147_v39 = vsel %vm455_vm0, %v4367_v19, 0.0  ;;  %3234 = vmatprep.subr.bf16.mxu0 %v3312_v20 }
 0xce2   : > { %v4357_v24 = vadd.f32 %v3521_v23, %v2108_v54  ;;  %v2141_v2 = vsel %vm455_vm0, %v4354_v13, 0.0  ;;  %3235 = vmatpush3.bf16.msra.mxu0 %v3312_v20 }
 0xce3   : > { %2139 = vadd.xlane.f32.xlu0 %v2138_v30  ;;  %v2150_v15 = vsel %vm455_vm0, %v4362_v31, 0.0  ;;  %3236 = vmatprep.subr.bf16.mxu0 %v3313_v58 }
 0xce4   : > { %v2144_v61 = vsel %vm455_vm0, %v4357_v24, 0.0 }
 0xce5   : > { %2145 = vadd.xlane.f32.xlu1 %v2144_v61 }
 0xce6   : > { %3237 = vmatpush3.bf16.msra.mxu0 %v3313_v58 }
 0xce7   : > { %2142 = vadd.xlane.f32.xlu0 %v2141_v2 }
 0xce9   : > { %2151 = vadd.xlane.f32.xlu1 %v2150_v15 }
 0xceb   : > { %2148 = vadd.xlane.f32.xlu0 %v2147_v39 }
 0xd68   : > { %v2131_v22 = vpop.xlane.xlu0 %2130 }
 0xd69   : > { %v2153_v27 = vmul.f32 0.03125, %v2131_v22 }
 0xd6a   : > { %v2134_v8 = vpop.xlane.xlu1 %2133 }
 0xd6b   : > { %v4376_v11 = vsub.f32 %v4336_v34, %v2153_v27  ;;  %v2154_v32 = vmul.f32 0.03125, %v2134_v8 }
 0xd6c   : > { %v2137_v33 = vpop.xlane.xlu0 %2136 }
 0xd6d   : > { %v4379_v5 = vsub.f32 %v4342_v52, %v2154_v32  ;;  %v2155_v14 = vmul.f32 0.03125, %v2137_v33  ;;  %v2169_v16 = vmul.f32 %v4376_v11, %v4376_v11  ;;  %v2873_v32 = vld [vmem:[%s4641_s7] ss:$0 sm:$0xff] }
 0xd6f   : > { %v4384_v6 = vsub.f32 %v4339_v41, %v2155_v14  ;;  %v2177_v59 = vsel %vm455_vm0, %v2169_v16, 0.0  ;;  %v2170_v0 = vmul.f32 %v4379_v5, %v4379_v5 }
 0xd70   : > { %2178 = vadd.xlane.f32.xlu0 %v2177_v59  ;;  %v2140_v56 = vpop.xlane.xlu0 %2139 }
 0xd71   : > { %v2156_v40 = vmul.f32 0.03125, %v2140_v56  ;;  %v2180_v37 = vsel %vm455_vm0, %v2170_v0, 0.0  ;;  %v2171_v10 = vmul.f32 %v4384_v6, %v4384_v6 }
 0xd72   : > { %2181 = vadd.xlane.f32.xlu1 %v2180_v37  ;;  %v2146_v46 = vpop.xlane.xlu1 %2145 }
 0xd73   : > { %v4393_v28 = vsub.f32 %v4349_v25, %v2156_v40  ;;  %v2158_v45 = vmul.f32 0.03125, %v2146_v46  ;;  %v2183_v38 = vsel %vm455_vm0, %v2171_v10, 0.0 }
 0xd74   : > { %2184 = vadd.xlane.f32.xlu0 %v2183_v38  ;;  %v2143_v57 = vpop.xlane.xlu0 %2142  ;;  %v2874_v38 = vld [vmem:[%s4642_s8] ss:$0 sm:$0xff] }
 0xd75   : > { %v4397_v18 = vsub.f32 %v4357_v24, %v2158_v45  ;;  %v2157_v43 = vmul.f32 0.03125, %v2143_v57  ;;  %v2172_v44 = vmul.f32 %v4393_v28, %v4393_v28 }
 0xd76   : > { %v2152_v4 = vpop.xlane.xlu1 %2151 }
 0xd77   : > { %v4402_v50 = vsub.f32 %v4354_v13, %v2157_v43  ;;  %v2160_v47 = vmul.f32 0.03125, %v2152_v4  ;;  %v2186_v7 = vsel %vm455_vm0, %v2172_v44, 0.0  ;;  %v2174_v53 = vmul.f32 %v4397_v18, %v4397_v18 }
 0xd78   : > { %2187 = vadd.xlane.f32.xlu1 %v2186_v7  ;;  %v2149_v35 = vpop.xlane.xlu0 %2148 }
 0xd79   : > { %v4408_v55 = vsub.f32 %v4362_v31, %v2160_v47  ;;  %v2159_v42 = vmul.f32 0.03125, %v2149_v35  ;;  %v2173_v12 = vmul.f32 %v4402_v50, %v4402_v50  ;;  %v2192_v49 = vsel %vm455_vm0, %v2174_v53, 0.0 }
 0xd7b   : > { %v4413_v36 = vsub.f32 %v4367_v19, %v2159_v42  ;;  %v2189_v21 = vsel %vm455_vm0, %v2173_v12, 0.0  ;;  %v2176_v51 = vmul.f32 %v4408_v55, %v4408_v55 }
 0xd7c   : > { %2193 = vadd.xlane.f32.xlu1 %v2192_v49  ;;  %2190 = vadd.xlane.f32.xlu0 %v2189_v21 }
 0xd7d   : > { %v2175_v29 = vmul.f32 %v4413_v36, %v4413_v36  ;;  %v2198_v26 = vsel %vm455_vm0, %v2176_v51, 0.0 }
 0xd7f   : > { %v2195_v3 = vsel %vm455_vm0, %v2175_v29, 0.0 }
 0xd80   : > { %2199 = vadd.xlane.f32.xlu1 %v2198_v26  ;;  %2196 = vadd.xlane.f32.xlu0 %v2195_v3 }
 0xdfd   : > { %v2179_v62 = vpop.xlane.xlu0 %2178 }
 0xdfe   : > { %v2201_v63 = vmul.f32 0.03125, %v2179_v62 }
 0xdff   : > { %v2182_v1 = vpop.xlane.xlu1 %2181 }
 0xe00   : > { %v2209_v54 = vadd.f32 1e-05, %v2201_v63  ;;  %v2202_v9 = vmul.f32 0.03125, %v2182_v1 }
 0xe01   : > { %v2185_v60 = vpop.xlane.xlu0 %2184 }
 0xe02   : > { %3466 = vrsqrt.f32 %v2209_v54  ;;  %v2210_v23 = vadd.f32 1e-05, %v2202_v9  ;;  %v2203_v30 = vmul.f32 0.03125, %v2185_v60 }
 0xe04   : > { %3468 = vrsqrt.f32 %v2210_v23  ;;  %v2211_v48 = vadd.f32 1e-05, %v2203_v30 }
 0xe05   : > { %v2188_v61 = vpop.xlane.xlu1 %2187 }
 0xe06   : > { %3470 = vrsqrt.f32 %v2211_v48  ;;  %v2204_v17 = vmul.f32 0.03125, %v2188_v61  ;;  %v3316_v48 = vld [vmem:[%s4645_s11 + $0x10] sm:$0xff]   ;;  %v3317_v61 = vld [vmem:[%s4645_s11 + $0x18] sm:$0xff]  }
 0xe08   : > { %v2212_v2 = vadd.f32 1e-05, %v2204_v17  ;;  %v3318_v17 = vld [vmem:[%s4645_s11 + $0x20] sm:$0xff]  }
 0xe09   : > { %v2194_v15 = vpop.xlane.xlu1 %2193  ;;  %v2191_v39 = vpop.xlane.xlu0 %2190 }
 0xe0a   : > { %3472 = vrsqrt.f32 %v2212_v2  ;;  %v2206_v22 = vmul.f32 0.03125, %v2194_v15  ;;  %v2205_v27 = vmul.f32 0.03125, %v2191_v39  ;;  %v3319_v2 = vld [vmem:[%s4645_s11 + $0x28] sm:$0xff]   ;;  %v3320_v15 = vld [vmem:[%s4645_s11 + $0x30] sm:$0xff]   ;;  %v3321_v39 = vld [vmem:[%s4645_s11 + $0x38] sm:$0xff]  }
 0xe0c   : > { %v3467_v8 = vpop.eup %3466  ;;  %v2214_v33 = vadd.f32 1e-05, %v2206_v22  ;;  %v2213_v14 = vadd.f32 1e-05, %v2205_v27  ;;  %v2875_v22 = vld [vmem:[%s4644_s10] ss:$0 sm:$0xff] }
 0xe0d   : > { %v2225_v16 = vmul.f32 %v3467_v8, %v4376_v11  ;;  %v2200_v59 = vpop.xlane.xlu1 %2199  ;;  %v2197_v0 = vpop.xlane.xlu0 %2196 }
 0xe0e   : > { %v3469_v56 = vpop.eup %3468  ;;  %3474 = vrsqrt.f32 %v2214_v33  ;;  %v2208_v40 = vmul.f32 0.03125, %v2200_v59  ;;  %v2207_v37 = vmul.f32 0.03125, %v2197_v0 }
 0xe0f   : > { %v2226_v10 = vmul.f32 %v3469_v56, %v4379_v5  ;;  %3476 = vrsqrt.f32 %v2213_v14  ;;  %v2239_v46 = vmul.f32 %v2873_v32, %v2225_v16 }
 0xe10   : > { %v3471_v45 = vpop.eup %3470  ;;  %v2216_v57 = vadd.f32 1e-05, %v2208_v40  ;;  %v2215_v43 = vadd.f32 1e-05, %v2207_v37 }
 0xe11   : > { %v2227_v44 = vmul.f32 %v3471_v45, %v4384_v6  ;;  %v2240_v11 = vmul.f32 %v2873_v32, %v2226_v10  ;;  %v2253_v4 = vadd.f32 %v2874_v38, %v2239_v46 }
 0xe12   : > { %3478 = vrsqrt.f32 %v2216_v57 }
 0xe13   : > { %3480 = vrsqrt.f32 %v2215_v43  ;;  %v2254_v47 = vadd.f32 %v2874_v38, %v2240_v11  ;;  %v2241_v53 = vmul.f32 %v2873_v32, %v2227_v44 }
 0xe14   : > { %v3473_v7 = vpop.eup %3472 }
 0xe15   : > { %v2228_v5 = vmul.f32 %v3473_v7, %v4393_v28  ;;  %v2261_v35 = vpack.c.bf16 %v2254_v47, %v2253_v4  ;;  %v2255_v21 = vadd.f32 %v2874_v38, %v2241_v53 }
 0xe17   : > { %v2242_v42 = vmul.f32 %v2873_v32, %v2228_v5  ;;  %3238 = vmatprep.mubr.msk.bf16.mxu0 %vm455_vm0, %v2261_v35 }
 0xe18   : > { %v3475_v12 = vpop.eup %3474 }
 0xe19   : > { %v3477_v49 = vpop.eup %3476  ;;  %v2256_v51 = vadd.f32 %v2874_v38, %v2242_v42  ;;  %v2230_v29 = vmul.f32 %v3475_v12, %v4397_v18 }
 0xe1a   : > { %v2229_v6 = vmul.f32 %v3477_v49, %v4402_v50 }
 0xe1b   : > { %v2262_v26 = vpack.c.bf16 %v2256_v51, %v2255_v21  ;;  %v2244_v3 = vmul.f32 %v2873_v32, %v2230_v29 }
 0xe1c   : > { %v3479_v20 = vpop.eup %3478  ;;  %v2243_v58 = vmul.f32 %v2873_v32, %v2229_v6 }
 0xe1d   : > { %v3481_v62 = vpop.eup %3480  ;;  %v2232_v63 = vmul.f32 %v3479_v20, %v4408_v55  ;;  %3239 = vmatmul.mubr.msk.bf16.vlgmr.msra.gmra.mrb[48].mxu0 %vm455_vm0, %v2262_v26  ;;  %v2258_v28 = vadd.f32 %v2874_v38, %v2244_v3  ;;  %v3314_v55 = vld [vmem:[%s4645_s11] sm:$0xff]  }
 0xe1e   : > { %v2231_v1 = vmul.f32 %v3481_v62, %v4413_v36  ;;  %v2257_v54 = vadd.f32 %v2874_v38, %v2243_v58  ;;  %3246 = vmatprep.subr.bf16.mxu1 %v3314_v55  ;;  %v3315_v36 = vld [vmem:[%s4645_s11 + $0x8] sm:$0xff]  }
 0xe1f   : > { %v2246_v9 = vmul.f32 %v2873_v32, %v2232_v63  ;;  %3247 = vmatpush3.bf16.msra.mxu1 %v3314_v55 }
 0xe20   : > { %v2263_v60 = vpack.c.bf16 %v2258_v28, %v2257_v54  ;;  %v2245_v23 = vmul.f32 %v2873_v32, %v2231_v1  ;;  %3248 = vmatprep.subr.bf16.mxu1 %v3315_v36 }
 0xe21   : > { %v2260_v30 = vadd.f32 %v2874_v38, %v2246_v9 }
 0xe22   : > { %3242 = vmatprep.mubr.msk.bf16.mxu0 %vm455_vm0, %v2263_v60  ;;  %v2259_v18 = vadd.f32 %v2874_v38, %v2245_v23 }
 0xe23   : > { %3249 = vmatpush3.bf16.msra.mxu1 %v3315_v36 }
 0xe24   : > { %v2264_v50 = vpack.c.bf16 %v2260_v30, %v2259_v18  ;;  %3250 = vmatprep.subr.bf16.mxu1 %v3316_v48 }
 0xe26   : > { %3243 = vmatmul.mubr.msk.bf16.gmra.mrb[52].mxu0 %vm455_vm0, %v2264_v50 }
 0xe27   : > { %3251 = vmatpush3.bf16.msra.mxu1 %v3316_v48 }
 0xe28   : > { %3252 = vmatprep.subr.bf16.mxu1 %v3317_v61 }
 0xe2b   : > { %3253 = vmatpush3.bf16.msra.mxu1 %v3317_v61 }
 0xe2c   : > { %3254 = vmatprep.subr.bf16.mxu1 %v3318_v17 }
 0xe2f   : > { %3255 = vmatpush3.bf16.msra.mxu1 %v3318_v17 }
 0xe30   : > { %3256 = vmatprep.subr.bf16.mxu1 %v3319_v2 }
 0xe33   : > { %3257 = vmatpush3.bf16.msra.mxu1 %v3319_v2 }
 0xe34   : > { %3258 = vmatprep.subr.bf16.mxu1 %v3320_v15 }
 0xe37   : > { %3259 = vmatpush3.bf16.msra.mxu1 %v3320_v15 }
 0xe38   : > { %3260 = vmatprep.subr.bf16.mxu1 %v3321_v39 }
 0xe3b   : > { %3261 = vmatpush3.bf16.msra.mxu1 %v3321_v39 }
 0xef0   : > { %v3240_v27 = vpop.f32.mrb[48].mxu0 }
 0xef1   : > { %v2343_v8 = vadd.f32 %v3240_v27, %v2875_v22  ;;  %v2334_v32 = vpop.f32.mrb[49].mxu0 }
 0xef2   : > { %v4474_v33 = vadd.f32 %v2875_v22, %v2334_v32  ;;  %v3241_v14 = vpop.f32.mrb[50].mxu0 }
 0xef3   : > { %v4476_v16 = vmul.f32 0.70710677, %v2343_v8  ;;  %v4478_v59 = vadd.f32 %v3241_v14, %v2875_v22  ;;  %v2337_v0 = vpop.f32.mrb[51].mxu0  ;;  %v4515_v18 = vmul.f32 0.5, %v2343_v8 }
 0xef4   : > { %v4481_v56 = vmul.f32 0.70710677, %v4474_v33  ;;  %v4483_v40 = vadd.f32 %v2875_v22, %v2337_v0 }
 0xef5   : > { %v2375_v37 = vand.u32 2147483647, %v4476_v16  ;;  %v4487_v10 = vmul.f32 0.70710677, %v4478_v59  ;;  %vm2535_vm7 = vcmp.ge.f32.partialorder %v4476_v16, 0.0 }
 0xef6   : > { %v2373_v46 = vand.u32 2147483647, %v4481_v56  ;;  %v4491_v45 = vmul.f32 0.70710677, %v4483_v40  ;;  %vm2533_vm8 = vcmp.ge.f32.partialorder %v4481_v56, 0.0 }
 0xef7   : > { %v2383_v38 = vmul.f32 0.3275911, %v2375_v37  ;;  %v2376_v57 = vand.u32 2147483647, %v4487_v10  ;;  %v2487_v3 = vsub.f32 0.0, %v2375_v37  ;;  %vm2536_vm9 = vcmp.ge.f32.partialorder %v4487_v10, 0.0 }
 0xef8   : > { %v2381_v43 = vmul.f32 0.3275911, %v2373_v46  ;;  %v2374_v44 = vand.u32 2147483647, %v4491_v45  ;;  %v2485_v62 = vsub.f32 0.0, %v2373_v46  ;;  %vm2534_vm10 = vcmp.ge.f32.partialorder %v4491_v45, 0.0 }
 0xef9   : > { %v2391_v11 = vadd.f32 1.0, %v2383_v38  ;;  %v2384_v4 = vmul.f32 0.3275911, %v2376_v57  ;;  %v3244_v47 = vpop.f32.mrb[52].mxu0  ;;  %v2488_v1 = vsub.f32 0.0, %v2376_v57  ;;  %v2495_v30 = vmul.f32 %v2487_v3, %v2375_v37 }
 0xefa   : > { %v2389_v7 = vadd.f32 1.0, %v2381_v43  ;;  %v2382_v53 = vmul.f32 0.3275911, %v2374_v44  ;;  %v2350_v5 = vpop.f32.mrb[53].mxu0  ;;  %v4495_v21 = vadd.f32 %v3244_v47, %v2875_v22  ;;  %v2486_v54 = vsub.f32 0.0, %v2374_v44 }
 0xefb   : > { %3482 = vrcp.f32 %v2391_v11  ;;  %v2392_v35 = vadd.f32 1.0, %v2384_v4  ;;  %v3245_v42 = vpop.f32.mrb[54].mxu0  ;;  %v4497_v51 = vadd.f32 %v2875_v22, %v2350_v5  ;;  %v2493_v48 = vmul.f32 %v2485_v62, %v2373_v46 }
 0xefc   : > { %3484 = vrcp.f32 %v2389_v7  ;;  %v2353_v12 = vpop.f32.mrb[55].mxu0  ;;  %v2390_v49 = vadd.f32 1.0, %v2382_v53  ;;  %v4499_v29 = vadd.f32 %v3245_v42, %v2875_v22  ;;  %v4502_v6 = vmul.f32 0.70710677, %v4495_v21 }
 0xefd   : > { %3486 = vrcp.f32 %v2392_v35  ;;  %v4505_v26 = vmul.f32 0.70710677, %v4497_v51  ;;  %v4510_v58 = vadd.f32 %v2875_v22, %v2353_v12  ;;  %v2496_v22 = vmul.f32 %v2488_v1, %v2376_v57 }
 0xefe   : > { %v4508_v20 = vmul.f32 0.70710677, %v4499_v29  ;;  %3488 = vrcp.f32 %v2390_v49  ;;  %v2379_v63 = vand.u32 2147483647, %v4502_v6  ;;  %v2494_v27 = vmul.f32 %v2486_v54, %v2374_v44 }
 0xeff   : > { %v2377_v28 = vand.u32 2147483647, %v4505_v26  ;;  %v4518_v55 = vmul.f32 0.70710677, %v4510_v58  ;;  %v2505_v38 = vmul.f32 1.442695, %v2495_v30 }
 0xf00   : > { %v2380_v9 = vand.u32 2147483647, %v4508_v20  ;;  %v2387_v60 = vmul.f32 0.3275911, %v2379_v63  ;;  %v2491_v17 = vsub.f32 0.0, %v2379_v63  ;;  %vm2539_vm11 = vcmp.ge.f32.partialorder %v4502_v6, 0.0 }
 0xf01   : > { %v2385_v23 = vmul.f32 0.3275911, %v2377_v28  ;;  %v2378_v32 = vand.u32 2147483647, %v4518_v55  ;;  %v2489_v14 = vsub.f32 0.0, %v2377_v28  ;;  %vm2540_vm12 = vcmp.ge.f32.partialorder %v4508_v20, 0.0 }
 0xf02   : > { %v2388_v50 = vmul.f32 0.3275911, %v2380_v9  ;;  %v2395_v61 = vadd.f32 1.0, %v2387_v60  ;;  %v2501_v4 = vmul.f32 1.442695, %v2493_v48  ;;  %v2499_v47 = vmul.f32 %v2491_v17, %v2379_v63 }
 0xf03   : > { %v2393_v2 = vadd.f32 1.0, %v2385_v23  ;;  %v2386_v46 = vmul.f32 0.3275911, %v2378_v32  ;;  %v2492_v7 = vsub.f32 0.0, %v2380_v9  ;;  %v2507_v53 = vmul.f32 1.442695, %v2496_v22 }
 0xf04   : > { %3490 = vrcp.f32 %v2395_v61  ;;  %v2396_v0 = vadd.f32 1.0, %v2388_v50  ;;  %v2503_v12 = vmul.f32 1.442695, %v2494_v27  ;;  %v2497_v49 = vmul.f32 %v2489_v14, %v2377_v28 }
 0xf05   : > { %v4520_v36 = vpop.eup %3482  ;;  %3492 = vrcp.f32 %v2393_v2  ;;  %v2394_v5 = vadd.f32 1.0, %v2386_v46  ;;  %v2513_v54 = vmul.f32 1.442695, %v2499_v47  ;;  %v2500_v60 = vmul.f32 %v2492_v7, %v2380_v9 }
 0xf06   : > { %v4522_v15 = vpop.eup %3484  ;;  %v2415_v39 = vmul.f32 1.0614054, %v4520_v36  ;;  %3494 = vrcp.f32 %v2396_v0  ;;  %v2509_v28 = vmul.f32 1.442695, %v2497_v49  ;;  %v2490_v61 = vsub.f32 0.0, %v2378_v32 }
 0xf07   : > { %v2413_v8 = vmul.f32 1.0614054, %v4522_v15  ;;  %v4527_v43 = vpop.eup %3486  ;;  %3496 = vpow2.f32 %v2505_v38  ;;  %v4542_v27 = vmul.f32 0.5, %v4474_v33  ;;  %vm2537_vm13 = vcmp.ge.f32.partialorder %v4505_v26, 0.0 }
 0xf08   : > { %v2884_v37 = vadd.f32 -1.4531521, %v2415_v39  ;;  %v2416_v44 = vmul.f32 1.0614054, %v4527_v43  ;;  %v4531_v35 = vpop.eup %3488  ;;  %3498 = vrcp.f32 %v2394_v5  ;;  %v2498_v47 = vmul.f32 %v2490_v61, %v2378_v32 }
 0xf09   : > { %v2882_v11 = vadd.f32 -1.4531521, %v2413_v8  ;;  %v2414_v1 = vmul.f32 1.0614054, %v4531_v35  ;;  %3500 = vpow2.f32 %v2501_v4  ;;  %v2515_v8 = vmul.f32 1.442695, %v2500_v60 }
 0xf0a   : > { %v2431_v57 = vmul.f32 %v4520_v36, %v2884_v37  ;;  %v2885_v62 = vadd.f32 -1.4531521, %v2416_v44  ;;  %3502 = vpow2.f32 %v2507_v53  ;;  %vm2538_vm14 = vcmp.ge.f32.partialorder %v4518_v55, 0.0 }
 0xf0b   : > { %v2429_v42 = vmul.f32 %v4522_v15, %v2882_v11  ;;  %v2883_v50 = vadd.f32 -1.4531521, %v2414_v1  ;;  %3504 = vpow2.f32 %v2503_v12 }
 0xf0c   : > { %v2439_v3 = vadd.f32 1.4214138, %v2431_v57  ;;  %v2432_v30 = vmul.f32 %v4527_v43, %v2885_v62  ;;  %3506 = vpow2.f32 %v2513_v54 }
 0xf0d   : > { %v2437_v63 = vadd.f32 1.4214138, %v2429_v42  ;;  %v2430_v39 = vmul.f32 %v4531_v35, %v2883_v50  ;;  %3508 = vpow2.f32 %v2509_v28  ;;  %v4556_v42 = vmul.f32 0.5, %v4478_v59 }
 0xf0e   : > { %v2447_v23 = vmul.f32 %v4520_v36, %v2439_v3  ;;  %v2440_v2 = vadd.f32 1.4214138, %v2432_v30  ;;  %v4539_v22 = vpop.eup %3490  ;;  %3510 = vpow2.f32 %v2515_v8 }
 0xf0f   : > { %v2445_v48 = vmul.f32 %v4522_v15, %v2437_v63  ;;  %v4544_v14 = vpop.eup %3492  ;;  %v2438_v38 = vadd.f32 1.4214138, %v2430_v39  ;;  %v2419_v46 = vmul.f32 1.0614054, %v4539_v22 }
 0xf10   : > { %v2892_v17 = vadd.f32 -0.28449672, %v2447_v23  ;;  %v2448_v37 = vmul.f32 %v4527_v43, %v2440_v2  ;;  %v2417_v4 = vmul.f32 1.0614054, %v4544_v14  ;;  %v4552_v53 = vpop.eup %3494  ;;  %v2511_v23 = vmul.f32 1.442695, %v2498_v47 }
 0xf11   : > { %v2890_v9 = vadd.f32 -0.28449672, %v2445_v48  ;;  %v2446_v57 = vmul.f32 %v4531_v35, %v2438_v38  ;;  %v2888_v44 = vadd.f32 -1.4531521, %v2419_v46  ;;  %v3497_v49 = vpop.eup %3496  ;;  %v2420_v59 = vmul.f32 1.0614054, %v4552_v53 }
 0xf12   : > { %v2463_v0 = vmul.f32 %v4520_v36, %v2892_v17  ;;  %v2893_v33 = vadd.f32 -0.28449672, %v2448_v37  ;;  %v2886_v12 = vadd.f32 -1.4531521, %v2417_v4  ;;  %v4562_v63 = vpop.eup %3498  ;;  %3512 = vpow2.f32 %v2511_v23 }
 0xf13   : > { %v2461_v11 = vmul.f32 %v4522_v15, %v2890_v9  ;;  %v2891_v62 = vadd.f32 -0.28449672, %v2446_v57  ;;  %v2435_v1 = vmul.f32 %v4539_v22, %v2888_v44  ;;  %v3501_v30 = vpop.eup %3500  ;;  %v2889_v39 = vadd.f32 -1.4531521, %v2420_v59 }
 0xf14   : > { %v2471_v7 = vadd.f32 0.2548296, %v2463_v0  ;;  %v2464_v32 = vmul.f32 %v4527_v43, %v2893_v33  ;;  %v2433_v60 = vmul.f32 %v4544_v14, %v2886_v12  ;;  %v3503_v61 = vpop.eup %3502  ;;  %v2418_v9 = vmul.f32 1.0614054, %v4562_v63 }
 0xf15   : > { %v2469_v5 = vadd.f32 0.2548296, %v2461_v11  ;;  %v2443_v28 = vadd.f32 1.4214138, %v2435_v1  ;;  %v2436_v47 = vmul.f32 %v4552_v53, %v2889_v39  ;;  %v2558_v23 = vmul.f32 0.5, %v4483_v40 }
 0xf16   : > { %v2479_v3 = vmul.f32 %v4520_v36, %v2471_v7  ;;  %v2472_v48 = vadd.f32 0.2548296, %v2464_v32  ;;  %v2462_v36 = vmul.f32 %v4531_v35, %v2891_v62  ;;  %v2441_v2 = vadd.f32 1.4214138, %v2433_v60 }
 0xf17   : > { %v2477_v54 = vmul.f32 %v4522_v15, %v2469_v5  ;;  %v3505_v15 = vpop.eup %3504  ;;  %v2451_v38 = vmul.f32 %v4539_v22, %v2443_v28  ;;  %v2887_v7 = vadd.f32 -1.4531521, %v2418_v9  ;;  %v2444_v32 = vadd.f32 1.4214138, %v2436_v47 }
 0xf18   : > { %v2519_v50 = vmul.f32 %v3497_v49, %v2479_v3  ;;  %v2480_v0 = vmul.f32 %v4527_v43, %v2472_v48  ;;  %v2470_v37 = vadd.f32 0.2548296, %v2462_v36  ;;  %v3507_v46 = vpop.eup %3506  ;;  %v2449_v4 = vmul.f32 %v4544_v14, %v2441_v2 }
 0xf19   : > { %v2517_v17 = vmul.f32 %v3501_v30, %v2477_v54  ;;  %v2896_v5 = vadd.f32 -0.28449672, %v2451_v38  ;;  %v3509_v12 = vpop.eup %3508  ;;  %v2434_v43 = vmul.f32 %v4562_v63, %v2887_v7 }
 0xf1a   : > { %v2527_v8 = vsub.f32 1.0, %v2519_v50  ;;  %v2520_v57 = vmul.f32 %v3503_v61, %v2480_v0  ;;  %v2478_v44 = vmul.f32 %v4531_v35, %v2470_v37  ;;  %v2894_v3 = vadd.f32 -0.28449672, %v2449_v4  ;;  %v3511_v59 = vpop.eup %3510 }
 0xf1b   : > { %v2525_v11 = vsub.f32 1.0, %v2517_v17  ;;  %v2467_v60 = vmul.f32 %v4539_v22, %v2896_v5  ;;  %v2452_v50 = vmul.f32 %v4552_v53, %v2444_v32  ;;  %v2442_v2 = vadd.f32 1.4214138, %v2434_v43 }
 0xf1c   : > { %v2543_v33 = vsub.f32 0.0, %v2527_v8  ;;  %v2528_v1 = vsub.f32 1.0, %v2520_v57  ;;  %v2518_v54 = vmul.f32 %v3505_v15, %v2478_v44  ;;  %v2465_v35 = vmul.f32 %v4544_v14, %v2894_v3 }
 0xf1d   : > { %v2541_v49 = vsub.f32 0.0, %v2525_v11  ;;  %v2475_v61 = vadd.f32 0.2548296, %v2467_v60  ;;  %v2897_v17 = vadd.f32 -0.28449672, %v2452_v50  ;;  %v2450_v38 = vmul.f32 %v4562_v63, %v2442_v2 }
 0xf1e   : > { %v2551_v62 = vsel %vm2535_vm7, %v2527_v8, %v2543_v33  ;;  %v2544_v36 = vsub.f32 0.0, %v2528_v1  ;;  %v2526_v28 = vsub.f32 1.0, %v2518_v54  ;;  %v2473_v16 = vadd.f32 0.2548296, %v2465_v35 }
 0xf1f   : > { %v2549_v30 = vsel %vm2533_vm8, %v2525_v11, %v2541_v49  ;;  %v2567_v48 = vadd.f32 1.0, %v2551_v62  ;;  %v2483_v15 = vmul.f32 %v4539_v22, %v2475_v61  ;;  %v2468_v37 = vmul.f32 %v4552_v53, %v2897_v17 }
 0xf20   : > { %v2565_v39 = vadd.f32 1.0, %v2549_v30  ;;  %v2552_v9 = vsel %vm2536_vm9, %v2528_v1, %v2544_v36  ;;  %v2542_v56 = vsub.f32 0.0, %v2526_v28  ;;  %v2481_v0 = vmul.f32 %v4544_v14, %v2473_v16 }
 0xf21   : > { %v2568_v8 = vadd.f32 1.0, %v2552_v9  ;;  %v2575_v11 = vmul.f32 %v2567_v48, %v4515_v18  ;;  %v2523_v47 = vmul.f32 %v3507_v46, %v2483_v15  ;;  %v2476_v22 = vadd.f32 0.2548296, %v2468_v37  ;;  %v3513_v46 = vpop.eup %3512 }
 0xf22   : > { %v2550_v4 = vsel %vm2534_vm10, %v2526_v28, %v2542_v56  ;;  %v2521_v33 = vmul.f32 %v3509_v12, %v2481_v0  ;;  %v2895_v44 = vadd.f32 -0.28449672, %v2450_v38  ;;  %v2573_v14 = vmul.f32 %v2565_v39, %v4542_v27 }
 0xf23   : > { %v2576_v10 = vmul.f32 %v2568_v8, %v4556_v42  ;;  %v2566_v7 = vadd.f32 1.0, %v2550_v4  ;;  %v2531_v57 = vsub.f32 1.0, %v2523_v47  ;;  %v2484_v3 = vmul.f32 %v4552_v53, %v2476_v22 }
 0xf24   : > { %v2529_v32 = vsub.f32 1.0, %v2521_v33  ;;  %v2466_v45 = vmul.f32 %v4562_v63, %v2895_v44  ;;  %v2563_v30 = vmul.f32 0.5, %v4495_v21  ;;  %v2564_v35 = vmul.f32 0.5, %v4499_v29  ;;  %v2898_v29 = vld [vmem:[%s4646_s12] ss:$0 sm:$0xff] }
 0xf25   : > { %v2582_v5 = vpack.c.bf16 %v2576_v10, %v2575_v11  ;;  %v2574_v49 = vmul.f32 %v2566_v7, %v2558_v23  ;;  %v2547_v18 = vsub.f32 0.0, %v2531_v57  ;;  %v2524_v43 = vmul.f32 %v3511_v59, %v2484_v3 }
 0xf26   : > { %v2474_v42 = vadd.f32 0.2548296, %v2466_v45  ;;  %v2545_v1 = vsub.f32 0.0, %v2529_v32  ;;  %v2561_v17 = vmul.f32 0.5, %v4497_v51  ;;  %v2562_v21 = vmul.f32 0.5, %v4510_v58 }
 0xf27   : > { %v2581_v40 = vpack.c.bf16 %v2574_v49, %v2573_v14  ;;  %v2555_v12 = vsel %vm2539_vm11, %v2531_v57, %v2547_v18  ;;  %v2532_v62 = vsub.f32 1.0, %v2524_v43 }
 0xf28   : > { %v2482_v27 = vmul.f32 %v4562_v63, %v2474_v42  ;;  %v2571_v60 = vadd.f32 1.0, %v2555_v12  ;;  %v2553_v6 = vsel %vm2537_vm13, %v2529_v32, %v2545_v1 }
 0xf29   : > { %3262 = vmatprep.mubr.bf16.mxu1 %v2581_v40  ;;  %v2548_v54 = vsub.f32 0.0, %v2532_v62  ;;  %v2569_v63 = vadd.f32 1.0, %v2553_v6 }
 0xf2a   : > { %3263 = vmatmul.mubr.bf16.vlgmr.msra.gmra.mrb[32].mxu1 %v2582_v5  ;;  %v2522_v53 = vmul.f32 %v3513_v46, %v2482_v27  ;;  %v2579_v36 = vmul.f32 %v2571_v60, %v2563_v30 }
 0xf2b   : > { %v2556_v59 = vsel %vm2540_vm12, %v2532_v62, %v2548_v54  ;;  %v2577_v2 = vmul.f32 %v2569_v63, %v2561_v17 }
 0xf2c   : > { %v2572_v50 = vadd.f32 1.0, %v2556_v59  ;;  %v2530_v48 = vsub.f32 1.0, %v2522_v53 }
 0xf2e   : > { %v2580_v28 = vmul.f32 %v2572_v50, %v2564_v35  ;;  %v2546_v61 = vsub.f32 0.0, %v2530_v48 }
 0xf30   : > { %v2554_v16 = vsel %vm2538_vm14, %v2530_v48, %v2546_v61  ;;  %v2584_v20 = vpack.c.bf16 %v2580_v28, %v2579_v36 }
 0xf31   : > { %v2570_v26 = vadd.f32 1.0, %v2554_v16 }
 0xf33   : > { %v2578_v39 = vmul.f32 %v2570_v26, %v2562_v21 }
 0xf35   : > { %v2583_v9 = vpack.c.bf16 %v2578_v39, %v2577_v2 }
 0xf37   : > { %3266 = vmatprep.mubr.bf16.mxu1 %v2583_v9 }
 0xf38   : > { %3267 = vmatmul.mubr.bf16.gmra.mrb[36].mxu1 %v2584_v20 }
 0xffd   : > { %v3264_v56 = vpop.f32.mrb[32].mxu1 }
 0xffe   : > { %v2699_v15 = vadd.f32 %v3264_v56, %v2898_v29  ;;  %v2690_v8 = vpop.f32.mrb[33].mxu1 }
 0xfff   : > { %v2691_v51 = vadd.f32 %v2898_v29, %v2690_v8  ;;  %v3265_v58 = vpop.f32.mrb[34].mxu1 }
0x1000   : > { %v2723_v55 = vadd.f32 %v2699_v15, %v4339_v41  ;;  %v2702_v0 = vadd.f32 %v3265_v58, %v2898_v29  ;;  %v2693_v37 = vpop.f32.mrb[35].mxu1 }
0x1001   : > { %v2721_v38 = vadd.f32 %v2691_v51, %v4336_v34  ;;  %v2694_v11 = vadd.f32 %v2898_v29, %v2693_v37 }
0x1002   : > { %2731 = vst.msk [vmem:[%s442_s24 + $0x10] sm:$0xff] %vm455_vm0, %v2723_v55  ;;  %v2724_v4 = vadd.f32 %v2702_v0, %v4349_v25 }
0x1003   : > { %2729 = vst.msk [vmem:[%s442_s24] sm:$0xff] %vm455_vm0, %v2721_v38  ;;  %v2722_v23 = vadd.f32 %v2694_v11, %v4342_v52 }
0x1004   : > { %2732 = vst.msk [vmem:[%s442_s24 + $0x18] sm:$0xff] %vm455_vm0, %v2724_v4 }
0x1005   : > { %2730 = vst.msk [vmem:[%s442_s24 + $0x8] sm:$0xff] %vm455_vm0, %v2722_v23 }
0x100b   : > { %v3268_v47 = vpop.f32.mrb[36].mxu1 }
0x100c   : > { %v2715_v10 = vadd.f32 %v3268_v47, %v2898_v29  ;;  %v2706_v41 = vpop.f32.mrb[37].mxu1 }
0x100d   : > { %v2707_v7 = vadd.f32 %v2898_v29, %v2706_v41  ;;  %v3269_v33 = vpop.f32.mrb[38].mxu1 }
0x100e   : > { %v2727_v34 = vadd.f32 %v2715_v10, %v4367_v19  ;;  %v2718_v22 = vadd.f32 %v3269_v33, %v2898_v29  ;;  %v2709_v57 = vpop.f32.mrb[39].mxu1 }
0x100f   : > { %v2725_v44 = vadd.f32 %v2707_v7, %v4354_v13  ;;  %v2710_v25 = vadd.f32 %v2898_v29, %v2709_v57 }
0x1010   : > { %2735 = vst.msk [vmem:[%s442_s24 + $0x30] sm:$0xff] %vm455_vm0, %v2727_v34  ;;  %v2728_v52 = vadd.f32 %v2718_v22, %v4362_v31 }
0x1011   : > { %2733 = vst.msk [vmem:[%s442_s24 + $0x20] sm:$0xff] %vm455_vm0, %v2725_v44  ;;  %v2726_v14 = vadd.f32 %v2710_v25, %v4357_v24 }
0x1012   : > { %2736 = vst.msk [vmem:[%s442_s24 + $0x38] sm:$0xff] %vm455_vm0, %v2728_v52 }
0x1013   : > { %2734 = vst.msk [vmem:[%s442_s24 + $0x28] sm:$0xff] %vm455_vm0, %v2726_v14 }
0x1014 PF: > { %s23_s25 = sadd.s32 1, %s3530_s25  }
0x1015   : > { %p20_p4 = scmp.ge.s32.totalorder %s23_s25, 4  }
0x1017   :  { %22 = sbr.rel (!%p20_p4) target bundleno = 1 (0x1), region = 105 }

</bundles_post_ra>
